<compile_context>
chip_gen: v7x
topology: tpu7x:2x2x1
jax: 0.10.0
libtpu: 0.0.40
codegen_flags: <defaults>
</compile_context>

<pallas_src>
import functools
import math

import jax
import jax.numpy as jnp
from jax.experimental import pallas as pl
from jax.experimental.pallas import tpu as pltpu

LEAKY_SLOPE = 0.01   # nn.LeakyReLU default
BN_EPS = 1e-5        # nn.BatchNorm1d default
_NEG_BIG = -1e30     # "-inf" stand-in for masked logsumexp


def _leaky_relu(x):
    return jnp.where(x >= 0, x, LEAKY_SLOPE * x)


# ---------------------------------------------------------------------------
# In-kernel helpers (traced inline inside the single pallas kernel)
# ---------------------------------------------------------------------------
def _roll_seg(x, s, L, lane):
    """Per-segment circular roll by s along the lane axis of x = (C, B*L).

    Each length-L segment (one batch element) rolls independently; realised as two
    flat pltpu.roll's (XLU slot) plus one lane-mask select (VPU slot).
    """
    if s == 0:
        return x
    N = x.shape[-1]
    a = pltpu.roll(x, shift=s % N, axis=x.ndim - 1)
    if N == L:                     # single segment: flat roll already per-segment circular
        return a
    if s > 0:
        b = pltpu.roll(x, shift=(s - L) % N, axis=x.ndim - 1)
        return jnp.where(lane < s, b, a)
    b = pltpu.roll(x, shift=(s + L) % N, axis=x.ndim - 1)
    return jnp.where(lane >= L + s, b, a)


def _conv_layer(y, w_ref, bias, i, K, L, lane):
    """One Conv1d('same') layer as K accumulating (Cout,Cin)@(Cin,B*L) MXU matmuls."""
    pad = (K - 1) // 2
    acc = bias                                             # (Cout, B*L) or (Cout, 1)
    for k in range(K):
        tap = _roll_seg(y, pad - k, L, lane)
        acc = acc + jnp.dot(w_ref[i, k], tap, preferred_element_type=jnp.float32)
    return acc


def _bn_act(y, gamma, beta, valid, count):
    """Training-mode BatchNorm1d (two-pass mean / biased var) + LeakyReLU."""
    ym = y if valid is None else jnp.where(valid, y, 0.0)
    mean = jnp.sum(ym, axis=1, keepdims=True) / count
    d = y - mean
    dm = d if valid is None else jnp.where(valid, d, 0.0)
    var = jnp.sum(dm * dm, axis=1, keepdims=True) / count
    return _leaky_relu(d * jax.lax.rsqrt(var + BN_EPS) * gamma + beta)


def _pool(y, valid, B, L, n_valid):
    """Per-batch-segment mean and logsumexp over length: (C, B*L) -> (C, B) each."""
    ym = y if valid is None else jnp.where(valid, y, 0.0)
    yl = y if valid is None else jnp.where(valid, y, _NEG_BIG)
    means, lses = [], []
    for b in range(B):
        sm = ym[:, b * L:(b + 1) * L]
        sl = yl[:, b * L:(b + 1) * L]
        means.append(jnp.sum(sm, axis=1, keepdims=True) / n_valid)
        m = jnp.max(sl, axis=1, keepdims=True)
        lses.append(jnp.log(jnp.sum(jnp.exp(sl - m), axis=1, keepdims=True)) + m)
    return jnp.concatenate(means, axis=1), jnp.concatenate(lses, axis=1)


# ---------------------------------------------------------------------------
# The single fused kernel: freq pathway + temp pathway + pooling + fc head
# ---------------------------------------------------------------------------
def _disc_kernel(xq_ref, wq_ref, bq_ref, gq_ref, beq_ref,
                 xt_ref, wt_ref, bt_ref, gt_ref, bet_ref,
                 w1_ref, b1_ref, w2_ref, b2_ref, o_ref,
                 *, K, B, F, Lq, Lt):
    n_f = wq_ref.shape[0]
    n_t = wt_ref.shape[0]

    # ---- frequency pathway: zeros padding, valid lanes = (lane % Lq) < F ----
    lane_q = jax.lax.broadcasted_iota(jnp.int32, (1, B * Lq), 1) % Lq
    valid_q = lane_q < F
    y = xq_ref[...]
    for i in range(n_f):
        y2 = _conv_layer(y, wq_ref, bq_ref[i], i, K, Lq, lane_q)
        if i + 1 < n_f:
            y2 = _bn_act(y2, gq_ref[i], beq_ref[i], valid_q, B * F)
            y2 = jnp.where(valid_q, y2, 0.0)   # keep padding lanes zero for next conv
        y = y2
    mean_f, lse_f = _pool(y, valid_q, B, Lq, F)            # (2h, B) each

    # ---- temporal pathway: circular padding, all lanes valid ----
    lane_t = jax.lax.broadcasted_iota(jnp.int32, (1, B * Lt), 1) % Lt
    z = xt_ref[...]
    for i in range(n_t):
        z2 = _conv_layer(z, wt_ref, bt_ref[i], i, K, Lt, lane_t)
        if i + 1 < n_t:
            z2 = _bn_act(z2, gt_ref[i], bet_ref[i], None, B * Lt)
        z = z2
    mean_t, lse_t = _pool(z, None, B, Lt, Lt)              # (h, B) each

    # ---- fc head, transposed layout (features on sublanes, batch on lanes) ----
    x8t = jnp.concatenate([mean_f, lse_f, mean_t, lse_t], axis=0)        # (6h, B)
    h1 = _leaky_relu(jnp.dot(w1_ref[...], x8t,
                             preferred_element_type=jnp.float32) + b1_ref[...])
    o_ref[...] = jnp.dot(w2_ref[...], h1,
                         preferred_element_type=jnp.float32) + b2_ref[...]


# ---------------------------------------------------------------------------
# Wrapper
# ---------------------------------------------------------------------------
def discriminate_audio(params, x, *, config):
    S = config["sample_count"]
    K = config["kernel_size"]
    lpad = config["freq_lpad"]
    pad = (K - 1) // 2
    B, C, Sx = x.shape
    assert Sx == S
    F = S // 2 + 1
    # roll-based zero padding requires >= pad zeroed lanes at each segment tail
    assert lpad - F >= pad

    x0 = x.astype(jnp.float32)
    # frequency-domain input: no Pallas FFT primitive -> plain XLA glue
    xf = jnp.fft.rfft(x0, n=S, axis=2, norm="ortho")
    x1 = jnp.concatenate([jnp.real(xf), jnp.imag(xf)], axis=1)           # (B, 2C, F)

    cf = params["wq"].shape[-1]        # freq channel slab width (= 2*hidden)
    ct = params["wt"].shape[-1]        # temp channel slab width (= hidden)

    # channel-major activations with the batch folded into the lane axis
    xq = jnp.transpose(x1, (1, 0, 2))                                    # (2C, B, F)
    xq = jnp.pad(xq, ((0, cf - 2 * C), (0, 0), (0, lpad - F))).reshape(cf, B * lpad)
    xt = jnp.transpose(x0, (1, 0, 2))                                    # (C, B, S)
    xt = jnp.pad(xt, ((0, ct - C), (0, 0), (0, 0))).reshape(ct, B * S)

    # per-position freq bias tiled once over the batch segments (XLA, jit-cached)
    bq = jnp.tile(params["bq"], (1, 1, B))                               # (n_f, 2h, B*lpad)

    vmem = pl.BlockSpec(memory_space=pltpu.MemorySpace.VMEM)
    out = pl.pallas_call(
        functools.partial(_disc_kernel, K=K, B=B, F=F, Lq=lpad, Lt=S),
        out_shape=jax.ShapeDtypeStruct((1, B), jnp.float32),
        in_specs=[vmem] * 14,
        out_specs=vmem,
    )(xq, params["wq"], bq, params["gq"], params["beq"],
      xt, params["wt"], params["bt"], params["gt"], params["bet"],
      params["fc_w1"], params["fc_b1"], params["fc_w2"], params["fc_b2"])
    return out.reshape(B, 1)


# ---------------------------------------------------------------------------
# Parameter setup (deterministic, in-script)
# ---------------------------------------------------------------------------
def make_positional_encoding(positional_features, length):
    # TODO(synk): reference make_positional_encoding was not provided; using a
    # standard sinusoidal encoding of shape (positional_features, length).
    if positional_features == 0:
        return jnp.zeros((0, length), jnp.float32)
    pos = jnp.arange(length, dtype=jnp.float32)[None, :]
    chan = jnp.arange(positional_features, dtype=jnp.float32)[:, None]
    freqs = jnp.power(10000.0, -(2.0 * jnp.floor(chan / 2.0)) / positional_features)
    angles = pos * freqs
    even = (jnp.arange(positional_features) % 2 == 0)[:, None]
    return jnp.where(even, jnp.sin(angles), jnp.cos(angles)).astype(jnp.float32)


def _init_pathway(key, n_layers, cin0, cout, K, P, pos_enc, F_valid, Lpad):
    """Slab-packed conv stack.  Weight slab (n, K, cout, cout); positional-encoding
    channels (batch-independent) are pre-contracted into a per-position bias."""
    assert cout >= cin0
    pad = (K - 1) // 2
    w_slab = jnp.zeros((n_layers, K, cout, cout), jnp.float32)
    if P > 0:
        b_slab = jnp.zeros((n_layers, cout, Lpad), jnp.float32)   # per-position bias
    else:
        b_slab = jnp.zeros((n_layers, cout, 1), jnp.float32)      # per-channel bias only
    g_slab = jnp.ones((n_layers, cout, 1), jnp.float32)
    be_slab = jnp.zeros((n_layers, cout, 1), jnp.float32)

    for i in range(n_layers):
        cin_data = cin0 if i == 0 else cout
        cin_tot = cin_data + P
        key, kw, kb = jax.random.split(key, 3)
        s = 1.0 / math.sqrt(cin_tot * K)
        w = jax.random.uniform(kw, (cout, cin_tot, K), jnp.float32, -s, s)
        b = jax.random.uniform(kb, (cout,), jnp.float32, -s, s)
        for k in range(K):
            w_slab = w_slab.at[i, k, :, :cin_data].set(w[:, :cin_data, k])
        if P > 0:
            pe_pad = jnp.pad(pos_enc, ((0, 0), (pad, pad)))
            pe_bias = jnp.zeros((cout, F_valid), jnp.float32)
            for k in range(K):
                pe_bias = pe_bias + w[:, cin_data:, k] @ pe_pad[:, k:k + F_valid]
            full = jnp.pad(pe_bias, ((0, 0), (0, Lpad - F_valid))) + b[:, None]
            b_slab = b_slab.at[i].set(full)
        else:
            b_slab = b_slab.at[i, :, 0].set(b)
    return dict(w=w_slab, b=b_slab, g=g_slab, be=be_slab), key


def init_params(key, sample_count, kernel_size, audio_channels, hidden_features,
                positional_features, num_hidden_layers):
    assert hidden_features >= audio_channels
    F = sample_count // 2 + 1
    pad = (kernel_size - 1) // 2
    lpad = ((F + 127) // 128) * 128
    if lpad - F < pad:
        lpad += 128   # keep >= pad zeroed lanes per segment so rolls realise zero padding

    n_layers = num_hidden_layers + 1
    pos_enc = make_positional_encoding(positional_features, F)

    temp, key = _init_pathway(key, n_layers, audio_channels, hidden_features,
                              kernel_size, 0, None, sample_count, sample_count)
    freq, key = _init_pathway(key, n_layers, audio_channels * 2, hidden_features * 2,
                              kernel_size, positional_features, pos_enc, F, lpad)

    h = hidden_features
    in1, out1 = 6 * h, 2 * h
    key, k1, k2, k3, k4 = jax.random.split(key, 5)
    s1 = 1.0 / math.sqrt(in1)
    s2 = 1.0 / math.sqrt(out1)
    params = dict(
        wq=freq["w"], bq=freq["b"], gq=freq["g"], beq=freq["be"],
        wt=temp["w"], bt=temp["b"], gt=temp["g"], bet=temp["be"],
        # fc weights stored in PyTorch (out, in) layout = already transposed for the kernel
        fc_w1=jax.random.uniform(k1, (out1, in1), jnp.float32, -s1, s1),
        fc_b1=jax.random.uniform(k2, (out1, 1), jnp.float32, -s1, s1),
        fc_w2=jax.random.uniform(k3, (1, out1), jnp.float32, -s2, s2),
        fc_b2=jax.random.uniform(k4, (1, 1), jnp.float32, -s2, s2),
    )
    config = dict(sample_count=sample_count, kernel_size=kernel_size,
                  hidden_features=hidden_features, freq_lpad=lpad)
    return params, config


# ---------------------------------------------------------------------------
if __name__ == "__main__":
    sample_count = 128
    kernel_size = 3
    audio_channels = 2
    hidden_features = 16
    positional_features = 4
    num_hidden_layers = 2
    batch = 2

    key = jax.random.PRNGKey(0)
    key, kx = jax.random.split(key)
    x = jax.random.normal(kx, (batch, audio_channels, sample_count), jnp.float32)

    params, config = init_params(key, sample_count, kernel_size, audio_channels,
                                 hidden_features, positional_features,
                                 num_hidden_layers)

    fwd = jax.jit(functools.partial(discriminate_audio, config=config))
    out = jax.block_until_ready(fwd(params, x))
    assert out.shape == (batch, 1), out.shape
    assert bool(jnp.all(jnp.isfinite(out)))
    print("KERNEL_OK")
</pallas_src>

<mosaic_0001>
module attributes {stable_mosaic.version = 11 : i64} {
  func.func @_disc_kernel(%arg0: memref<32x256xf32, #tpu.memory_space<vmem>>, %arg1: memref<3x3x32x32xf32, #tpu.memory_space<vmem>>, %arg2: memref<3x32x256xf32, #tpu.memory_space<vmem>>, %arg3: memref<3x32x1xf32, #tpu.memory_space<vmem>>, %arg4: memref<3x32x1xf32, #tpu.memory_space<vmem>>, %arg5: memref<16x256xf32, #tpu.memory_space<vmem>>, %arg6: memref<3x3x16x16xf32, #tpu.memory_space<vmem>>, %arg7: memref<3x16x1xf32, #tpu.memory_space<vmem>>, %arg8: memref<3x16x1xf32, #tpu.memory_space<vmem>>, %arg9: memref<3x16x1xf32, #tpu.memory_space<vmem>>, %arg10: memref<32x96xf32, #tpu.memory_space<vmem>>, %arg11: memref<32x1xf32, #tpu.memory_space<vmem>>, %arg12: memref<1x32xf32, #tpu.memory_space<vmem>>, %arg13: memref<1x1xf32, #tpu.memory_space<vmem>>, %arg14: memref<1x2xf32, #tpu.memory_space<vmem>>) attributes {dimension_semantics = [], scalar_prefetch = 0 : i64, scratch_operands = 0 : i64, tpu.core_type = #tpu.core_type<tc>} {
    %0 = tpu.iota {dimensions = array<i32: 1>} : vector<1x256xi32>
    %c128_i32 = arith.constant 128 : i32
    %c0_i32 = arith.constant 0 : i32
    %1 = arith.cmpi eq, %c128_i32, %c0_i32 : i32
    %c1_i32 = arith.constant 1 : i32
    %2 = arith.select %1, %c1_i32, %c128_i32 : i32
    %3 = vector.broadcast %2 : i32 to vector<1x256xi32>
    %4 = arith.remsi %0, %3 : vector<1x256xi32>
    %c0_i32_0 = arith.constant 0 : i32
    %5 = vector.broadcast %c0_i32_0 : i32 to vector<1x256xi32>
    %6 = arith.cmpi ne, %4, %5 : vector<1x256xi32>
    %c0_i32_1 = arith.constant 0 : i32
    %7 = vector.broadcast %c0_i32_1 : i32 to vector<1x256xi32>
    %8 = arith.cmpi slt, %4, %7 : vector<1x256xi32>
    %c0_i32_2 = arith.constant 0 : i32
    %9 = arith.cmpi slt, %2, %c0_i32_2 : i32
    %10 = vector.broadcast %9 : i1 to vector<1x256xi1>
    %11 = vector.broadcast %10 : vector<1x256xi1> to vector<1x256xi1>
    %12 = arith.xori %8, %11 : vector<1x256xi1>
    %13 = arith.andi %12, %6 : vector<1x256xi1>
    %14 = vector.broadcast %2 : i32 to vector<1x256xi32>
    %15 = arith.addi %4, %14 : vector<1x256xi32>
    %16 = arith.select %13, %15, %4 : vector<1x256xi1>, vector<1x256xi32>
    %c65_i32 = arith.constant 65 : i32
    %17 = vector.broadcast %c65_i32 : i32 to vector<1x256xi32>
    %18 = arith.cmpi slt, %16, %17 : vector<1x256xi32>
    %c0 = arith.constant 0 : index
    %c0_3 = arith.constant 0 : index
    %19 = vector.load %arg0[%c0, %c0_3] : memref<32x256xf32, #tpu.memory_space<vmem>>, vector<32x256xf32>
    %c0_4 = arith.constant 0 : index
    %c0_5 = arith.constant 0 : index
    %c0_6 = arith.constant 0 : index
    %20 = vector.load %arg2[%c0_4, %c0_5, %c0_6] : memref<3x32x256xf32, #tpu.memory_space<vmem>>, vector<1x32x256xf32>
    %21 = vector.shape_cast %20 : vector<1x32x256xf32> to vector<32x256xf32>
    %c1_i32_7 = arith.constant 1 : i32
    %22 = tpu.dynamic_rotate %19 by %c1_i32_7 dim 1 : vector<32x256xf32>, i32 -> vector<32x256xf32>
    %c129_i32 = arith.constant 129 : i32
    %23 = tpu.dynamic_rotate %19 by %c129_i32 dim 1 : vector<32x256xf32>, i32 -> vector<32x256xf32>
    %c1_i32_8 = arith.constant 1 : i32
    %24 = vector.broadcast %c1_i32_8 : i32 to vector<1x256xi32>
    %25 = arith.cmpi slt, %16, %24 : vector<1x256xi32>
    %26 = vector.shape_cast %25 : vector<1x256xi1> to vector<1x256xi1>
    %27 = vector.broadcast %26 : vector<1x256xi1> to vector<32x256xi1>
    %28 = arith.select %27, %23, %22 : vector<32x256xi1>, vector<32x256xf32>
    %c0_9 = arith.constant 0 : index
    %c0_10 = arith.constant 0 : index
    %c0_11 = arith.constant 0 : index
    %c0_12 = arith.constant 0 : index
    %29 = vector.load %arg1[%c0_9, %c0_10, %c0_11, %c0_12] : memref<3x3x32x32xf32, #tpu.memory_space<vmem>>, vector<1x1x32x32xf32>
    %30 = vector.shape_cast %29 : vector<1x1x32x32xf32> to vector<32x32xf32>
    %cst = arith.constant dense<0.000000e+00> : vector<32x256xf32>
    %31 = tpu.matmul %30, %28, %cst {dimension_numbers = #tpu.dot_dimension_numbers<[1], [0], [0], [1], [0, 0, 1, 1], [], []>} : vector<32x32xf32>, vector<32x256xf32>, vector<32x256xf32> -> vector<32x256xf32>
    %32 = arith.addf %21, %31 : vector<32x256xf32>
    %c0_13 = arith.constant 0 : index
    %c1 = arith.constant 1 : index
    %c0_14 = arith.constant 0 : index
    %c0_15 = arith.constant 0 : index
    %33 = vector.load %arg1[%c0_13, %c1, %c0_14, %c0_15] : memref<3x3x32x32xf32, #tpu.memory_space<vmem>>, vector<1x1x32x32xf32>
    %34 = vector.shape_cast %33 : vector<1x1x32x32xf32> to vector<32x32xf32>
    %cst_16 = arith.constant dense<0.000000e+00> : vector<32x256xf32>
    %35 = tpu.matmul %34, %19, %cst_16 {dimension_numbers = #tpu.dot_dimension_numbers<[1], [0], [0], [1], [0, 0, 1, 1], [], []>} : vector<32x32xf32>, vector<32x256xf32>, vector<32x256xf32> -> vector<32x256xf32>
    %36 = arith.addf %32, %35 : vector<32x256xf32>
    %c255_i32 = arith.constant 255 : i32
    %37 = tpu.dynamic_rotate %19 by %c255_i32 dim 1 : vector<32x256xf32>, i32 -> vector<32x256xf32>
    %c127_i32 = arith.constant 127 : i32
    %38 = tpu.dynamic_rotate %19 by %c127_i32 dim 1 : vector<32x256xf32>, i32 -> vector<32x256xf32>
    %c127_i32_17 = arith.constant 127 : i32
    %39 = vector.broadcast %c127_i32_17 : i32 to vector<1x256xi32>
    %40 = arith.cmpi sge, %16, %39 : vector<1x256xi32>
    %41 = vector.shape_cast %40 : vector<1x256xi1> to vector<1x256xi1>
    %42 = vector.broadcast %41 : vector<1x256xi1> to vector<32x256xi1>
    %43 = arith.select %42, %38, %37 : vector<32x256xi1>, vector<32x256xf32>
    %c0_18 = arith.constant 0 : index
    %c2 = arith.constant 2 : index
    %c0_19 = arith.constant 0 : index
    %c0_20 = arith.constant 0 : index
    %44 = vector.load %arg1[%c0_18, %c2, %c0_19, %c0_20] : memref<3x3x32x32xf32, #tpu.memory_space<vmem>>, vector<1x1x32x32xf32>
    %45 = vector.shape_cast %44 : vector<1x1x32x32xf32> to vector<32x32xf32>
    %cst_21 = arith.constant dense<0.000000e+00> : vector<32x256xf32>
    %46 = tpu.matmul %45, %43, %cst_21 {dimension_numbers = #tpu.dot_dimension_numbers<[1], [0], [0], [1], [0, 0, 1, 1], [], []>} : vector<32x32xf32>, vector<32x256xf32>, vector<32x256xf32> -> vector<32x256xf32>
    %47 = arith.addf %36, %46 : vector<32x256xf32>
    %c0_22 = arith.constant 0 : index
    %c0_23 = arith.constant 0 : index
    %c0_24 = arith.constant 0 : index
    %48 = vector.load %arg3[%c0_22, %c0_23, %c0_24] : memref<3x32x1xf32, #tpu.memory_space<vmem>>, vector<1x32x1xf32>
    %49 = vector.shape_cast %48 : vector<1x32x1xf32> to vector<32x1xf32>
    %c0_25 = arith.constant 0 : index
    %c0_26 = arith.constant 0 : index
    %c0_27 = arith.constant 0 : index
    %50 = vector.load %arg4[%c0_25, %c0_26, %c0_27] : memref<3x32x1xf32, #tpu.memory_space<vmem>>, vector<1x32x1xf32>
    %51 = vector.shape_cast %50 : vector<1x32x1xf32> to vector<32x1xf32>
    %cst_28 = arith.constant 0.000000e+00 : f32
    %52 = vector.shape_cast %18 : vector<1x256xi1> to vector<1x256xi1>
    %53 = vector.broadcast %52 : vector<1x256xi1> to vector<32x256xi1>
    %54 = vector.broadcast %cst_28 : f32 to vector<32x256xf32>
    %55 = arith.select %53, %47, %54 : vector<32x256xi1>, vector<32x256xf32>
    %cst_29 = arith.constant dense<0.000000e+00> : vector<32xf32>
    %56 = vector.multi_reduction <add>, %55, %cst_29 [1] : vector<32x256xf32> to vector<32xf32>
    %57 = vector.shape_cast %56 : vector<32xf32> to vector<32x1xf32>
    %cst_30 = arith.constant 1.300000e+02 : f32
    %58 = vector.broadcast %cst_30 : f32 to vector<32x1xf32>
    %59 = arith.divf %57, %58 : vector<32x1xf32>
    %60 = vector.broadcast %59 : vector<32x1xf32> to vector<32x256xf32>
    %61 = arith.subf %47, %60 : vector<32x256xf32>
    %cst_31 = arith.constant 0.000000e+00 : f32
    %62 = vector.shape_cast %18 : vector<1x256xi1> to vector<1x256xi1>
    %63 = vector.broadcast %62 : vector<1x256xi1> to vector<32x256xi1>
    %64 = vector.broadcast %cst_31 : f32 to vector<32x256xf32>
    %65 = arith.select %63, %61, %64 : vector<32x256xi1>, vector<32x256xf32>
    %66 = arith.mulf %65, %65 : vector<32x256xf32>
    %cst_32 = arith.constant dense<0.000000e+00> : vector<32xf32>
    %67 = vector.multi_reduction <add>, %66, %cst_32 [1] : vector<32x256xf32> to vector<32xf32>
    %68 = vector.shape_cast %67 : vector<32xf32> to vector<32x1xf32>
    %cst_33 = arith.constant 1.300000e+02 : f32
    %69 = vector.broadcast %cst_33 : f32 to vector<32x1xf32>
    %70 = arith.divf %68, %69 : vector<32x1xf32>
    %cst_34 = arith.constant 9.99999974E-6 : f32
    %71 = vector.broadcast %cst_34 : f32 to vector<32x1xf32>
    %72 = arith.addf %70, %71 : vector<32x1xf32>
    %73 = math.rsqrt %72 : vector<32x1xf32>
    %74 = vector.broadcast %73 : vector<32x1xf32> to vector<32x256xf32>
    %75 = arith.mulf %61, %74 : vector<32x256xf32>
    %76 = vector.broadcast %49 : vector<32x1xf32> to vector<32x256xf32>
    %77 = arith.mulf %75, %76 : vector<32x256xf32>
    %78 = vector.broadcast %51 : vector<32x1xf32> to vector<32x256xf32>
    %79 = arith.addf %77, %78 : vector<32x256xf32>
    %cst_35 = arith.constant 0.000000e+00 : f32
    %80 = vector.broadcast %cst_35 : f32 to vector<32x256xf32>
    %81 = arith.cmpf oge, %79, %80 : vector<32x256xf32>
    %cst_36 = arith.constant 0.00999999977 : f32
    %82 = vector.broadcast %cst_36 : f32 to vector<32x256xf32>
    %83 = arith.mulf %82, %79 : vector<32x256xf32>
    %84 = arith.select %81, %79, %83 : vector<32x256xi1>, vector<32x256xf32>
    %cst_37 = arith.constant 0.000000e+00 : f32
    %85 = vector.shape_cast %18 : vector<1x256xi1> to vector<1x256xi1>
    %86 = vector.broadcast %85 : vector<1x256xi1> to vector<32x256xi1>
    %87 = vector.broadcast %cst_37 : f32 to vector<32x256xf32>
    %88 = arith.select %86, %84, %87 : vector<32x256xi1>, vector<32x256xf32>
    %c1_38 = arith.constant 1 : index
    %c0_39 = arith.constant 0 : index
    %c0_40 = arith.constant 0 : index
    %89 = vector.load %arg2[%c1_38, %c0_39, %c0_40] : memref<3x32x256xf32, #tpu.memory_space<vmem>>, vector<1x32x256xf32>
    %90 = vector.shape_cast %89 : vector<1x32x256xf32> to vector<32x256xf32>
    %c1_i32_41 = arith.constant 1 : i32
    %91 = tpu.dynamic_rotate %88 by %c1_i32_41 dim 1 : vector<32x256xf32>, i32 -> vector<32x256xf32>
    %c129_i32_42 = arith.constant 129 : i32
    %92 = tpu.dynamic_rotate %88 by %c129_i32_42 dim 1 : vector<32x256xf32>, i32 -> vector<32x256xf32>
    %c1_i32_43 = arith.constant 1 : i32
    %93 = vector.broadcast %c1_i32_43 : i32 to vector<1x256xi32>
    %94 = arith.cmpi slt, %16, %93 : vector<1x256xi32>
    %95 = vector.shape_cast %94 : vector<1x256xi1> to vector<1x256xi1>
    %96 = vector.broadcast %95 : vector<1x256xi1> to vector<32x256xi1>
    %97 = arith.select %96, %92, %91 : vector<32x256xi1>, vector<32x256xf32>
    %c1_44 = arith.constant 1 : index
    %c0_45 = arith.constant 0 : index
    %c0_46 = arith.constant 0 : index
    %c0_47 = arith.constant 0 : index
    %98 = vector.load %arg1[%c1_44, %c0_45, %c0_46, %c0_47] : memref<3x3x32x32xf32, #tpu.memory_space<vmem>>, vector<1x1x32x32xf32>
    %99 = vector.shape_cast %98 : vector<1x1x32x32xf32> to vector<32x32xf32>
    %cst_48 = arith.constant dense<0.000000e+00> : vector<32x256xf32>
    %100 = tpu.matmul %99, %97, %cst_48 {dimension_numbers = #tpu.dot_dimension_numbers<[1], [0], [0], [1], [0, 0, 1, 1], [], []>} : vector<32x32xf32>, vector<32x256xf32>, vector<32x256xf32> -> vector<32x256xf32>
    %101 = arith.addf %90, %100 : vector<32x256xf32>
    %c1_49 = arith.constant 1 : index
    %c1_50 = arith.constant 1 : index
    %c0_51 = arith.constant 0 : index
    %c0_52 = arith.constant 0 : index
    %102 = vector.load %arg1[%c1_49, %c1_50, %c0_51, %c0_52] : memref<3x3x32x32xf32, #tpu.memory_space<vmem>>, vector<1x1x32x32xf32>
    %103 = vector.shape_cast %102 : vector<1x1x32x32xf32> to vector<32x32xf32>
    %cst_53 = arith.constant dense<0.000000e+00> : vector<32x256xf32>
    %104 = tpu.matmul %103, %88, %cst_53 {dimension_numbers = #tpu.dot_dimension_numbers<[1], [0], [0], [1], [0, 0, 1, 1], [], []>} : vector<32x32xf32>, vector<32x256xf32>, vector<32x256xf32> -> vector<32x256xf32>
    %105 = arith.addf %101, %104 : vector<32x256xf32>
    %c255_i32_54 = arith.constant 255 : i32
    %106 = tpu.dynamic_rotate %88 by %c255_i32_54 dim 1 : vector<32x256xf32>, i32 -> vector<32x256xf32>
    %c127_i32_55 = arith.constant 127 : i32
    %107 = tpu.dynamic_rotate %88 by %c127_i32_55 dim 1 : vector<32x256xf32>, i32 -> vector<32x256xf32>
    %c127_i32_56 = arith.constant 127 : i32
    %108 = vector.broadcast %c127_i32_56 : i32 to vector<1x256xi32>
    %109 = arith.cmpi sge, %16, %108 : vector<1x256xi32>
    %110 = vector.shape_cast %109 : vector<1x256xi1> to vector<1x256xi1>
    %111 = vector.broadcast %110 : vector<1x256xi1> to vector<32x256xi1>
    %112 = arith.select %111, %107, %106 : vector<32x256xi1>, vector<32x256xf32>
    %c1_57 = arith.constant 1 : index
    %c2_58 = arith.constant 2 : index
    %c0_59 = arith.constant 0 : index
    %c0_60 = arith.constant 0 : index
    %113 = vector.load %arg1[%c1_57, %c2_58, %c0_59, %c0_60] : memref<3x3x32x32xf32, #tpu.memory_space<vmem>>, vector<1x1x32x32xf32>
    %114 = vector.shape_cast %113 : vector<1x1x32x32xf32> to vector<32x32xf32>
    %cst_61 = arith.constant dense<0.000000e+00> : vector<32x256xf32>
    %115 = tpu.matmul %114, %112, %cst_61 {dimension_numbers = #tpu.dot_dimension_numbers<[1], [0], [0], [1], [0, 0, 1, 1], [], []>} : vector<32x32xf32>, vector<32x256xf32>, vector<32x256xf32> -> vector<32x256xf32>
    %116 = arith.addf %105, %115 : vector<32x256xf32>
    %c1_62 = arith.constant 1 : index
    %c0_63 = arith.constant 0 : index
    %c0_64 = arith.constant 0 : index
    %117 = vector.load %arg3[%c1_62, %c0_63, %c0_64] : memref<3x32x1xf32, #tpu.memory_space<vmem>>, vector<1x32x1xf32>
    %118 = vector.shape_cast %117 : vector<1x32x1xf32> to vector<32x1xf32>
    %c1_65 = arith.constant 1 : index
    %c0_66 = arith.constant 0 : index
    %c0_67 = arith.constant 0 : index
    %119 = vector.load %arg4[%c1_65, %c0_66, %c0_67] : memref<3x32x1xf32, #tpu.memory_space<vmem>>, vector<1x32x1xf32>
    %120 = vector.shape_cast %119 : vector<1x32x1xf32> to vector<32x1xf32>
    %cst_68 = arith.constant 0.000000e+00 : f32
    %121 = vector.shape_cast %18 : vector<1x256xi1> to vector<1x256xi1>
    %122 = vector.broadcast %121 : vector<1x256xi1> to vector<32x256xi1>
    %123 = vector.broadcast %cst_68 : f32 to vector<32x256xf32>
    %124 = arith.select %122, %116, %123 : vector<32x256xi1>, vector<32x256xf32>
    %cst_69 = arith.constant dense<0.000000e+00> : vector<32xf32>
    %125 = vector.multi_reduction <add>, %124, %cst_69 [1] : vector<32x256xf32> to vector<32xf32>
    %126 = vector.shape_cast %125 : vector<32xf32> to vector<32x1xf32>
    %cst_70 = arith.constant 1.300000e+02 : f32
    %127 = vector.broadcast %cst_70 : f32 to vector<32x1xf32>
    %128 = arith.divf %126, %127 : vector<32x1xf32>
    %129 = vector.broadcast %128 : vector<32x1xf32> to vector<32x256xf32>
    %130 = arith.subf %116, %129 : vector<32x256xf32>
    %cst_71 = arith.constant 0.000000e+00 : f32
    %131 = vector.shape_cast %18 : vector<1x256xi1> to vector<1x256xi1>
    %132 = vector.broadcast %131 : vector<1x256xi1> to vector<32x256xi1>
    %133 = vector.broadcast %cst_71 : f32 to vector<32x256xf32>
    %134 = arith.select %132, %130, %133 : vector<32x256xi1>, vector<32x256xf32>
    %135 = arith.mulf %134, %134 : vector<32x256xf32>
    %cst_72 = arith.constant dense<0.000000e+00> : vector<32xf32>
    %136 = vector.multi_reduction <add>, %135, %cst_72 [1] : vector<32x256xf32> to vector<32xf32>
    %137 = vector.shape_cast %136 : vector<32xf32> to vector<32x1xf32>
    %cst_73 = arith.constant 1.300000e+02 : f32
    %138 = vector.broadcast %cst_73 : f32 to vector<32x1xf32>
    %139 = arith.divf %137, %138 : vector<32x1xf32>
    %cst_74 = arith.constant 9.99999974E-6 : f32
    %140 = vector.broadcast %cst_74 : f32 to vector<32x1xf32>
    %141 = arith.addf %139, %140 : vector<32x1xf32>
    %142 = math.rsqrt %141 : vector<32x1xf32>
    %143 = vector.broadcast %142 : vector<32x1xf32> to vector<32x256xf32>
    %144 = arith.mulf %130, %143 : vector<32x256xf32>
    %145 = vector.broadcast %118 : vector<32x1xf32> to vector<32x256xf32>
    %146 = arith.mulf %144, %145 : vector<32x256xf32>
    %147 = vector.broadcast %120 : vector<32x1xf32> to vector<32x256xf32>
    %148 = arith.addf %146, %147 : vector<32x256xf32>
    %cst_75 = arith.constant 0.000000e+00 : f32
    %149 = vector.broadcast %cst_75 : f32 to vector<32x256xf32>
    %150 = arith.cmpf oge, %148, %149 : vector<32x256xf32>
    %cst_76 = arith.constant 0.00999999977 : f32
    %151 = vector.broadcast %cst_76 : f32 to vector<32x256xf32>
    %152 = arith.mulf %151, %148 : vector<32x256xf32>
    %153 = arith.select %150, %148, %152 : vector<32x256xi1>, vector<32x256xf32>
    %cst_77 = arith.constant 0.000000e+00 : f32
    %154 = vector.shape_cast %18 : vector<1x256xi1> to vector<1x256xi1>
    %155 = vector.broadcast %154 : vector<1x256xi1> to vector<32x256xi1>
    %156 = vector.broadcast %cst_77 : f32 to vector<32x256xf32>
    %157 = arith.select %155, %153, %156 : vector<32x256xi1>, vector<32x256xf32>
    %c2_78 = arith.constant 2 : index
    %c0_79 = arith.constant 0 : index
    %c0_80 = arith.constant 0 : index
    %158 = vector.load %arg2[%c2_78, %c0_79, %c0_80] : memref<3x32x256xf32, #tpu.memory_space<vmem>>, vector<1x32x256xf32>
    %159 = vector.shape_cast %158 : vector<1x32x256xf32> to vector<32x256xf32>
    %c1_i32_81 = arith.constant 1 : i32
    %160 = tpu.dynamic_rotate %157 by %c1_i32_81 dim 1 : vector<32x256xf32>, i32 -> vector<32x256xf32>
    %c129_i32_82 = arith.constant 129 : i32
    %161 = tpu.dynamic_rotate %157 by %c129_i32_82 dim 1 : vector<32x256xf32>, i32 -> vector<32x256xf32>
    %c1_i32_83 = arith.constant 1 : i32
    %162 = vector.broadcast %c1_i32_83 : i32 to vector<1x256xi32>
    %163 = arith.cmpi slt, %16, %162 : vector<1x256xi32>
    %164 = vector.shape_cast %163 : vector<1x256xi1> to vector<1x256xi1>
    %165 = vector.broadcast %164 : vector<1x256xi1> to vector<32x256xi1>
    %166 = arith.select %165, %161, %160 : vector<32x256xi1>, vector<32x256xf32>
    %c2_84 = arith.constant 2 : index
    %c0_85 = arith.constant 0 : index
    %c0_86 = arith.constant 0 : index
    %c0_87 = arith.constant 0 : index
    %167 = vector.load %arg1[%c2_84, %c0_85, %c0_86, %c0_87] : memref<3x3x32x32xf32, #tpu.memory_space<vmem>>, vector<1x1x32x32xf32>
    %168 = vector.shape_cast %167 : vector<1x1x32x32xf32> to vector<32x32xf32>
    %cst_88 = arith.constant dense<0.000000e+00> : vector<32x256xf32>
    %169 = tpu.matmul %168, %166, %cst_88 {dimension_numbers = #tpu.dot_dimension_numbers<[1], [0], [0], [1], [0, 0, 1, 1], [], []>} : vector<32x32xf32>, vector<32x256xf32>, vector<32x256xf32> -> vector<32x256xf32>
    %170 = arith.addf %159, %169 : vector<32x256xf32>
    %c2_89 = arith.constant 2 : index
    %c1_90 = arith.constant 1 : index
    %c0_91 = arith.constant 0 : index
    %c0_92 = arith.constant 0 : index
    %171 = vector.load %arg1[%c2_89, %c1_90, %c0_91, %c0_92] : memref<3x3x32x32xf32, #tpu.memory_space<vmem>>, vector<1x1x32x32xf32>
    %172 = vector.shape_cast %171 : vector<1x1x32x32xf32> to vector<32x32xf32>
    %cst_93 = arith.constant dense<0.000000e+00> : vector<32x256xf32>
    %173 = tpu.matmul %172, %157, %cst_93 {dimension_numbers = #tpu.dot_dimension_numbers<[1], [0], [0], [1], [0, 0, 1, 1], [], []>} : vector<32x32xf32>, vector<32x256xf32>, vector<32x256xf32> -> vector<32x256xf32>
    %174 = arith.addf %170, %173 : vector<32x256xf32>
    %c255_i32_94 = arith.constant 255 : i32
    %175 = tpu.dynamic_rotate %157 by %c255_i32_94 dim 1 : vector<32x256xf32>, i32 -> vector<32x256xf32>
    %c127_i32_95 = arith.constant 127 : i32
    %176 = tpu.dynamic_rotate %157 by %c127_i32_95 dim 1 : vector<32x256xf32>, i32 -> vector<32x256xf32>
    %c127_i32_96 = arith.constant 127 : i32
    %177 = vector.broadcast %c127_i32_96 : i32 to vector<1x256xi32>
    %178 = arith.cmpi sge, %16, %177 : vector<1x256xi32>
    %179 = vector.shape_cast %178 : vector<1x256xi1> to vector<1x256xi1>
    %180 = vector.broadcast %179 : vector<1x256xi1> to vector<32x256xi1>
    %181 = arith.select %180, %176, %175 : vector<32x256xi1>, vector<32x256xf32>
    %c2_97 = arith.constant 2 : index
    %c2_98 = arith.constant 2 : index
    %c0_99 = arith.constant 0 : index
    %c0_100 = arith.constant 0 : index
    %182 = vector.load %arg1[%c2_97, %c2_98, %c0_99, %c0_100] : memref<3x3x32x32xf32, #tpu.memory_space<vmem>>, vector<1x1x32x32xf32>
    %183 = vector.shape_cast %182 : vector<1x1x32x32xf32> to vector<32x32xf32>
    %cst_101 = arith.constant dense<0.000000e+00> : vector<32x256xf32>
    %184 = tpu.matmul %183, %181, %cst_101 {dimension_numbers = #tpu.dot_dimension_numbers<[1], [0], [0], [1], [0, 0, 1, 1], [], []>} : vector<32x32xf32>, vector<32x256xf32>, vector<32x256xf32> -> vector<32x256xf32>
    %185 = arith.addf %174, %184 : vector<32x256xf32>
    %cst_102 = arith.constant 0.000000e+00 : f32
    %186 = vector.shape_cast %18 : vector<1x256xi1> to vector<1x256xi1>
    %187 = vector.broadcast %186 : vector<1x256xi1> to vector<32x256xi1>
    %188 = vector.broadcast %cst_102 : f32 to vector<32x256xf32>
    %189 = arith.select %187, %185, %188 : vector<32x256xi1>, vector<32x256xf32>
    %cst_103 = arith.constant -1.000000e+30 : f32
    %190 = vector.shape_cast %18 : vector<1x256xi1> to vector<1x256xi1>
    %191 = vector.broadcast %190 : vector<1x256xi1> to vector<32x256xi1>
    %192 = vector.broadcast %cst_103 : f32 to vector<32x256xf32>
    %193 = arith.select %191, %185, %192 : vector<32x256xi1>, vector<32x256xf32>
    %194 = vector.extract_strided_slice %189 {offsets = [0, 0], sizes = [32, 128], strides = [1, 1]} : vector<32x256xf32> to vector<32x128xf32>
    %195 = vector.extract_strided_slice %193 {offsets = [0, 0], sizes = [32, 128], strides = [1, 1]} : vector<32x256xf32> to vector<32x128xf32>
    %cst_104 = arith.constant dense<0.000000e+00> : vector<32xf32>
    %196 = vector.multi_reduction <add>, %194, %cst_104 [1] : vector<32x128xf32> to vector<32xf32>
    %197 = vector.shape_cast %196 : vector<32xf32> to vector<32x1xf32>
    %cst_105 = arith.constant 6.500000e+01 : f32
    %198 = vector.broadcast %cst_105 : f32 to vector<32x1xf32>
    %199 = arith.divf %197, %198 : vector<32x1xf32>
    %cst_106 = arith.constant dense<0xFF800000> : vector<32xf32>
    %200 = vector.multi_reduction <maximumf>, %195, %cst_106 [1] : vector<32x128xf32> to vector<32xf32>
    %201 = vector.shape_cast %200 : vector<32xf32> to vector<32x1xf32>
    %202 = vector.broadcast %201 : vector<32x1xf32> to vector<32x128xf32>
    %203 = arith.subf %195, %202 : vector<32x128xf32>
    %204 = math.exp %203 : vector<32x128xf32>
    %cst_107 = arith.constant dense<0.000000e+00> : vector<32xf32>
    %205 = vector.multi_reduction <add>, %204, %cst_107 [1] : vector<32x128xf32> to vector<32xf32>
    %206 = vector.shape_cast %205 : vector<32xf32> to vector<32x1xf32>
    %207 = math.log %206 : vector<32x1xf32>
    %208 = arith.addf %207, %201 : vector<32x1xf32>
    %209 = vector.extract_strided_slice %189 {offsets = [0, 128], sizes = [32, 128], strides = [1, 1]} : vector<32x256xf32> to vector<32x128xf32>
    %210 = vector.extract_strided_slice %193 {offsets = [0, 128], sizes = [32, 128], strides = [1, 1]} : vector<32x256xf32> to vector<32x128xf32>
    %cst_108 = arith.constant dense<0.000000e+00> : vector<32xf32>
    %211 = vector.multi_reduction <add>, %209, %cst_108 [1] : vector<32x128xf32> to vector<32xf32>
    %212 = vector.shape_cast %211 : vector<32xf32> to vector<32x1xf32>
    %cst_109 = arith.constant 6.500000e+01 : f32
    %213 = vector.broadcast %cst_109 : f32 to vector<32x1xf32>
    %214 = arith.divf %212, %213 : vector<32x1xf32>
    %cst_110 = arith.constant dense<0xFF800000> : vector<32xf32>
    %215 = vector.multi_reduction <maximumf>, %210, %cst_110 [1] : vector<32x128xf32> to vector<32xf32>
    %216 = vector.shape_cast %215 : vector<32xf32> to vector<32x1xf32>
    %217 = vector.broadcast %216 : vector<32x1xf32> to vector<32x128xf32>
    %218 = arith.subf %210, %217 : vector<32x128xf32>
    %219 = math.exp %218 : vector<32x128xf32>
    %cst_111 = arith.constant dense<0.000000e+00> : vector<32xf32>
    %220 = vector.multi_reduction <add>, %219, %cst_111 [1] : vector<32x128xf32> to vector<32xf32>
    %221 = vector.shape_cast %220 : vector<32xf32> to vector<32x1xf32>
    %222 = math.log %221 : vector<32x1xf32>
    %223 = arith.addf %222, %216 : vector<32x1xf32>
    %224 = tpu.concatenate %199, %214 in 1 : vector<32x1xf32>, vector<32x1xf32> -> vector<32x2xf32>
    %225 = tpu.concatenate %208, %223 in 1 : vector<32x1xf32>, vector<32x1xf32> -> vector<32x2xf32>
    %226 = tpu.iota {dimensions = array<i32: 1>} : vector<1x256xi32>
    %c128_i32_112 = arith.constant 128 : i32
    %c0_i32_113 = arith.constant 0 : i32
    %227 = arith.cmpi eq, %c128_i32_112, %c0_i32_113 : i32
    %c1_i32_114 = arith.constant 1 : i32
    %228 = arith.select %227, %c1_i32_114, %c128_i32_112 : i32
    %229 = vector.broadcast %228 : i32 to vector<1x256xi32>
    %230 = arith.remsi %226, %229 : vector<1x256xi32>
    %c0_i32_115 = arith.constant 0 : i32
    %231 = vector.broadcast %c0_i32_115 : i32 to vector<1x256xi32>
    %232 = arith.cmpi ne, %230, %231 : vector<1x256xi32>
    %c0_i32_116 = arith.constant 0 : i32
    %233 = vector.broadcast %c0_i32_116 : i32 to vector<1x256xi32>
    %234 = arith.cmpi slt, %230, %233 : vector<1x256xi32>
    %c0_i32_117 = arith.constant 0 : i32
    %235 = arith.cmpi slt, %228, %c0_i32_117 : i32
    %236 = vector.broadcast %235 : i1 to vector<1x256xi1>
    %237 = vector.broadcast %236 : vector<1x256xi1> to vector<1x256xi1>
    %238 = arith.xori %234, %237 : vector<1x256xi1>
    %239 = arith.andi %238, %232 : vector<1x256xi1>
    %240 = vector.broadcast %228 : i32 to vector<1x256xi32>
    %241 = arith.addi %230, %240 : vector<1x256xi32>
    %242 = arith.select %239, %241, %230 : vector<1x256xi1>, vector<1x256xi32>
    %c0_118 = arith.constant 0 : index
    %c0_119 = arith.constant 0 : index
    %243 = vector.load %arg5[%c0_118, %c0_119] : memref<16x256xf32, #tpu.memory_space<vmem>>, vector<16x256xf32>
    %c0_120 = arith.constant 0 : index
    %c0_121 = arith.constant 0 : index
    %c0_122 = arith.constant 0 : index
    %244 = vector.load %arg7[%c0_120, %c0_121, %c0_122] : memref<3x16x1xf32, #tpu.memory_space<vmem>>, vector<1x16x1xf32>
    %245 = vector.shape_cast %244 : vector<1x16x1xf32> to vector<16x1xf32>
    %c1_i32_123 = arith.constant 1 : i32
    %246 = tpu.dynamic_rotate %243 by %c1_i32_123 dim 1 : vector<16x256xf32>, i32 -> vector<16x256xf32>
    %c129_i32_124 = arith.constant 129 : i32
    %247 = tpu.dynamic_rotate %243 by %c129_i32_124 dim 1 : vector<16x256xf32>, i32 -> vector<16x256xf32>
    %c1_i32_125 = arith.constant 1 : i32
    %248 = vector.broadcast %c1_i32_125 : i32 to vector<1x256xi32>
    %249 = arith.cmpi slt, %242, %248 : vector<1x256xi32>
    %250 = vector.shape_cast %249 : vector<1x256xi1> to vector<1x256xi1>
    %251 = vector.broadcast %250 : vector<1x256xi1> to vector<16x256xi1>
    %252 = arith.select %251, %247, %246 : vector<16x256xi1>, vector<16x256xf32>
    %c0_126 = arith.constant 0 : index
    %c0_127 = arith.constant 0 : index
    %c0_128 = arith.constant 0 : index
    %c0_129 = arith.constant 0 : index
    %253 = vector.load %arg6[%c0_126, %c0_127, %c0_128, %c0_129] : memref<3x3x16x16xf32, #tpu.memory_space<vmem>>, vector<1x1x16x16xf32>
    %254 = vector.shape_cast %253 : vector<1x1x16x16xf32> to vector<16x16xf32>
    %cst_130 = arith.constant dense<0.000000e+00> : vector<16x256xf32>
    %255 = tpu.matmul %254, %252, %cst_130 {dimension_numbers = #tpu.dot_dimension_numbers<[1], [0], [0], [1], [0, 0, 1, 1], [], []>} : vector<16x16xf32>, vector<16x256xf32>, vector<16x256xf32> -> vector<16x256xf32>
    %256 = vector.broadcast %245 : vector<16x1xf32> to vector<16x256xf32>
    %257 = arith.addf %256, %255 : vector<16x256xf32>
    %c0_131 = arith.constant 0 : index
    %c1_132 = arith.constant 1 : index
    %c0_133 = arith.constant 0 : index
    %c0_134 = arith.constant 0 : index
    %258 = vector.load %arg6[%c0_131, %c1_132, %c0_133, %c0_134] : memref<3x3x16x16xf32, #tpu.memory_space<vmem>>, vector<1x1x16x16xf32>
    %259 = vector.shape_cast %258 : vector<1x1x16x16xf32> to vector<16x16xf32>
    %cst_135 = arith.constant dense<0.000000e+00> : vector<16x256xf32>
    %260 = tpu.matmul %259, %243, %cst_135 {dimension_numbers = #tpu.dot_dimension_numbers<[1], [0], [0], [1], [0, 0, 1, 1], [], []>} : vector<16x16xf32>, vector<16x256xf32>, vector<16x256xf32> -> vector<16x256xf32>
    %261 = arith.addf %257, %260 : vector<16x256xf32>
    %c255_i32_136 = arith.constant 255 : i32
    %262 = tpu.dynamic_rotate %243 by %c255_i32_136 dim 1 : vector<16x256xf32>, i32 -> vector<16x256xf32>
    %c127_i32_137 = arith.constant 127 : i32
    %263 = tpu.dynamic_rotate %243 by %c127_i32_137 dim 1 : vector<16x256xf32>, i32 -> vector<16x256xf32>
    %c127_i32_138 = arith.constant 127 : i32
    %264 = vector.broadcast %c127_i32_138 : i32 to vector<1x256xi32>
    %265 = arith.cmpi sge, %242, %264 : vector<1x256xi32>
    %266 = vector.shape_cast %265 : vector<1x256xi1> to vector<1x256xi1>
    %267 = vector.broadcast %266 : vector<1x256xi1> to vector<16x256xi1>
    %268 = arith.select %267, %263, %262 : vector<16x256xi1>, vector<16x256xf32>
    %c0_139 = arith.constant 0 : index
    %c2_140 = arith.constant 2 : index
    %c0_141 = arith.constant 0 : index
    %c0_142 = arith.constant 0 : index
    %269 = vector.load %arg6[%c0_139, %c2_140, %c0_141, %c0_142] : memref<3x3x16x16xf32, #tpu.memory_space<vmem>>, vector<1x1x16x16xf32>
    %270 = vector.shape_cast %269 : vector<1x1x16x16xf32> to vector<16x16xf32>
    %cst_143 = arith.constant dense<0.000000e+00> : vector<16x256xf32>
    %271 = tpu.matmul %270, %268, %cst_143 {dimension_numbers = #tpu.dot_dimension_numbers<[1], [0], [0], [1], [0, 0, 1, 1], [], []>} : vector<16x16xf32>, vector<16x256xf32>, vector<16x256xf32> -> vector<16x256xf32>
    %272 = arith.addf %261, %271 : vector<16x256xf32>
    %c0_144 = arith.constant 0 : index
    %c0_145 = arith.constant 0 : index
    %c0_146 = arith.constant 0 : index
    %273 = vector.load %arg8[%c0_144, %c0_145, %c0_146] : memref<3x16x1xf32, #tpu.memory_space<vmem>>, vector<1x16x1xf32>
    %274 = vector.shape_cast %273 : vector<1x16x1xf32> to vector<16x1xf32>
    %c0_147 = arith.constant 0 : index
    %c0_148 = arith.constant 0 : index
    %c0_149 = arith.constant 0 : index
    %275 = vector.load %arg9[%c0_147, %c0_148, %c0_149] : memref<3x16x1xf32, #tpu.memory_space<vmem>>, vector<1x16x1xf32>
    %276 = vector.shape_cast %275 : vector<1x16x1xf32> to vector<16x1xf32>
    %cst_150 = arith.constant dense<0.000000e+00> : vector<16xf32>
    %277 = vector.multi_reduction <add>, %272, %cst_150 [1] : vector<16x256xf32> to vector<16xf32>
    %278 = vector.shape_cast %277 : vector<16xf32> to vector<16x1xf32>
    %cst_151 = arith.constant 2.560000e+02 : f32
    %279 = vector.broadcast %cst_151 : f32 to vector<16x1xf32>
    %280 = arith.divf %278, %279 : vector<16x1xf32>
    %281 = vector.broadcast %280 : vector<16x1xf32> to vector<16x256xf32>
    %282 = arith.subf %272, %281 : vector<16x256xf32>
    %283 = arith.mulf %282, %282 : vector<16x256xf32>
    %cst_152 = arith.constant dense<0.000000e+00> : vector<16xf32>
    %284 = vector.multi_reduction <add>, %283, %cst_152 [1] : vector<16x256xf32> to vector<16xf32>
    %285 = vector.shape_cast %284 : vector<16xf32> to vector<16x1xf32>
    %cst_153 = arith.constant 2.560000e+02 : f32
    %286 = vector.broadcast %cst_153 : f32 to vector<16x1xf32>
    %287 = arith.divf %285, %286 : vector<16x1xf32>
    %cst_154 = arith.constant 9.99999974E-6 : f32
    %288 = vector.broadcast %cst_154 : f32 to vector<16x1xf32>
    %289 = arith.addf %287, %288 : vector<16x1xf32>
    %290 = math.rsqrt %289 : vector<16x1xf32>
    %291 = vector.broadcast %290 : vector<16x1xf32> to vector<16x256xf32>
    %292 = arith.mulf %282, %291 : vector<16x256xf32>
    %293 = vector.broadcast %274 : vector<16x1xf32> to vector<16x256xf32>
    %294 = arith.mulf %292, %293 : vector<16x256xf32>
    %295 = vector.broadcast %276 : vector<16x1xf32> to vector<16x256xf32>
    %296 = arith.addf %294, %295 : vector<16x256xf32>
    %cst_155 = arith.constant 0.000000e+00 : f32
    %297 = vector.broadcast %cst_155 : f32 to vector<16x256xf32>
    %298 = arith.cmpf oge, %296, %297 : vector<16x256xf32>
    %cst_156 = arith.constant 0.00999999977 : f32
    %299 = vector.broadcast %cst_156 : f32 to vector<16x256xf32>
    %300 = arith.mulf %299, %296 : vector<16x256xf32>
    %301 = arith.select %298, %296, %300 : vector<16x256xi1>, vector<16x256xf32>
    %c1_157 = arith.constant 1 : index
    %c0_158 = arith.constant 0 : index
    %c0_159 = arith.constant 0 : index
    %302 = vector.load %arg7[%c1_157, %c0_158, %c0_159] : memref<3x16x1xf32, #tpu.memory_space<vmem>>, vector<1x16x1xf32>
    %303 = vector.shape_cast %302 : vector<1x16x1xf32> to vector<16x1xf32>
    %c1_i32_160 = arith.constant 1 : i32
    %304 = tpu.dynamic_rotate %301 by %c1_i32_160 dim 1 : vector<16x256xf32>, i32 -> vector<16x256xf32>
    %c129_i32_161 = arith.constant 129 : i32
    %305 = tpu.dynamic_rotate %301 by %c129_i32_161 dim 1 : vector<16x256xf32>, i32 -> vector<16x256xf32>
    %c1_i32_162 = arith.constant 1 : i32
    %306 = vector.broadcast %c1_i32_162 : i32 to vector<1x256xi32>
    %307 = arith.cmpi slt, %242, %306 : vector<1x256xi32>
    %308 = vector.shape_cast %307 : vector<1x256xi1> to vector<1x256xi1>
    %309 = vector.broadcast %308 : vector<1x256xi1> to vector<16x256xi1>
    %310 = arith.select %309, %305, %304 : vector<16x256xi1>, vector<16x256xf32>
    %c1_163 = arith.constant 1 : index
    %c0_164 = arith.constant 0 : index
    %c0_165 = arith.constant 0 : index
    %c0_166 = arith.constant 0 : index
    %311 = vector.load %arg6[%c1_163, %c0_164, %c0_165, %c0_166] : memref<3x3x16x16xf32, #tpu.memory_space<vmem>>, vector<1x1x16x16xf32>
    %312 = vector.shape_cast %311 : vector<1x1x16x16xf32> to vector<16x16xf32>
    %cst_167 = arith.constant dense<0.000000e+00> : vector<16x256xf32>
    %313 = tpu.matmul %312, %310, %cst_167 {dimension_numbers = #tpu.dot_dimension_numbers<[1], [0], [0], [1], [0, 0, 1, 1], [], []>} : vector<16x16xf32>, vector<16x256xf32>, vector<16x256xf32> -> vector<16x256xf32>
    %314 = vector.broadcast %303 : vector<16x1xf32> to vector<16x256xf32>
    %315 = arith.addf %314, %313 : vector<16x256xf32>
    %c1_168 = arith.constant 1 : index
    %c1_169 = arith.constant 1 : index
    %c0_170 = arith.constant 0 : index
    %c0_171 = arith.constant 0 : index
    %316 = vector.load %arg6[%c1_168, %c1_169, %c0_170, %c0_171] : memref<3x3x16x16xf32, #tpu.memory_space<vmem>>, vector<1x1x16x16xf32>
    %317 = vector.shape_cast %316 : vector<1x1x16x16xf32> to vector<16x16xf32>
    %cst_172 = arith.constant dense<0.000000e+00> : vector<16x256xf32>
    %318 = tpu.matmul %317, %301, %cst_172 {dimension_numbers = #tpu.dot_dimension_numbers<[1], [0], [0], [1], [0, 0, 1, 1], [], []>} : vector<16x16xf32>, vector<16x256xf32>, vector<16x256xf32> -> vector<16x256xf32>
    %319 = arith.addf %315, %318 : vector<16x256xf32>
    %c255_i32_173 = arith.constant 255 : i32
    %320 = tpu.dynamic_rotate %301 by %c255_i32_173 dim 1 : vector<16x256xf32>, i32 -> vector<16x256xf32>
    %c127_i32_174 = arith.constant 127 : i32
    %321 = tpu.dynamic_rotate %301 by %c127_i32_174 dim 1 : vector<16x256xf32>, i32 -> vector<16x256xf32>
    %c127_i32_175 = arith.constant 127 : i32
    %322 = vector.broadcast %c127_i32_175 : i32 to vector<1x256xi32>
    %323 = arith.cmpi sge, %242, %322 : vector<1x256xi32>
    %324 = vector.shape_cast %323 : vector<1x256xi1> to vector<1x256xi1>
    %325 = vector.broadcast %324 : vector<1x256xi1> to vector<16x256xi1>
    %326 = arith.select %325, %321, %320 : vector<16x256xi1>, vector<16x256xf32>
    %c1_176 = arith.constant 1 : index
    %c2_177 = arith.constant 2 : index
    %c0_178 = arith.constant 0 : index
    %c0_179 = arith.constant 0 : index
    %327 = vector.load %arg6[%c1_176, %c2_177, %c0_178, %c0_179] : memref<3x3x16x16xf32, #tpu.memory_space<vmem>>, vector<1x1x16x16xf32>
    %328 = vector.shape_cast %327 : vector<1x1x16x16xf32> to vector<16x16xf32>
    %cst_180 = arith.constant dense<0.000000e+00> : vector<16x256xf32>
    %329 = tpu.matmul %328, %326, %cst_180 {dimension_numbers = #tpu.dot_dimension_numbers<[1], [0], [0], [1], [0, 0, 1, 1], [], []>} : vector<16x16xf32>, vector<16x256xf32>, vector<16x256xf32> -> vector<16x256xf32>
    %330 = arith.addf %319, %329 : vector<16x256xf32>
    %c1_181 = arith.constant 1 : index
    %c0_182 = arith.constant 0 : index
    %c0_183 = arith.constant 0 : index
    %331 = vector.load %arg8[%c1_181, %c0_182, %c0_183] : memref<3x16x1xf32, #tpu.memory_space<vmem>>, vector<1x16x1xf32>
    %332 = vector.shape_cast %331 : vector<1x16x1xf32> to vector<16x1xf32>
    %c1_184 = arith.constant 1 : index
    %c0_185 = arith.constant 0 : index
    %c0_186 = arith.constant 0 : index
    %333 = vector.load %arg9[%c1_184, %c0_185, %c0_186] : memref<3x16x1xf32, #tpu.memory_space<vmem>>, vector<1x16x1xf32>
    %334 = vector.shape_cast %333 : vector<1x16x1xf32> to vector<16x1xf32>
    %cst_187 = arith.constant dense<0.000000e+00> : vector<16xf32>
    %335 = vector.multi_reduction <add>, %330, %cst_187 [1] : vector<16x256xf32> to vector<16xf32>
    %336 = vector.shape_cast %335 : vector<16xf32> to vector<16x1xf32>
    %cst_188 = arith.constant 2.560000e+02 : f32
    %337 = vector.broadcast %cst_188 : f32 to vector<16x1xf32>
    %338 = arith.divf %336, %337 : vector<16x1xf32>
    %339 = vector.broadcast %338 : vector<16x1xf32> to vector<16x256xf32>
    %340 = arith.subf %330, %339 : vector<16x256xf32>
    %341 = arith.mulf %340, %340 : vector<16x256xf32>
    %cst_189 = arith.constant dense<0.000000e+00> : vector<16xf32>
    %342 = vector.multi_reduction <add>, %341, %cst_189 [1] : vector<16x256xf32> to vector<16xf32>
    %343 = vector.shape_cast %342 : vector<16xf32> to vector<16x1xf32>
    %cst_190 = arith.constant 2.560000e+02 : f32
    %344 = vector.broadcast %cst_190 : f32 to vector<16x1xf32>
    %345 = arith.divf %343, %344 : vector<16x1xf32>
    %cst_191 = arith.constant 9.99999974E-6 : f32
    %346 = vector.broadcast %cst_191 : f32 to vector<16x1xf32>
    %347 = arith.addf %345, %346 : vector<16x1xf32>
    %348 = math.rsqrt %347 : vector<16x1xf32>
    %349 = vector.broadcast %348 : vector<16x1xf32> to vector<16x256xf32>
    %350 = arith.mulf %340, %349 : vector<16x256xf32>
    %351 = vector.broadcast %332 : vector<16x1xf32> to vector<16x256xf32>
    %352 = arith.mulf %350, %351 : vector<16x256xf32>
    %353 = vector.broadcast %334 : vector<16x1xf32> to vector<16x256xf32>
    %354 = arith.addf %352, %353 : vector<16x256xf32>
    %cst_192 = arith.constant 0.000000e+00 : f32
    %355 = vector.broadcast %cst_192 : f32 to vector<16x256xf32>
    %356 = arith.cmpf oge, %354, %355 : vector<16x256xf32>
    %cst_193 = arith.constant 0.00999999977 : f32
    %357 = vector.broadcast %cst_193 : f32 to vector<16x256xf32>
    %358 = arith.mulf %357, %354 : vector<16x256xf32>
    %359 = arith.select %356, %354, %358 : vector<16x256xi1>, vector<16x256xf32>
    %c2_194 = arith.constant 2 : index
    %c0_195 = arith.constant 0 : index
    %c0_196 = arith.constant 0 : index
    %360 = vector.load %arg7[%c2_194, %c0_195, %c0_196] : memref<3x16x1xf32, #tpu.memory_space<vmem>>, vector<1x16x1xf32>
    %361 = vector.shape_cast %360 : vector<1x16x1xf32> to vector<16x1xf32>
    %c1_i32_197 = arith.constant 1 : i32
    %362 = tpu.dynamic_rotate %359 by %c1_i32_197 dim 1 : vector<16x256xf32>, i32 -> vector<16x256xf32>
    %c129_i32_198 = arith.constant 129 : i32
    %363 = tpu.dynamic_rotate %359 by %c129_i32_198 dim 1 : vector<16x256xf32>, i32 -> vector<16x256xf32>
    %c1_i32_199 = arith.constant 1 : i32
    %364 = vector.broadcast %c1_i32_199 : i32 to vector<1x256xi32>
    %365 = arith.cmpi slt, %242, %364 : vector<1x256xi32>
    %366 = vector.shape_cast %365 : vector<1x256xi1> to vector<1x256xi1>
    %367 = vector.broadcast %366 : vector<1x256xi1> to vector<16x256xi1>
    %368 = arith.select %367, %363, %362 : vector<16x256xi1>, vector<16x256xf32>
    %c2_200 = arith.constant 2 : index
    %c0_201 = arith.constant 0 : index
    %c0_202 = arith.constant 0 : index
    %c0_203 = arith.constant 0 : index
    %369 = vector.load %arg6[%c2_200, %c0_201, %c0_202, %c0_203] : memref<3x3x16x16xf32, #tpu.memory_space<vmem>>, vector<1x1x16x16xf32>
    %370 = vector.shape_cast %369 : vector<1x1x16x16xf32> to vector<16x16xf32>
    %cst_204 = arith.constant dense<0.000000e+00> : vector<16x256xf32>
    %371 = tpu.matmul %370, %368, %cst_204 {dimension_numbers = #tpu.dot_dimension_numbers<[1], [0], [0], [1], [0, 0, 1, 1], [], []>} : vector<16x16xf32>, vector<16x256xf32>, vector<16x256xf32> -> vector<16x256xf32>
    %372 = vector.broadcast %361 : vector<16x1xf32> to vector<16x256xf32>
    %373 = arith.addf %372, %371 : vector<16x256xf32>
    %c2_205 = arith.constant 2 : index
    %c1_206 = arith.constant 1 : index
    %c0_207 = arith.constant 0 : index
    %c0_208 = arith.constant 0 : index
    %374 = vector.load %arg6[%c2_205, %c1_206, %c0_207, %c0_208] : memref<3x3x16x16xf32, #tpu.memory_space<vmem>>, vector<1x1x16x16xf32>
    %375 = vector.shape_cast %374 : vector<1x1x16x16xf32> to vector<16x16xf32>
    %cst_209 = arith.constant dense<0.000000e+00> : vector<16x256xf32>
    %376 = tpu.matmul %375, %359, %cst_209 {dimension_numbers = #tpu.dot_dimension_numbers<[1], [0], [0], [1], [0, 0, 1, 1], [], []>} : vector<16x16xf32>, vector<16x256xf32>, vector<16x256xf32> -> vector<16x256xf32>
    %377 = arith.addf %373, %376 : vector<16x256xf32>
    %c255_i32_210 = arith.constant 255 : i32
    %378 = tpu.dynamic_rotate %359 by %c255_i32_210 dim 1 : vector<16x256xf32>, i32 -> vector<16x256xf32>
    %c127_i32_211 = arith.constant 127 : i32
    %379 = tpu.dynamic_rotate %359 by %c127_i32_211 dim 1 : vector<16x256xf32>, i32 -> vector<16x256xf32>
    %c127_i32_212 = arith.constant 127 : i32
    %380 = vector.broadcast %c127_i32_212 : i32 to vector<1x256xi32>
    %381 = arith.cmpi sge, %242, %380 : vector<1x256xi32>
    %382 = vector.shape_cast %381 : vector<1x256xi1> to vector<1x256xi1>
    %383 = vector.broadcast %382 : vector<1x256xi1> to vector<16x256xi1>
    %384 = arith.select %383, %379, %378 : vector<16x256xi1>, vector<16x256xf32>
    %c2_213 = arith.constant 2 : index
    %c2_214 = arith.constant 2 : index
    %c0_215 = arith.constant 0 : index
    %c0_216 = arith.constant 0 : index
    %385 = vector.load %arg6[%c2_213, %c2_214, %c0_215, %c0_216] : memref<3x3x16x16xf32, #tpu.memory_space<vmem>>, vector<1x1x16x16xf32>
    %386 = vector.shape_cast %385 : vector<1x1x16x16xf32> to vector<16x16xf32>
    %cst_217 = arith.constant dense<0.000000e+00> : vector<16x256xf32>
    %387 = tpu.matmul %386, %384, %cst_217 {dimension_numbers = #tpu.dot_dimension_numbers<[1], [0], [0], [1], [0, 0, 1, 1], [], []>} : vector<16x16xf32>, vector<16x256xf32>, vector<16x256xf32> -> vector<16x256xf32>
    %388 = arith.addf %377, %387 : vector<16x256xf32>
    %389 = vector.extract_strided_slice %388 {offsets = [0, 0], sizes = [16, 128], strides = [1, 1]} : vector<16x256xf32> to vector<16x128xf32>
    %390 = vector.extract_strided_slice %388 {offsets = [0, 0], sizes = [16, 128], strides = [1, 1]} : vector<16x256xf32> to vector<16x128xf32>
    %cst_218 = arith.constant dense<0.000000e+00> : vector<16xf32>
    %391 = vector.multi_reduction <add>, %389, %cst_218 [1] : vector<16x128xf32> to vector<16xf32>
    %392 = vector.shape_cast %391 : vector<16xf32> to vector<16x1xf32>
    %cst_219 = arith.constant 1.280000e+02 : f32
    %393 = vector.broadcast %cst_219 : f32 to vector<16x1xf32>
    %394 = arith.divf %392, %393 : vector<16x1xf32>
    %cst_220 = arith.constant dense<0xFF800000> : vector<16xf32>
    %395 = vector.multi_reduction <maximumf>, %390, %cst_220 [1] : vector<16x128xf32> to vector<16xf32>
    %396 = vector.shape_cast %395 : vector<16xf32> to vector<16x1xf32>
    %397 = vector.broadcast %396 : vector<16x1xf32> to vector<16x128xf32>
    %398 = arith.subf %390, %397 : vector<16x128xf32>
    %399 = math.exp %398 : vector<16x128xf32>
    %cst_221 = arith.constant dense<0.000000e+00> : vector<16xf32>
    %400 = vector.multi_reduction <add>, %399, %cst_221 [1] : vector<16x128xf32> to vector<16xf32>
    %401 = vector.shape_cast %400 : vector<16xf32> to vector<16x1xf32>
    %402 = math.log %401 : vector<16x1xf32>
    %403 = arith.addf %402, %396 : vector<16x1xf32>
    %404 = vector.extract_strided_slice %388 {offsets = [0, 128], sizes = [16, 128], strides = [1, 1]} : vector<16x256xf32> to vector<16x128xf32>
    %405 = vector.extract_strided_slice %388 {offsets = [0, 128], sizes = [16, 128], strides = [1, 1]} : vector<16x256xf32> to vector<16x128xf32>
    %cst_222 = arith.constant dense<0.000000e+00> : vector<16xf32>
    %406 = vector.multi_reduction <add>, %404, %cst_222 [1] : vector<16x128xf32> to vector<16xf32>
    %407 = vector.shape_cast %406 : vector<16xf32> to vector<16x1xf32>
    %cst_223 = arith.constant 1.280000e+02 : f32
    %408 = vector.broadcast %cst_223 : f32 to vector<16x1xf32>
    %409 = arith.divf %407, %408 : vector<16x1xf32>
    %cst_224 = arith.constant dense<0xFF800000> : vector<16xf32>
    %410 = vector.multi_reduction <maximumf>, %405, %cst_224 [1] : vector<16x128xf32> to vector<16xf32>
    %411 = vector.shape_cast %410 : vector<16xf32> to vector<16x1xf32>
    %412 = vector.broadcast %411 : vector<16x1xf32> to vector<16x128xf32>
    %413 = arith.subf %405, %412 : vector<16x128xf32>
    %414 = math.exp %413 : vector<16x128xf32>
    %cst_225 = arith.constant dense<0.000000e+00> : vector<16xf32>
    %415 = vector.multi_reduction <add>, %414, %cst_225 [1] : vector<16x128xf32> to vector<16xf32>
    %416 = vector.shape_cast %415 : vector<16xf32> to vector<16x1xf32>
    %417 = math.log %416 : vector<16x1xf32>
    %418 = arith.addf %417, %411 : vector<16x1xf32>
    %419 = tpu.concatenate %394, %409 in 1 : vector<16x1xf32>, vector<16x1xf32> -> vector<16x2xf32>
    %420 = tpu.concatenate %403, %418 in 1 : vector<16x1xf32>, vector<16x1xf32> -> vector<16x2xf32>
    %421 = tpu.concatenate %224, %225, %419, %420 in 0 : vector<32x2xf32>, vector<32x2xf32>, vector<16x2xf32>, vector<16x2xf32> -> vector<96x2xf32>
    %c0_226 = arith.constant 0 : index
    %c0_227 = arith.constant 0 : index
    %422 = vector.load %arg10[%c0_226, %c0_227] : memref<32x96xf32, #tpu.memory_space<vmem>>, vector<32x96xf32>
    %cst_228 = arith.constant dense<0.000000e+00> : vector<32x2xf32>
    %423 = tpu.matmul %422, %421, %cst_228 {dimension_numbers = #tpu.dot_dimension_numbers<[1], [0], [0], [1], [0, 0, 1, 1], [], []>} : vector<32x96xf32>, vector<96x2xf32>, vector<32x2xf32> -> vector<32x2xf32>
    %c0_229 = arith.constant 0 : index
    %c0_230 = arith.constant 0 : index
    %424 = vector.load %arg11[%c0_229, %c0_230] : memref<32x1xf32, #tpu.memory_space<vmem>>, vector<32x1xf32>
    %425 = vector.broadcast %424 : vector<32x1xf32> to vector<32x2xf32>
    %426 = arith.addf %423, %425 : vector<32x2xf32>
    %cst_231 = arith.constant 0.000000e+00 : f32
    %427 = vector.broadcast %cst_231 : f32 to vector<32x2xf32>
    %428 = arith.cmpf oge, %426, %427 : vector<32x2xf32>
    %cst_232 = arith.constant 0.00999999977 : f32
    %429 = vector.broadcast %cst_232 : f32 to vector<32x2xf32>
    %430 = arith.mulf %429, %426 : vector<32x2xf32>
    %431 = arith.select %428, %426, %430 : vector<32x2xi1>, vector<32x2xf32>
    %c0_233 = arith.constant 0 : index
    %c0_234 = arith.constant 0 : index
    %432 = vector.load %arg12[%c0_233, %c0_234] : memref<1x32xf32, #tpu.memory_space<vmem>>, vector<1x32xf32>
    %cst_235 = arith.constant dense<0.000000e+00> : vector<1x2xf32>
    %433 = tpu.matmul %432, %431, %cst_235 {dimension_numbers = #tpu.dot_dimension_numbers<[1], [0], [0], [1], [0, 0, 1, 1], [], []>} : vector<1x32xf32>, vector<32x2xf32>, vector<1x2xf32> -> vector<1x2xf32>
    %c0_236 = arith.constant 0 : index
    %c0_237 = arith.constant 0 : index
    %434 = vector.load %arg13[%c0_236, %c0_237] : memref<1x1xf32, #tpu.memory_space<vmem>>, vector<1x1xf32>
    %435 = vector.broadcast %434 : vector<1x1xf32> to vector<1x2xf32>
    %436 = arith.addf %433, %435 : vector<1x2xf32>
    %c0_238 = arith.constant 0 : index
    %c0_239 = arith.constant 0 : index
    %437 = vector.load %arg14[%c0_238, %c0_239] : memref<1x2xf32, #tpu.memory_space<vmem>>, vector<1x2xf32>
    tpu.vector_store %arg14[%c0_238, %c0_239], %436 {strides = array<i32>} : memref<1x2xf32, #tpu.memory_space<vmem>>, vector<1x2xf32>,
    return
  }
}

</mosaic_0001>

<bundles_post_ra>
// kernel: tile.9
= control target key start
LH: loop header
LB: loop body
LE: loop exit
PB: predicated region body
PF: predicated region fallthrough
CT: control target
= control target key end

     0   :  { %s1732_s0 = inlined_call_operand.vmem [shape: f32[3,32,2,128], index: 0, kind: input, shape index: {}]   ;;  %s1733_s1 = inlined_call_operand.vmem [shape: f32[3,32,256], index: 1, kind: output, shape index: {}]  }
   0x1   :  { %v956_v0 = vld [vmem:[%s1732_s0 + $0xbe] sm:$0x3]  ;;  %v957_v1 = vld [vmem:[%s1732_s0 + $0xbc] sm:$0x3]  ;;  %v958_v2 = vld [vmem:[%s1732_s0 + $0xba] sm:$0x3] }
   0x2   :  { %8 = vst [vmem:[#allocation0 + $0x2f8] sm:$0x3] %v956_v0  ;;  %13 = vst [vmem:[#allocation0 + $0x2f0] sm:$0x3] %v957_v1  ;;  %v959_v3 = vld [vmem:[%s1732_s0 + $0xb8] sm:$0x3] }
   0x3   :  { %18 = vst [vmem:[#allocation0 + $0x2e8] sm:$0x3] %v958_v2  ;;  %v960_v4 = vld [vmem:[%s1732_s0 + $0xb6] sm:$0x3]  ;;  %v961_v5 = vld [vmem:[%s1732_s0 + $0xb4] sm:$0x3] }
   0x4   :  { %23 = vst [vmem:[#allocation0 + $0x2e0] sm:$0x3] %v959_v3  ;;  %28 = vst [vmem:[#allocation0 + $0x2d8] sm:$0x3] %v960_v4  ;;  %v962_v6 = vld [vmem:[%s1732_s0 + $0xb2] sm:$0x3] }
   0x5   :  { %33 = vst [vmem:[#allocation0 + $0x2d0] sm:$0x3] %v961_v5  ;;  %v963_v7 = vld [vmem:[%s1732_s0 + $0xb0] sm:$0x3]  ;;  %v964_v8 = vld [vmem:[%s1732_s0 + $0xae] sm:$0x3] }
   0x6   :  { %38 = vst [vmem:[#allocation0 + $0x2c8] sm:$0x3] %v962_v6  ;;  %43 = vst [vmem:[#allocation0 + $0x2c0] sm:$0x3] %v963_v7  ;;  %v965_v9 = vld [vmem:[%s1732_s0 + $0xac] sm:$0x3] }
   0x7   :  { %48 = vst [vmem:[#allocation0 + $0x2b8] sm:$0x3] %v964_v8  ;;  %v966_v10 = vld [vmem:[%s1732_s0 + $0xaa] sm:$0x3]  ;;  %v967_v11 = vld [vmem:[%s1732_s0 + $0xa8] sm:$0x3] }
   0x8   :  { %53 = vst [vmem:[#allocation0 + $0x2b0] sm:$0x3] %v965_v9  ;;  %58 = vst [vmem:[#allocation0 + $0x2a8] sm:$0x3] %v966_v10  ;;  %v968_v12 = vld [vmem:[%s1732_s0 + $0xa6] sm:$0x3] }
   0x9   :  { %63 = vst [vmem:[#allocation0 + $0x2a0] sm:$0x3] %v967_v11  ;;  %v969_v13 = vld [vmem:[%s1732_s0 + $0xa4] sm:$0x3]  ;;  %v970_v14 = vld [vmem:[%s1732_s0 + $0xa2] sm:$0x3] }
   0xa   :  { %68 = vst [vmem:[#allocation0 + $0x298] sm:$0x3] %v968_v12  ;;  %73 = vst [vmem:[#allocation0 + $0x290] sm:$0x3] %v969_v13  ;;  %v971_v15 = vld [vmem:[%s1732_s0 + $0xa0] sm:$0x3] }
   0xb   :  { %78 = vst [vmem:[#allocation0 + $0x288] sm:$0x3] %v970_v14  ;;  %v972_v16 = vld [vmem:[%s1732_s0 + $0x9e] sm:$0x3]  ;;  %v973_v17 = vld [vmem:[%s1732_s0 + $0x9c] sm:$0x3] }
   0xc   :  { %83 = vst [vmem:[#allocation0 + $0x280] sm:$0x3] %v971_v15  ;;  %88 = vst [vmem:[#allocation0 + $0x278] sm:$0x3] %v972_v16  ;;  %v974_v18 = vld [vmem:[%s1732_s0 + $0x9a] sm:$0x3] }
   0xd   :  { %93 = vst [vmem:[#allocation0 + $0x270] sm:$0x3] %v973_v17  ;;  %v975_v19 = vld [vmem:[%s1732_s0 + $0x98] sm:$0x3]  ;;  %v976_v20 = vld [vmem:[%s1732_s0 + $0x96] sm:$0x3] }
   0xe   :  { %98 = vst [vmem:[#allocation0 + $0x268] sm:$0x3] %v974_v18  ;;  %103 = vst [vmem:[#allocation0 + $0x260] sm:$0x3] %v975_v19  ;;  %v977_v21 = vld [vmem:[%s1732_s0 + $0x94] sm:$0x3] }
   0xf   :  { %108 = vst [vmem:[#allocation0 + $0x258] sm:$0x3] %v976_v20  ;;  %v978_v22 = vld [vmem:[%s1732_s0 + $0x92] sm:$0x3]  ;;  %v979_v23 = vld [vmem:[%s1732_s0 + $0x90] sm:$0x3] }
  0x10   :  { %113 = vst [vmem:[#allocation0 + $0x250] sm:$0x3] %v977_v21  ;;  %118 = vst [vmem:[#allocation0 + $0x248] sm:$0x3] %v978_v22  ;;  %v980_v24 = vld [vmem:[%s1732_s0 + $0x8e] sm:$0x3] }
  0x11   :  { %123 = vst [vmem:[#allocation0 + $0x240] sm:$0x3] %v979_v23  ;;  %v981_v25 = vld [vmem:[%s1732_s0 + $0x8c] sm:$0x3]  ;;  %v982_v26 = vld [vmem:[%s1732_s0 + $0x8a] sm:$0x3] }
  0x12   :  { %128 = vst [vmem:[#allocation0 + $0x238] sm:$0x3] %v980_v24  ;;  %133 = vst [vmem:[#allocation0 + $0x230] sm:$0x3] %v981_v25  ;;  %v983_v27 = vld [vmem:[%s1732_s0 + $0x88] sm:$0x3] }
  0x13   :  { %138 = vst [vmem:[#allocation0 + $0x228] sm:$0x3] %v982_v26  ;;  %v984_v28 = vld [vmem:[%s1732_s0 + $0x86] sm:$0x3]  ;;  %v985_v29 = vld [vmem:[%s1732_s0 + $0x84] sm:$0x3] }
  0x14   :  { %143 = vst [vmem:[#allocation0 + $0x220] sm:$0x3] %v983_v27  ;;  %148 = vst [vmem:[#allocation0 + $0x218] sm:$0x3] %v984_v28  ;;  %v986_v30 = vld [vmem:[%s1732_s0 + $0x82] sm:$0x3] }
  0x15   :  { %153 = vst [vmem:[#allocation0 + $0x210] sm:$0x3] %v985_v29  ;;  %v987_v31 = vld [vmem:[%s1732_s0 + $0x80] sm:$0x3]  ;;  %v988_v32 = vld [vmem:[%s1732_s0 + $0x7e] sm:$0x3] }
  0x16   :  { %158 = vst [vmem:[#allocation0 + $0x208] sm:$0x3] %v986_v30  ;;  %163 = vst [vmem:[#allocation0 + $0x200] sm:$0x3] %v987_v31  ;;  %v989_v33 = vld [vmem:[%s1732_s0 + $0x7c] sm:$0x3] }
  0x17   :  { %168 = vst [vmem:[#allocation0 + $0x1f8] sm:$0x3] %v988_v32  ;;  %v990_v34 = vld [vmem:[%s1732_s0 + $0x7a] sm:$0x3]  ;;  %v991_v35 = vld [vmem:[%s1732_s0 + $0x78] sm:$0x3] }
  0x18   :  { %173 = vst [vmem:[#allocation0 + $0x1f0] sm:$0x3] %v989_v33  ;;  %178 = vst [vmem:[#allocation0 + $0x1e8] sm:$0x3] %v990_v34  ;;  %v992_v36 = vld [vmem:[%s1732_s0 + $0x76] sm:$0x3] }
  0x19   :  { %183 = vst [vmem:[#allocation0 + $0x1e0] sm:$0x3] %v991_v35  ;;  %v993_v37 = vld [vmem:[%s1732_s0 + $0x74] sm:$0x3]  ;;  %v994_v38 = vld [vmem:[%s1732_s0 + $0x72] sm:$0x3] }
  0x1a   :  { %188 = vst [vmem:[#allocation0 + $0x1d8] sm:$0x3] %v992_v36  ;;  %193 = vst [vmem:[#allocation0 + $0x1d0] sm:$0x3] %v993_v37  ;;  %v995_v39 = vld [vmem:[%s1732_s0 + $0x70] sm:$0x3] }
  0x1b   :  { %198 = vst [vmem:[#allocation0 + $0x1c8] sm:$0x3] %v994_v38  ;;  %v996_v40 = vld [vmem:[%s1732_s0 + $0x6e] sm:$0x3]  ;;  %v997_v41 = vld [vmem:[%s1732_s0 + $0x6c] sm:$0x3] }
  0x1c   :  { %203 = vst [vmem:[#allocation0 + $0x1c0] sm:$0x3] %v995_v39  ;;  %208 = vst [vmem:[#allocation0 + $0x1b8] sm:$0x3] %v996_v40  ;;  %v998_v42 = vld [vmem:[%s1732_s0 + $0x6a] sm:$0x3] }
  0x1d   :  { %213 = vst [vmem:[#allocation0 + $0x1b0] sm:$0x3] %v997_v41  ;;  %v999_v43 = vld [vmem:[%s1732_s0 + $0x68] sm:$0x3]  ;;  %v1000_v44 = vld [vmem:[%s1732_s0 + $0x66] sm:$0x3] }
  0x1e   :  { %218 = vst [vmem:[#allocation0 + $0x1a8] sm:$0x3] %v998_v42  ;;  %223 = vst [vmem:[#allocation0 + $0x1a0] sm:$0x3] %v999_v43  ;;  %v1001_v45 = vld [vmem:[%s1732_s0 + $0x64] sm:$0x3] }
  0x1f   :  { %228 = vst [vmem:[#allocation0 + $0x198] sm:$0x3] %v1000_v44  ;;  %v1002_v46 = vld [vmem:[%s1732_s0 + $0x62] sm:$0x3]  ;;  %v1003_v47 = vld [vmem:[%s1732_s0 + $0x60] sm:$0x3] }
  0x20   :  { %233 = vst [vmem:[#allocation0 + $0x190] sm:$0x3] %v1001_v45  ;;  %238 = vst [vmem:[#allocation0 + $0x188] sm:$0x3] %v1002_v46  ;;  %v1004_v48 = vld [vmem:[%s1732_s0 + $0x5e] sm:$0x3] }
  0x21   :  { %243 = vst [vmem:[#allocation0 + $0x180] sm:$0x3] %v1003_v47  ;;  %v1005_v49 = vld [vmem:[%s1732_s0 + $0x5c] sm:$0x3]  ;;  %v1006_v50 = vld [vmem:[%s1732_s0 + $0x5a] sm:$0x3] }
  0x22   :  { %248 = vst [vmem:[#allocation0 + $0x178] sm:$0x3] %v1004_v48  ;;  %253 = vst [vmem:[#allocation0 + $0x170] sm:$0x3] %v1005_v49  ;;  %v1007_v51 = vld [vmem:[%s1732_s0 + $0x58] sm:$0x3] }
  0x23   :  { %258 = vst [vmem:[#allocation0 + $0x168] sm:$0x3] %v1006_v50  ;;  %v1008_v52 = vld [vmem:[%s1732_s0 + $0x56] sm:$0x3]  ;;  %v1009_v53 = vld [vmem:[%s1732_s0 + $0x54] sm:$0x3] }
  0x24   :  { %263 = vst [vmem:[#allocation0 + $0x160] sm:$0x3] %v1007_v51  ;;  %268 = vst [vmem:[#allocation0 + $0x158] sm:$0x3] %v1008_v52  ;;  %v1010_v54 = vld [vmem:[%s1732_s0 + $0x52] sm:$0x3] }
  0x25   :  { %273 = vst [vmem:[#allocation0 + $0x150] sm:$0x3] %v1009_v53  ;;  %v1011_v55 = vld [vmem:[%s1732_s0 + $0x50] sm:$0x3]  ;;  %v1012_v56 = vld [vmem:[%s1732_s0 + $0x4e] sm:$0x3] }
  0x26   :  { %278 = vst [vmem:[#allocation0 + $0x148] sm:$0x3] %v1010_v54  ;;  %283 = vst [vmem:[#allocation0 + $0x140] sm:$0x3] %v1011_v55  ;;  %v1013_v57 = vld [vmem:[%s1732_s0 + $0x4c] sm:$0x3] }
  0x27   :  { %288 = vst [vmem:[#allocation0 + $0x138] sm:$0x3] %v1012_v56  ;;  %v1014_v58 = vld [vmem:[%s1732_s0 + $0x4a] sm:$0x3]  ;;  %v1015_v59 = vld [vmem:[%s1732_s0 + $0x48] sm:$0x3] }
  0x28   :  { %293 = vst [vmem:[#allocation0 + $0x130] sm:$0x3] %v1013_v57  ;;  %298 = vst [vmem:[#allocation0 + $0x128] sm:$0x3] %v1014_v58  ;;  %v1016_v60 = vld [vmem:[%s1732_s0 + $0x46] sm:$0x3] }
  0x29   :  { %303 = vst [vmem:[#allocation0 + $0x120] sm:$0x3] %v1015_v59  ;;  %v1017_v61 = vld [vmem:[%s1732_s0 + $0x44] sm:$0x3]  ;;  %v1018_v62 = vld [vmem:[%s1732_s0 + $0x42] sm:$0x3] }
  0x2a   :  { %308 = vst [vmem:[#allocation0 + $0x118] sm:$0x3] %v1016_v60  ;;  %313 = vst [vmem:[#allocation0 + $0x110] sm:$0x3] %v1017_v61  ;;  %v1019_v63 = vld [vmem:[%s1732_s0 + $0x40] sm:$0x3] }
  0x2b   :  { %318 = vst [vmem:[#allocation0 + $0x108] sm:$0x3] %v1018_v62  ;;  %v1020_v0 = vld [vmem:[%s1732_s0 + $0x3e] sm:$0x3]  ;;  %v1021_v1 = vld [vmem:[%s1732_s0 + $0x3c] sm:$0x3] }
  0x2c   :  { %323 = vst [vmem:[#allocation0 + $0x100] sm:$0x3] %v1019_v63  ;;  %328 = vst [vmem:[#allocation0 + $0xf8] sm:$0x3] %v1020_v0  ;;  %v1022_v2 = vld [vmem:[%s1732_s0 + $0x3a] sm:$0x3] }
  0x2d   :  { %333 = vst [vmem:[#allocation0 + $0xf0] sm:$0x3] %v1021_v1  ;;  %v1023_v3 = vld [vmem:[%s1732_s0 + $0x38] sm:$0x3]  ;;  %v1024_v4 = vld [vmem:[%s1732_s0 + $0x36] sm:$0x3] }
  0x2e   :  { %338 = vst [vmem:[#allocation0 + $0xe8] sm:$0x3] %v1022_v2  ;;  %343 = vst [vmem:[#allocation0 + $0xe0] sm:$0x3] %v1023_v3  ;;  %v1025_v5 = vld [vmem:[%s1732_s0 + $0x34] sm:$0x3] }
  0x2f   :  { %348 = vst [vmem:[#allocation0 + $0xd8] sm:$0x3] %v1024_v4  ;;  %v1026_v6 = vld [vmem:[%s1732_s0 + $0x32] sm:$0x3]  ;;  %v1027_v7 = vld [vmem:[%s1732_s0 + $0x30] sm:$0x3] }
  0x30   :  { %353 = vst [vmem:[#allocation0 + $0xd0] sm:$0x3] %v1025_v5  ;;  %358 = vst [vmem:[#allocation0 + $0xc8] sm:$0x3] %v1026_v6  ;;  %v1028_v8 = vld [vmem:[%s1732_s0 + $0x2e] sm:$0x3] }
  0x31   :  { %363 = vst [vmem:[#allocation0 + $0xc0] sm:$0x3] %v1027_v7  ;;  %v1029_v9 = vld [vmem:[%s1732_s0 + $0x2c] sm:$0x3]  ;;  %v1030_v10 = vld [vmem:[%s1732_s0 + $0x2a] sm:$0x3] }
  0x32   :  { %368 = vst [vmem:[#allocation0 + $0xb8] sm:$0x3] %v1028_v8  ;;  %373 = vst [vmem:[#allocation0 + $0xb0] sm:$0x3] %v1029_v9  ;;  %v1031_v11 = vld [vmem:[%s1732_s0 + $0x28] sm:$0x3] }
  0x33   :  { %378 = vst [vmem:[#allocation0 + $0xa8] sm:$0x3] %v1030_v10  ;;  %v1032_v12 = vld [vmem:[%s1732_s0 + $0x26] sm:$0x3]  ;;  %v1033_v13 = vld [vmem:[%s1732_s0 + $0x24] sm:$0x3] }
  0x34   :  { %383 = vst [vmem:[#allocation0 + $0xa0] sm:$0x3] %v1031_v11  ;;  %388 = vst [vmem:[#allocation0 + $0x98] sm:$0x3] %v1032_v12  ;;  %v1034_v14 = vld [vmem:[%s1732_s0 + $0x22] sm:$0x3] }
  0x35   :  { %393 = vst [vmem:[#allocation0 + $0x90] sm:$0x3] %v1033_v13  ;;  %v1035_v15 = vld [vmem:[%s1732_s0 + $0x20] sm:$0x3]  ;;  %v1036_v16 = vld [vmem:[%s1732_s0 + $0x1e] sm:$0x3] }
  0x36   :  { %398 = vst [vmem:[#allocation0 + $0x88] sm:$0x3] %v1034_v14  ;;  %403 = vst [vmem:[#allocation0 + $0x80] sm:$0x3] %v1035_v15  ;;  %v1037_v17 = vld [vmem:[%s1732_s0 + $0x1c] sm:$0x3] }
  0x37   :  { %408 = vst [vmem:[#allocation0 + $0x78] sm:$0x3] %v1036_v16  ;;  %v1038_v18 = vld [vmem:[%s1732_s0 + $0x1a] sm:$0x3]  ;;  %v1039_v19 = vld [vmem:[%s1732_s0 + $0x18] sm:$0x3] }
  0x38   :  { %413 = vst [vmem:[#allocation0 + $0x70] sm:$0x3] %v1037_v17  ;;  %418 = vst [vmem:[#allocation0 + $0x68] sm:$0x3] %v1038_v18  ;;  %v1040_v20 = vld [vmem:[%s1732_s0 + $0x16] sm:$0x3] }
  0x39   :  { %423 = vst [vmem:[#allocation0 + $0x60] sm:$0x3] %v1039_v19  ;;  %v1041_v21 = vld [vmem:[%s1732_s0 + $0x14] sm:$0x3]  ;;  %v1042_v22 = vld [vmem:[%s1732_s0 + $0x12] sm:$0x3] }
  0x3a   :  { %428 = vst [vmem:[#allocation0 + $0x58] sm:$0x3] %v1040_v20  ;;  %433 = vst [vmem:[#allocation0 + $0x50] sm:$0x3] %v1041_v21  ;;  %v1043_v23 = vld [vmem:[%s1732_s0 + $0x10] sm:$0x3] }
  0x3b   :  { %438 = vst [vmem:[#allocation0 + $0x48] sm:$0x3] %v1042_v22  ;;  %v1044_v24 = vld [vmem:[%s1732_s0 + $0xe] sm:$0x3]  ;;  %v1045_v25 = vld [vmem:[%s1732_s0 + $0xc] sm:$0x3] }
  0x3c   :  { %443 = vst [vmem:[#allocation0 + $0x40] sm:$0x3] %v1043_v23  ;;  %448 = vst [vmem:[#allocation0 + $0x38] sm:$0x3] %v1044_v24  ;;  %v1046_v26 = vld [vmem:[%s1732_s0 + $0xa] sm:$0x3] }
  0x3d   :  { %453 = vst [vmem:[#allocation0 + $0x30] sm:$0x3] %v1045_v25  ;;  %v1047_v27 = vld [vmem:[%s1732_s0 + $0x8] sm:$0x3]  ;;  %v1048_v28 = vld [vmem:[%s1732_s0 + $0x6] sm:$0x3] }
  0x3e   :  { %458 = vst [vmem:[#allocation0 + $0x28] sm:$0x3] %v1046_v26  ;;  %463 = vst [vmem:[#allocation0 + $0x20] sm:$0x3] %v1047_v27  ;;  %v1049_v29 = vld [vmem:[%s1732_s0 + $0x4] sm:$0x3] }
  0x3f   :  { %468 = vst [vmem:[#allocation0 + $0x18] sm:$0x3] %v1048_v28  ;;  %v1050_v30 = vld [vmem:[%s1732_s0 + $0x2] sm:$0x3]  ;;  %v478_v31 = vld [vmem:[%s1732_s0] sm:$0x3] }
  0x40   :  { %473 = vst [vmem:[#allocation0 + $0x10] sm:$0x3] %v1049_v29  ;;  %477 = vst [vmem:[#allocation0 + $0x8] sm:$0x3] %v1050_v30  ;;  %v563_v32 = vld [vmem:[#allocation0 + $0xa8] sm:$0x3]  }
  0x41   :  { %479 = vst [vmem:[#allocation0] sm:$0x3] %v478_v31  ;;  %v567_v33 = vld [vmem:[#allocation0 + $0xb0] sm:$0x3]   ;;  %v571_v34 = vld [vmem:[#allocation0 + $0xb8] sm:$0x3]  }
  0x42   :  { %v551_v35 = vld [vmem:[#allocation0 + $0x90] sm:$0x3]   ;;  %v555_v36 = vld [vmem:[#allocation0 + $0x98] sm:$0x3]   ;;  %v559_v37 = vld [vmem:[#allocation0 + $0xa0] sm:$0x3]  }
  0x43   :  { %1071 = vst [vmem:[%s1733_s1 + $0x25] ss:$8 sm:$0x3] %v563_v32   ;;  %1072 = vst [vmem:[%s1733_s1 + $0x26] ss:$8 sm:$0x3] %v567_v33  }
  0x44   :  { %1073 = vst [vmem:[%s1733_s1 + $0x27] ss:$8 sm:$0x3] %v571_v34   ;;  %v539_v38 = vld [vmem:[#allocation0 + $0x78] sm:$0x3]  }
  0x45   :  { %v543_v39 = vld [vmem:[#allocation0 + $0x80] sm:$0x3]   ;;  %v547_v40 = vld [vmem:[#allocation0 + $0x88] sm:$0x3]   ;;  %v535_v43 = vld [vmem:[#allocation0 + $0x70] sm:$0x3]  }
  0x46   :  { %1068 = vst [vmem:[%s1733_s1 + $0x22] ss:$8 sm:$0x3] %v551_v35   ;;  %1069 = vst [vmem:[%s1733_s1 + $0x23] ss:$8 sm:$0x3] %v555_v36  }
  0x47   :  { %1070 = vst [vmem:[%s1733_s1 + $0x24] ss:$8 sm:$0x3] %v559_v37   ;;  %v527_v41 = vld [vmem:[#allocation0 + $0x60] sm:$0x3]  }
  0x48   :  { %v531_v42 = vld [vmem:[#allocation0 + $0x68] sm:$0x3]   ;;  %1065 = vst [vmem:[%s1733_s1 + $0x17] ss:$8 sm:$0x3] %v539_v38  }
  0x49   :  { %1066 = vst [vmem:[%s1733_s1 + $0x20] ss:$8 sm:$0x3] %v543_v39   ;;  %1067 = vst [vmem:[%s1733_s1 + $0x21] ss:$8 sm:$0x3] %v547_v40  }
  0x4a   :  { %v515_v44 = vld [vmem:[#allocation0 + $0x48] sm:$0x3]   ;;  %v519_v45 = vld [vmem:[#allocation0 + $0x50] sm:$0x3]   ;;  %v523_v46 = vld [vmem:[#allocation0 + $0x58] sm:$0x3]  }
  0x4b   :  { %1062 = vst [vmem:[%s1733_s1 + $0x14] ss:$8 sm:$0x3] %v527_v41   ;;  %1063 = vst [vmem:[%s1733_s1 + $0x15] ss:$8 sm:$0x3] %v531_v42  }
  0x4c   :  { %1064 = vst [vmem:[%s1733_s1 + $0x16] ss:$8 sm:$0x3] %v535_v43   ;;  %v503_v47 = vld [vmem:[#allocation0 + $0x30] sm:$0x3]  }
  0x4d   :  { %v507_v48 = vld [vmem:[#allocation0 + $0x38] sm:$0x3]   ;;  %v511_v49 = vld [vmem:[#allocation0 + $0x40] sm:$0x3]   ;;  %v499_v52 = vld [vmem:[#allocation0 + $0x28] sm:$0x3]  }
  0x4e   :  { %1059 = vst [vmem:[%s1733_s1 + $0x11] ss:$8 sm:$0x3] %v515_v44   ;;  %1060 = vst [vmem:[%s1733_s1 + $0x12] ss:$8 sm:$0x3] %v519_v45  }
  0x4f   :  { %1061 = vst [vmem:[%s1733_s1 + $0x13] ss:$8 sm:$0x3] %v523_v46   ;;  %v491_v50 = vld [vmem:[#allocation0 + $0x18] sm:$0x3]  }
  0x50   :  { %v495_v51 = vld [vmem:[#allocation0 + $0x20] sm:$0x3]   ;;  %1056 = vst [vmem:[%s1733_s1 + $0x6] ss:$8 sm:$0x3] %v503_v47  }
  0x51   :  { %1057 = vst [vmem:[%s1733_s1 + $0x7] ss:$8 sm:$0x3] %v507_v48   ;;  %1058 = vst [vmem:[%s1733_s1 + $0x10] ss:$8 sm:$0x3] %v511_v49  }
  0x52   :  { %v480_v53 = vld [vmem:[#allocation0] sm:$0x3]   ;;  %v483_v54 = vld [vmem:[#allocation0 + $0x8] sm:$0x3]   ;;  %v487_v55 = vld [vmem:[#allocation0 + $0x10] sm:$0x3]  }
  0x53   :  { %1053 = vst [vmem:[%s1733_s1 + $0x3] ss:$8 sm:$0x3] %v491_v50   ;;  %1054 = vst [vmem:[%s1733_s1 + $0x4] ss:$8 sm:$0x3] %v495_v51  }
  0x54   :  { %1055 = vst [vmem:[%s1733_s1 + $0x5] ss:$8 sm:$0x3] %v499_v52   ;;  %481 = vst [vmem:[%s1733_s1] ss:$8 sm:$0x3] %v480_v53  }
  0x55   :  { %1051 = vst [vmem:[%s1733_s1 + $0x1] ss:$8 sm:$0x3] %v483_v54   ;;  %1052 = vst [vmem:[%s1733_s1 + $0x2] ss:$8 sm:$0x3] %v487_v55  }
  0x56   :  { %v575_v56 = vld [vmem:[#allocation0 + $0xc0] sm:$0x3]   ;;  %v579_v57 = vld [vmem:[#allocation0 + $0xc8] sm:$0x3]   ;;  %v583_v58 = vld [vmem:[#allocation0 + $0xd0] sm:$0x3]  }
  0x57   :  { %1074 = vst [vmem:[%s1733_s1 + $0x30] ss:$8 sm:$0x3] %v575_v56   ;;  %1075 = vst [vmem:[%s1733_s1 + $0x31] ss:$8 sm:$0x3] %v579_v57  }
  0x58   :  { %1076 = vst [vmem:[%s1733_s1 + $0x32] ss:$8 sm:$0x3] %v583_v58   ;;  %v587_v59 = vld [vmem:[#allocation0 + $0xd8] sm:$0x3]  }
  0x59   :  { %v591_v60 = vld [vmem:[#allocation0 + $0xe0] sm:$0x3]   ;;  %v595_v61 = vld [vmem:[#allocation0 + $0xe8] sm:$0x3]   ;;  %v599_v62 = vld [vmem:[#allocation0 + $0xf0] sm:$0x3]  }
  0x5a   :  { %1077 = vst [vmem:[%s1733_s1 + $0x33] ss:$8 sm:$0x3] %v587_v59   ;;  %1078 = vst [vmem:[%s1733_s1 + $0x34] ss:$8 sm:$0x3] %v591_v60  }
  0x5b   :  { %1079 = vst [vmem:[%s1733_s1 + $0x35] ss:$8 sm:$0x3] %v595_v61   ;;  %v603_v63 = vld [vmem:[#allocation0 + $0xf8] sm:$0x3]  }
  0x5c   :  { %v607_v0 = vld [vmem:[#allocation0 + $0x100] sm:$0x3]   ;;  %1080 = vst [vmem:[%s1733_s1 + $0x36] ss:$8 sm:$0x3] %v599_v62  }
  0x5d   :  { %1081 = vst [vmem:[%s1733_s1 + $0x37] ss:$8 sm:$0x3] %v603_v63   ;;  %1082 = vst [vmem:[%s1733_s1 + $0x40] ss:$8 sm:$0x3] %v607_v0  }
  0x5e   :  { %v611_v1 = vld [vmem:[#allocation0 + $0x108] sm:$0x3]   ;;  %v615_v2 = vld [vmem:[#allocation0 + $0x110] sm:$0x3]   ;;  %v619_v3 = vld [vmem:[#allocation0 + $0x118] sm:$0x3]  }
  0x5f   :  { %1083 = vst [vmem:[%s1733_s1 + $0x41] ss:$8 sm:$0x3] %v611_v1   ;;  %1084 = vst [vmem:[%s1733_s1 + $0x42] ss:$8 sm:$0x3] %v615_v2  }
  0x60   :  { %1085 = vst [vmem:[%s1733_s1 + $0x43] ss:$8 sm:$0x3] %v619_v3   ;;  %v623_v4 = vld [vmem:[#allocation0 + $0x120] sm:$0x3]  }
  0x61   :  { %v627_v5 = vld [vmem:[#allocation0 + $0x128] sm:$0x3]   ;;  %v631_v6 = vld [vmem:[#allocation0 + $0x130] sm:$0x3]   ;;  %v635_v7 = vld [vmem:[#allocation0 + $0x138] sm:$0x3]  }
  0x62   :  { %1086 = vst [vmem:[%s1733_s1 + $0x44] ss:$8 sm:$0x3] %v623_v4   ;;  %1087 = vst [vmem:[%s1733_s1 + $0x45] ss:$8 sm:$0x3] %v627_v5  }
  0x63   :  { %1088 = vst [vmem:[%s1733_s1 + $0x46] ss:$8 sm:$0x3] %v631_v6   ;;  %v639_v8 = vld [vmem:[#allocation0 + $0x140] sm:$0x3]  }
  0x64   :  { %v643_v9 = vld [vmem:[#allocation0 + $0x148] sm:$0x3]   ;;  %1089 = vst [vmem:[%s1733_s1 + $0x47] ss:$8 sm:$0x3] %v635_v7  }
  0x65   :  { %1090 = vst [vmem:[%s1733_s1 + $0x50] ss:$8 sm:$0x3] %v639_v8   ;;  %1091 = vst [vmem:[%s1733_s1 + $0x51] ss:$8 sm:$0x3] %v643_v9  }
  0x66   :  { %v647_v10 = vld [vmem:[#allocation0 + $0x150] sm:$0x3]   ;;  %v651_v11 = vld [vmem:[#allocation0 + $0x158] sm:$0x3]   ;;  %v655_v12 = vld [vmem:[#allocation0 + $0x160] sm:$0x3]  }
  0x67   :  { %1092 = vst [vmem:[%s1733_s1 + $0x52] ss:$8 sm:$0x3] %v647_v10   ;;  %1093 = vst [vmem:[%s1733_s1 + $0x53] ss:$8 sm:$0x3] %v651_v11  }
  0x68   :  { %1094 = vst [vmem:[%s1733_s1 + $0x54] ss:$8 sm:$0x3] %v655_v12   ;;  %v659_v13 = vld [vmem:[#allocation0 + $0x168] sm:$0x3]  }
  0x69   :  { %v663_v14 = vld [vmem:[#allocation0 + $0x170] sm:$0x3]   ;;  %v667_v15 = vld [vmem:[#allocation0 + $0x178] sm:$0x3]   ;;  %v671_v16 = vld [vmem:[#allocation0 + $0x180] sm:$0x3]  }
  0x6a   :  { %1095 = vst [vmem:[%s1733_s1 + $0x55] ss:$8 sm:$0x3] %v659_v13   ;;  %1096 = vst [vmem:[%s1733_s1 + $0x56] ss:$8 sm:$0x3] %v663_v14  }
  0x6b   :  { %1097 = vst [vmem:[%s1733_s1 + $0x57] ss:$8 sm:$0x3] %v667_v15   ;;  %v675_v17 = vld [vmem:[#allocation0 + $0x188] sm:$0x3]  }
  0x6c   :  { %v679_v18 = vld [vmem:[#allocation0 + $0x190] sm:$0x3]   ;;  %1098 = vst [vmem:[%s1733_s1 + $0x60] ss:$8 sm:$0x3] %v671_v16  }
  0x6d   :  { %1099 = vst [vmem:[%s1733_s1 + $0x61] ss:$8 sm:$0x3] %v675_v17   ;;  %1100 = vst [vmem:[%s1733_s1 + $0x62] ss:$8 sm:$0x3] %v679_v18  }
  0x6e   :  { %v683_v19 = vld [vmem:[#allocation0 + $0x198] sm:$0x3]   ;;  %v687_v20 = vld [vmem:[#allocation0 + $0x1a0] sm:$0x3]   ;;  %v691_v21 = vld [vmem:[#allocation0 + $0x1a8] sm:$0x3]  }
  0x6f   :  { %1101 = vst [vmem:[%s1733_s1 + $0x63] ss:$8 sm:$0x3] %v683_v19   ;;  %1102 = vst [vmem:[%s1733_s1 + $0x64] ss:$8 sm:$0x3] %v687_v20  }
  0x70   :  { %1103 = vst [vmem:[%s1733_s1 + $0x65] ss:$8 sm:$0x3] %v691_v21   ;;  %v695_v22 = vld [vmem:[#allocation0 + $0x1b0] sm:$0x3]  }
  0x71   :  { %v699_v23 = vld [vmem:[#allocation0 + $0x1b8] sm:$0x3]   ;;  %v703_v24 = vld [vmem:[#allocation0 + $0x1c0] sm:$0x3]   ;;  %v707_v25 = vld [vmem:[#allocation0 + $0x1c8] sm:$0x3]  }
  0x72   :  { %1104 = vst [vmem:[%s1733_s1 + $0x66] ss:$8 sm:$0x3] %v695_v22   ;;  %1105 = vst [vmem:[%s1733_s1 + $0x67] ss:$8 sm:$0x3] %v699_v23  }
  0x73   :  { %1106 = vst [vmem:[%s1733_s1 + $0x70] ss:$8 sm:$0x3] %v703_v24   ;;  %v711_v26 = vld [vmem:[#allocation0 + $0x1d0] sm:$0x3]  }
  0x74   :  { %v715_v27 = vld [vmem:[#allocation0 + $0x1d8] sm:$0x3]   ;;  %1107 = vst [vmem:[%s1733_s1 + $0x71] ss:$8 sm:$0x3] %v707_v25  }
  0x75   :  { %1108 = vst [vmem:[%s1733_s1 + $0x72] ss:$8 sm:$0x3] %v711_v26   ;;  %1109 = vst [vmem:[%s1733_s1 + $0x73] ss:$8 sm:$0x3] %v715_v27  }
  0x76   :  { %v719_v28 = vld [vmem:[#allocation0 + $0x1e0] sm:$0x3]   ;;  %v723_v29 = vld [vmem:[#allocation0 + $0x1e8] sm:$0x3]   ;;  %v727_v30 = vld [vmem:[#allocation0 + $0x1f0] sm:$0x3]  }
  0x77   :  { %1110 = vst [vmem:[%s1733_s1 + $0x74] ss:$8 sm:$0x3] %v719_v28   ;;  %1111 = vst [vmem:[%s1733_s1 + $0x75] ss:$8 sm:$0x3] %v723_v29  }
  0x78   :  { %1112 = vst [vmem:[%s1733_s1 + $0x76] ss:$8 sm:$0x3] %v727_v30   ;;  %v731_v31 = vld [vmem:[#allocation0 + $0x1f8] sm:$0x3]  }
  0x79   :  { %v735_v32 = vld [vmem:[#allocation0 + $0x200] sm:$0x3]   ;;  %v739_v33 = vld [vmem:[#allocation0 + $0x208] sm:$0x3]   ;;  %v743_v34 = vld [vmem:[#allocation0 + $0x210] sm:$0x3]  }
  0x7a   :  { %1113 = vst [vmem:[%s1733_s1 + $0x77] ss:$8 sm:$0x3] %v731_v31   ;;  %1114 = vst [vmem:[%s1733_s1 + $0x80] ss:$8 sm:$0x3] %v735_v32  }
  0x7b   :  { %1115 = vst [vmem:[%s1733_s1 + $0x81] ss:$8 sm:$0x3] %v739_v33   ;;  %v747_v35 = vld [vmem:[#allocation0 + $0x218] sm:$0x3]  }
  0x7c   :  { %v751_v36 = vld [vmem:[#allocation0 + $0x220] sm:$0x3]   ;;  %1116 = vst [vmem:[%s1733_s1 + $0x82] ss:$8 sm:$0x3] %v743_v34  }
  0x7d   :  { %1117 = vst [vmem:[%s1733_s1 + $0x83] ss:$8 sm:$0x3] %v747_v35   ;;  %1118 = vst [vmem:[%s1733_s1 + $0x84] ss:$8 sm:$0x3] %v751_v36  }
  0x7e   :  { %v755_v37 = vld [vmem:[#allocation0 + $0x228] sm:$0x3]   ;;  %v759_v38 = vld [vmem:[#allocation0 + $0x230] sm:$0x3]   ;;  %v763_v39 = vld [vmem:[#allocation0 + $0x238] sm:$0x3]  }
  0x7f   :  { %1119 = vst [vmem:[%s1733_s1 + $0x85] ss:$8 sm:$0x3] %v755_v37   ;;  %1120 = vst [vmem:[%s1733_s1 + $0x86] ss:$8 sm:$0x3] %v759_v38  }
  0x80   :  { %1121 = vst [vmem:[%s1733_s1 + $0x87] ss:$8 sm:$0x3] %v763_v39   ;;  %v767_v40 = vld [vmem:[#allocation0 + $0x240] sm:$0x3]  }
  0x81   :  { %v771_v41 = vld [vmem:[#allocation0 + $0x248] sm:$0x3]   ;;  %v775_v42 = vld [vmem:[#allocation0 + $0x250] sm:$0x3]   ;;  %v779_v43 = vld [vmem:[#allocation0 + $0x258] sm:$0x3]  }
  0x82   :  { %1122 = vst [vmem:[%s1733_s1 + $0x90] ss:$8 sm:$0x3] %v767_v40   ;;  %1123 = vst [vmem:[%s1733_s1 + $0x91] ss:$8 sm:$0x3] %v771_v41  }
  0x83   :  { %1124 = vst [vmem:[%s1733_s1 + $0x92] ss:$8 sm:$0x3] %v775_v42   ;;  %v783_v44 = vld [vmem:[#allocation0 + $0x260] sm:$0x3]  }
  0x84   :  { %v787_v45 = vld [vmem:[#allocation0 + $0x268] sm:$0x3]   ;;  %1125 = vst [vmem:[%s1733_s1 + $0x93] ss:$8 sm:$0x3] %v779_v43  }
  0x85   :  { %1126 = vst [vmem:[%s1733_s1 + $0x94] ss:$8 sm:$0x3] %v783_v44   ;;  %1127 = vst [vmem:[%s1733_s1 + $0x95] ss:$8 sm:$0x3] %v787_v45  }
  0x86   :  { %v791_v46 = vld [vmem:[#allocation0 + $0x270] sm:$0x3]   ;;  %v795_v47 = vld [vmem:[#allocation0 + $0x278] sm:$0x3]   ;;  %v799_v48 = vld [vmem:[#allocation0 + $0x280] sm:$0x3]  }
  0x87   :  { %1128 = vst [vmem:[%s1733_s1 + $0x96] ss:$8 sm:$0x3] %v791_v46   ;;  %1129 = vst [vmem:[%s1733_s1 + $0x97] ss:$8 sm:$0x3] %v795_v47  }
  0x88   :  { %1130 = vst [vmem:[%s1733_s1 + $0xa0] ss:$8 sm:$0x3] %v799_v48   ;;  %v803_v49 = vld [vmem:[#allocation0 + $0x288] sm:$0x3]  }
  0x89   :  { %v807_v50 = vld [vmem:[#allocation0 + $0x290] sm:$0x3]   ;;  %v811_v51 = vld [vmem:[#allocation0 + $0x298] sm:$0x3]   ;;  %v815_v52 = vld [vmem:[#allocation0 + $0x2a0] sm:$0x3]  }
  0x8a   :  { %1131 = vst [vmem:[%s1733_s1 + $0xa1] ss:$8 sm:$0x3] %v803_v49   ;;  %1132 = vst [vmem:[%s1733_s1 + $0xa2] ss:$8 sm:$0x3] %v807_v50  }
  0x8b   :  { %1133 = vst [vmem:[%s1733_s1 + $0xa3] ss:$8 sm:$0x3] %v811_v51   ;;  %v819_v53 = vld [vmem:[#allocation0 + $0x2a8] sm:$0x3]  }
  0x8c   :  { %v823_v54 = vld [vmem:[#allocation0 + $0x2b0] sm:$0x3]   ;;  %1134 = vst [vmem:[%s1733_s1 + $0xa4] ss:$8 sm:$0x3] %v815_v52  }
  0x8d   :  { %1135 = vst [vmem:[%s1733_s1 + $0xa5] ss:$8 sm:$0x3] %v819_v53   ;;  %1136 = vst [vmem:[%s1733_s1 + $0xa6] ss:$8 sm:$0x3] %v823_v54  }
  0x8e   :  { %v827_v55 = vld [vmem:[#allocation0 + $0x2b8] sm:$0x3]   ;;  %v831_v56 = vld [vmem:[#allocation0 + $0x2c0] sm:$0x3]   ;;  %v835_v57 = vld [vmem:[#allocation0 + $0x2c8] sm:$0x3]  }
  0x8f   :  { %1137 = vst [vmem:[%s1733_s1 + $0xa7] ss:$8 sm:$0x3] %v827_v55   ;;  %1138 = vst [vmem:[%s1733_s1 + $0xb0] ss:$8 sm:$0x3] %v831_v56  }
  0x90   :  { %1139 = vst [vmem:[%s1733_s1 + $0xb1] ss:$8 sm:$0x3] %v835_v57   ;;  %v839_v58 = vld [vmem:[#allocation0 + $0x2d0] sm:$0x3]  }
  0x91   :  { %v843_v59 = vld [vmem:[#allocation0 + $0x2d8] sm:$0x3]   ;;  %v847_v60 = vld [vmem:[#allocation0 + $0x2e0] sm:$0x3]   ;;  %v851_v61 = vld [vmem:[#allocation0 + $0x2e8] sm:$0x3]  }
  0x92   :  { %1140 = vst [vmem:[%s1733_s1 + $0xb2] ss:$8 sm:$0x3] %v839_v58   ;;  %1141 = vst [vmem:[%s1733_s1 + $0xb3] ss:$8 sm:$0x3] %v843_v59  }
  0x93   :  { %1142 = vst [vmem:[%s1733_s1 + $0xb4] ss:$8 sm:$0x3] %v847_v60   ;;  %v855_v62 = vld [vmem:[#allocation0 + $0x2f0] sm:$0x3]  }
  0x94   :  { %v859_v63 = vld [vmem:[#allocation0 + $0x2f8] sm:$0x3]   ;;  %1143 = vst [vmem:[%s1733_s1 + $0xb5] ss:$8 sm:$0x3] %v851_v61  }
  0x95   :  { %1144 = vst [vmem:[%s1733_s1 + $0xb6] ss:$8 sm:$0x3] %v855_v62   ;;  %1145 = vst [vmem:[%s1733_s1 + $0xb7] ss:$8 sm:$0x3] %v859_v63  }

// kernel: discriminate_audio.1
= control target key start
LH: loop header
LB: loop body
LE: loop exit
PB: predicated region body
PF: predicated region fallthrough
CT: control target
= control target key end

     0   :  { %s5530_s0 = inlined_call_operand.vmem [shape: f32[32,256], index: 0, kind: input, shape index: {}]   ;;  %s5531_s1 = inlined_call_operand.vmem [shape: f32[3,3,32,32], index: 1, kind: input, shape index: {}]   ;;  %s5532_s2 = inlined_call_operand.vmem [shape: f32[3,32,256], index: 2, kind: input, shape index: {}]   ;;  %s5533_s3 = inlined_call_operand.vmem [shape: f32[3,32,1], index: 3, kind: input, shape index: {}]   ;;  %s5534_s4 = inlined_call_operand.vmem [shape: f32[3,32,1], index: 4, kind: input, shape index: {}]   ;;  %s5535_s5 = inlined_call_operand.vmem [shape: f32[16,256], index: 5, kind: input, shape index: {}]   ;;  %s5536_s6 = inlined_call_operand.vmem [shape: f32[3,3,16,16], index: 6, kind: input, shape index: {}]   ;;  %s5537_s7 = inlined_call_operand.vmem [shape: f32[3,16,1], index: 7, kind: input, shape index: {}]   ;;  %s5538_s8 = inlined_call_operand.vmem [shape: f32[3,16,1], index: 8, kind: input, shape index: {}]   ;;  %s5539_s9 = inlined_call_operand.vmem [shape: f32[3,16,1], index: 9, kind: input, shape index: {}]   ;;  %s5540_s10 = inlined_call_operand.vmem [shape: f32[32,96], index: 10, kind: input, shape index: {}]   ;;  %s5541_s11 = inlined_call_operand.vmem [shape: f32[32,1], index: 11, kind: input, shape index: {}]   ;;  %s5542_s12 = inlined_call_operand.vmem [shape: f32[1,32], index: 12, kind: input, shape index: {}]   ;;  %s5543_s13 = inlined_call_operand.<no memory space> [shape: f32[1,1], index: 13, kind: input, shape index: {}]   ;;  %s5544_s14 = inlined_call_operand.hbm [shape: f32[1,2], index: 14, kind: output, shape index: {}]  }
   0x1   :  { %v19_v0 = vstv %s5543_s13 }
   0x2   :  { %20 = vst [vmem:[#allocation2] sm:$0x1] %v19_v0 }
   0x3   :  { %v4076_v1 = vld [vmem:[%s5530_s0 + $0x20] sm:$0xff]  ;;  %v4081_v2 = vld [vmem:[%s5530_s0 + $0x30] sm:$0xff]  ;;  %v4100_v7 = vld [vmem:[%s5530_s0 + $0x28] sm:$0xff] }
   0x4   :  { %v4086_v3 = vld [vmem:[%s5530_s0] sm:$0xff]  ;;  %v3720_v4 = vpack.i.bf16 %v4081_v2, %v4076_v1  ;;  %v3463_v5 = vpack.c.bf16 %v4081_v2, %v4076_v1  ;;  %v4095_v6 = vld [vmem:[%s5530_s0 + $0x10] sm:$0xff]  ;;  %v4105_v8 = vld [vmem:[%s5530_s0 + $0x38] sm:$0xff] }
   0x5   :  { %v3710_v9 = vpack.i.bf16 %v4095_v6, %v4086_v3  ;;  %v3459_v10 = vpack.c.bf16 %v4095_v6, %v4086_v3  ;;  %v4114_v11 = vld [vmem:[%s5530_s0 + $0x8] sm:$0xff]  ;;  %v4119_v12 = vld [vmem:[%s5530_s0 + $0x18] sm:$0xff] }
   0x6   :  { %21 = vsyncpa [#allocation4], 0  ;;  %s3988_s30 = smov 1   ;;  %v3725_v13 = vpack.i.bf16 %v4105_v8, %v4100_v7  ;;  %v3715_v14 = vpack.i.bf16 %v4119_v12, %v4114_v11  ;;  %v3989_v15 = vmov 0.0   ;;  %s3990_s0 = smov 127   ;;  %v3457_v16 = vpack.c.bf16 %v4119_v12, %v4114_v11  ;;  %v134_v0 = vld [vmem:[%s5531_s1] sm:$0xff] }
   0x7   :  { %3721 = vrot.lane.b32.xlu1 %v3720_v4, %s3988_s30  ;;  %3711 = vrot.lane.b32.xlu0 %v3710_v9, %s3988_s30  ;;  %v3461_v17 = vpack.c.bf16 %v4105_v8, %v4100_v7  ;;  %v50_v18 = vlaneseq  ;;  %vm138_vm4 = vcmask 261120   ;;  %v135_v11 = vld [vmem:[%s5531_s1 + $0x8] sm:$0xff]  ;;  %v136_v3 = vld [vmem:[%s5531_s1 + $0x10] sm:$0xff] }
   0x8   :  { %215 = vmatprep.mubr.f32.mxu0 %v3989_v15  ;;  %818 = vmatprep.mubr.f32.mxu1 %v3989_v15  ;;  %v137_v1 = vld [vmem:[%s5531_s1 + $0x18] sm:$0xff] }
   0x9   :  { %v4140_v19 = vand.u32 127, %v50_v18 }
   0xb   :  { %3726 = vrot.lane.b32.xlu1 %v3725_v13, %s3988_s30  ;;  %3716 = vrot.lane.b32.xlu0 %v3715_v14, %s3988_s30  ;;  %v52_v20 = vadd.s32 128, %v4140_v19  ;;  %vm111_vm0 = vcmp.lt.s32.totalorder %v4140_v19, 1  ;;  %vm378_vm2 = vcmp.lt.s32.totalorder %v4140_v19, 127  ;;  %vm387_vm5 = vcmp.ge.s32.totalorder %v4140_v19, 127 }
   0xc   :  { %vm77_vm6 = vcmp.lt.s32.totalorder %v4140_v19, 65 }
   0xd   :  { %v4143_v23 = vand.u32 127, %v52_v20 }
   0xf   :  { %3736 = vrot.lane.b32.xlu1 %v3715_v14, %s3990_s0  ;;  %3731 = vrot.lane.b32.xlu0 %v3710_v9, %s3990_s0  ;;  %vm121_vm1 = vcmp.lt.s32.totalorder %v4143_v23, 1  ;;  %vm388_vm3 = vcmp.ge.s32.totalorder %v4143_v23, 127  ;;  %vm78_vm7 = vcmp.lt.s32.totalorder %v4143_v23, 65 }
  0x13   :  { %3746 = vrot.lane.b32.xlu1 %v3725_v13, %s3990_s0  ;;  %3741 = vrot.lane.b32.xlu0 %v3720_v4, %s3990_s0 }
  0x79   :  { %v3722_v21 = vpop.permute.xlu1 %3721  ;;  %v3712_v22 = vpop.permute.xlu0 %3711 }
  0x7a   :  { %v3724_v24 = vunpack.i.h.bf16 %v3722_v21  ;;  %v3723_v25 = vunpack.i.l.bf16 %v3722_v21  ;;  %v3714_v30 = vunpack.i.h.bf16 %v3712_v22  ;;  %v3713_v31 = vunpack.i.l.bf16 %v3712_v22 }
  0x7d   :  { %v3727_v26 = vpop.permute.xlu1 %3726  ;;  %v3717_v29 = vpop.permute.xlu0 %3716 }
  0x7e   :  { %v3729_v27 = vunpack.i.h.bf16 %v3727_v26  ;;  %v3728_v28 = vunpack.i.l.bf16 %v3727_v26  ;;  %v3719_v32 = vunpack.i.h.bf16 %v3717_v29  ;;  %v3718_v33 = vunpack.i.l.bf16 %v3717_v29 }
  0x80   :  { %v114_v34 = vsel %vm111_vm0, %v3723_v25, %v3728_v28  ;;  %v115_v35 = vsel %vm111_vm0, %v3724_v24, %v3729_v27  ;;  %v118_v36 = vsel %vm111_vm0, %v3728_v28, %v3723_v25  ;;  %v119_v37 = vsel %vm111_vm0, %v3729_v27, %v3724_v24  ;;  %v3236_v25 = vld [vmem:[%s5531_s1 + $0x20] sm:$0xff] }
  0x81   :  { %v112_v38 = vsel %vm111_vm0, %v3713_v31, %v3718_v33  ;;  %v113_v39 = vsel %vm111_vm0, %v3714_v30, %v3719_v32  ;;  %v116_v40 = vsel %vm111_vm0, %v3718_v33, %v3713_v31  ;;  %v117_v41 = vsel %vm111_vm0, %v3719_v32, %v3714_v30  ;;  %v3737_v46 = vpop.permute.xlu1 %3736  ;;  %v3732_v47 = vpop.permute.xlu0 %3731  ;;  %v3237_v30 = vld [vmem:[%s5531_s1 + $0x28] sm:$0xff]  ;;  %v3238_v32 = vld [vmem:[%s5531_s1 + $0x30] sm:$0xff]  ;;  %v3239_v33 = vld [vmem:[%s5531_s1 + $0x38] sm:$0xff] }
  0x82   :  { %v127_v42 = vsel %vm121_vm1, %v116_v40, %v112_v38  ;;  %v129_v43 = vsel %vm121_vm1, %v117_v41, %v113_v39  ;;  %v126_v44 = vsel %vm111_vm0, %v112_v38, %v116_v40  ;;  %v128_v45 = vsel %vm111_vm0, %v113_v39, %v117_v41  ;;  %v87_v39 = vld [vmem:[%s5532_s2] sm:$0xff]  ;;  %v88_v40 = vld [vmem:[%s5532_s2 + $0x8] sm:$0xff] }
  0x83   :  { %v3449_v48 = vpack.c.bf16 %v129_v43, %v127_v42  ;;  %v3451_v49 = vpack.c.bf16 %v128_v45, %v126_v44  ;;  %v131_v50 = vsel %vm121_vm1, %v118_v36, %v114_v34  ;;  %v133_v51 = vsel %vm121_vm1, %v119_v37, %v115_v35  ;;  %v89_v45 = vld [vmem:[%s5532_s2 + $0x10] sm:$0xff] }
  0x84   :  { %v3453_v52 = vpack.c.bf16 %v133_v51, %v131_v50  ;;  %v130_v53 = vsel %vm111_vm0, %v114_v34, %v118_v36  ;;  %v132_v54 = vsel %vm111_vm0, %v115_v35, %v119_v37  ;;  %v3739_v55 = vunpack.i.h.bf16 %v3737_v46  ;;  %v3244_v34 = vld [vmem:[%s5531_s1 + $0x40] sm:$0xff]  ;;  %v3245_v35 = vld [vmem:[%s5531_s1 + $0x48] sm:$0xff]  ;;  %v3246_v36 = vld [vmem:[%s5531_s1 + $0x50] sm:$0xff] }
  0x85   :  { %3450 = vmatprep.subr.bf16.mxu0 %v3449_v48  ;;  %v3738_v56 = vunpack.i.l.bf16 %v3737_v46  ;;  %v3734_v57 = vunpack.i.h.bf16 %v3732_v47  ;;  %v3733_v58 = vunpack.i.l.bf16 %v3732_v47  ;;  %v3455_v59 = vpack.c.bf16 %v132_v54, %v130_v53  ;;  %v3747_v12 = vpop.permute.xlu1 %3746  ;;  %v3742_v13 = vpop.permute.xlu0 %3741  ;;  %v3247_v37 = vld [vmem:[%s5531_s1 + $0x58] sm:$0xff]  ;;  %v91_v54 = vld [vmem:[%s5532_s2 + $0x20] sm:$0xff] }
  0x86   :  { %3452 = vmatpush1.bf16.msra.mxu0 %v3451_v49  ;;  %v3748_v20 = vunpack.i.l.bf16 %v3747_v12  ;;  %v3744_v21 = vunpack.i.h.bf16 %v3742_v13  ;;  %v3743_v22 = vunpack.i.l.bf16 %v3742_v13  ;;  %v3991_v38 = vmov 0   ;;  %v90_v46 = vld [vmem:[%s5532_s2 + $0x18] sm:$0xff] }
  0x87   :  { %3454 = vmatprep.subr.bf16.mxu0 %v3453_v52  ;;  %v379_v60 = vsel %vm378_vm2, %v3733_v58, %v3738_v56  ;;  %v380_v61 = vsel %vm378_vm2, %v3734_v57, %v3739_v55  ;;  %v383_v62 = vsel %vm378_vm2, %v3738_v56, %v3733_v58  ;;  %v384_v63 = vsel %vm378_vm2, %v3739_v55, %v3734_v57  ;;  %v92_v55 = vld [vmem:[%s5532_s2 + $0x28] sm:$0xff] }
  0x88   :  { %v394_v4 = vsel %vm388_vm3, %v379_v60, %v383_v62  ;;  %v396_v9 = vsel %vm388_vm3, %v380_v61, %v384_v63  ;;  %v381_v6 = vsel %vm378_vm2, %v3743_v22, %v3748_v20  ;;  %v385_v8 = vsel %vm378_vm2, %v3748_v20, %v3743_v22  ;;  %3750 = vset.pattern.permute.xlu1 %v3991_v38 }
  0x89   :  { %v3465_v14 = vpack.c.bf16 %v396_v9, %v394_v4  ;;  %v393_v2 = vsel %vm387_vm5, %v383_v62, %v379_v60  ;;  %v397_v28 = vsel %vm387_vm5, %v385_v8, %v381_v6  ;;  %3751 = vset.pattern.permute.xlu0 %v3991_v38 }
  0x8a   :  { %3456 = vmatpush1.bf16.msra.mxu0 %v3455_v59 }
  0x8b   :  { %3458 = vmatprep.subr.bf16.mxu0 %v3457_v16  ;;  %v3749_v16 = vunpack.i.h.bf16 %v3747_v12 }
  0x8d   :  { %3232 = vmatmul.mubr.msk.f32.vlgmr.msra.gmra.mrb[0].mxu0 %vm138_vm4, %v134_v0  ;;  %v382_v7 = vsel %vm378_vm2, %v3744_v21, %v3749_v16  ;;  %v94_v0 = vld [vmem:[%s5532_s2 + $0x38] sm:$0xff] }
  0x8e   :  { %221 = vmatprep.mubr.f32.mxu0 %v3989_v15  ;;  %3460 = vmatpush1.bf16.msra.mxu0 %v3459_v10  ;;  %v386_v10 = vsel %vm378_vm2, %v3749_v16, %v3744_v21 }
  0x8f   :  { %3462 = vmatprep.subr.bf16.mxu0 %v3461_v17  ;;  %v398_v17 = vsel %vm388_vm3, %v381_v6, %v385_v8  ;;  %v400_v24 = vsel %vm388_vm3, %v382_v7, %v386_v10  ;;  %v399_v29 = vsel %vm387_vm5, %v386_v10, %v382_v7 }
  0x90   :  { %v3469_v27 = vpack.c.bf16 %v400_v24, %v398_v17  ;;  %v3471_v31 = vpack.c.bf16 %v399_v29, %v397_v28 }
  0x91   :  { %3233 = vmatmul.mubr.msk.f32.gmra.mrb[2].mxu0 %vm138_vm4, %v135_v11 }
  0x92   :  { %227 = vmatprep.mubr.f32.mxu0 %v3989_v15  ;;  %3464 = vmatpush1.bf16.msra.mxu0 %v3463_v5  ;;  %v395_v5 = vsel %vm387_vm5, %v384_v63, %v380_v61  ;;  %v93_v63 = vld [vmem:[%s5532_s2 + $0x30] sm:$0xff] }
  0x93   :  { %3466 = vmatprep.subr.bf16.mxu0 %v3465_v14  ;;  %v3467_v26 = vpack.c.bf16 %v395_v5, %v393_v2 }
  0x95   :  { %3234 = vmatmul.mubr.msk.f32.gmra.mrb[4].mxu0 %vm138_vm4, %v136_v3  ;;  %v515_v3 = vld [vmem:[%s5533_s3] sm:$0xff] }
  0x96   :  { %233 = vmatprep.mubr.f32.mxu0 %v3989_v15 }
  0x99   :  { %3235 = vmatmul.mubr.msk.f32.gmra.mrb[6].mxu0 %vm138_vm4, %v137_v1 }
  0x9a   :  { %329 = vmatprep.mubr.f32.mxu0 %v3989_v15 }
  0x9d   :  { %3240 = vmatmul.mubr.msk.f32.vlgmr.msra.gmra.mrb[0].mxu0 %vm138_vm4, %v3236_v25 }
  0x9e   :  { %335 = vmatprep.mubr.f32.mxu0 %v3989_v15  ;;  %3468 = vmatpush1.bf16.msra.mxu0 %v3467_v26 }
  0x9f   :  { %3470 = vmatprep.subr.bf16.mxu0 %v3469_v27 }
  0xa1   :  { %3241 = vmatmul.mubr.msk.f32.gmra.mrb[2].mxu0 %vm138_vm4, %v3237_v30 }
  0xa2   :  { %341 = vmatprep.mubr.f32.mxu0 %v3989_v15  ;;  %3472 = vmatpush1.bf16.msra.mxu0 %v3471_v31 }
  0xa5   :  { %3242 = vmatmul.mubr.msk.f32.gmra.mrb[4].mxu0 %vm138_vm4, %v3238_v32 }
  0xa6   :  { %347 = vmatprep.mubr.f32.mxu0 %v3989_v15 }
  0xa9   :  { %3243 = vmatmul.mubr.msk.f32.gmra.mrb[6].mxu0 %vm138_vm4, %v3239_v33 }
  0xaa   :  { %482 = vmatprep.mubr.f32.mxu0 %v3989_v15 }
  0xad   :  { %3248 = vmatmul.mubr.msk.f32.vlgmr.msra.gmra.mrb[0].mxu0 %vm138_vm4, %v3244_v34 }
  0xae   :  { %488 = vmatprep.mubr.f32.mxu0 %v3989_v15 }
  0xb1   :  { %3249 = vmatmul.mubr.msk.f32.gmra.mrb[2].mxu0 %vm138_vm4, %v3245_v35 }
  0xb2   :  { %494 = vmatprep.mubr.f32.mxu0 %v3989_v15 }
  0xb5   :  { %3250 = vmatmul.mubr.msk.f32.gmra.mrb[4].mxu0 %vm138_vm4, %v3246_v36 }
  0xb6   :  { %500 = vmatprep.mubr.f32.mxu0 %v3989_v15 }
  0xb9   :  { %3251 = vmatmul.mubr.msk.f32.gmra.mrb[6].mxu0 %vm138_vm4, %v3247_v37 }
  0xba   :  { %1411 = vmatprep.mubr.f32.mxu0 %v3989_v15 }
 0x180   :  { %v484_v41 = vpop.f32.mrb[0].mxu0 }
 0x181   :  { %v3595_v42 = vadd.f32 %v484_v41, %v87_v39  ;;  %v486_v43 = vpop.f32.mrb[1].mxu0 }
 0x182   :  { %v3596_v44 = vadd.f32 %v486_v43, %v88_v40 }
 0x183   :  { %v527_v47 = vsel %vm77_vm6, %v3595_v42, 0.0 }
 0x184   :  { %v490_v48 = vpop.f32.mrb[2].mxu0  ;;  %v528_v49 = vsel %vm78_vm7, %v3596_v44, 0.0 }
 0x185   :  { %v3597_v50 = vadd.f32 %v490_v48, %v89_v45  ;;  %v492_v51 = vpop.f32.mrb[3].mxu0  ;;  %v535_v52 = vadd.f32 %v528_v49, %v527_v47 }
 0x186   :  { %v3598_v53 = vadd.f32 %v492_v51, %v90_v46 }
 0x187   :  { %536 = vadd.xlane.f32.xlu0 %v535_v52  ;;  %v529_v56 = vsel %vm77_vm6, %v3597_v50, 0.0  ;;  %v519_v52 = vld [vmem:[%s5534_s4] sm:$0xff] }
 0x188   :  { %v496_v57 = vpop.f32.mrb[4].mxu0  ;;  %v530_v58 = vsel %vm78_vm7, %v3598_v53, 0.0 }
 0x189   :  { %v3599_v59 = vadd.f32 %v496_v57, %v91_v54  ;;  %v498_v60 = vpop.f32.mrb[5].mxu0  ;;  %v538_v61 = vadd.f32 %v530_v58, %v529_v56  ;;  %v517_v54 = vld [vmem:[%s5533_s3 + $0x10] sm:$0xff]  ;;  %v518_v56 = vld [vmem:[%s5533_s3 + $0x18] sm:$0xff] }
 0x18a   :  { %v3600_v62 = vadd.f32 %v498_v60, %v92_v55  ;;  %v516_v55 = vld [vmem:[%s5533_s3 + $0x8] sm:$0xff]  ;;  %v521_v57 = vld [vmem:[%s5534_s4 + $0x10] sm:$0xff]  ;;  %v522_v58 = vld [vmem:[%s5534_s4 + $0x18] sm:$0xff] }
 0x18b   :  { %539 = vadd.xlane.f32.xlu1 %v538_v61  ;;  %v531_v4 = vsel %vm77_vm6, %v3599_v59, 0.0 }
 0x18c   :  { %v502_v9 = vpop.f32.mrb[6].mxu0  ;;  %v532_v11 = vsel %vm78_vm7, %v3600_v62, 0.0 }
 0x18d   :  { %v3601_v12 = vadd.f32 %v502_v9, %v93_v63  ;;  %v504_v13 = vpop.f32.mrb[7].mxu0  ;;  %v541_v14 = vadd.f32 %v532_v11, %v531_v4 }
 0x18e   :  { %v3602_v16 = vadd.f32 %v504_v13, %v94_v0 }
 0x18f   :  { %542 = vadd.xlane.f32.xlu0 %v541_v14  ;;  %v533_v20 = vsel %vm77_vm6, %v3601_v12, 0.0 }
 0x190   :  { %v534_v21 = vsel %vm78_vm7, %v3602_v16, 0.0 }
 0x191   :  { %v544_v22 = vadd.f32 %v534_v21, %v533_v20 }
 0x193   :  { %545 = vadd.xlane.f32.xlu0 %v544_v22 }
 0x19c   :  { %610 = vperm.xlu1 %3750, %v515_v3  }
 0x214   :  { %v537_v6 = vpop.xlane.xlu0 %536 }
 0x215   :  { %v548_v7 = vmul.f32 0.0076923077, %v537_v6 }
 0x217   :  { %v4328_v8 = vsub.f32 %v3595_v42, %v548_v7  ;;  %v4330_v10 = vsub.f32 %v3596_v44, %v548_v7 }
 0x218   :  { %v540_v1 = vpop.xlane.xlu1 %539 }
 0x219   :  { %v549_v2 = vmul.f32 0.0076923077, %v540_v1  ;;  %v560_v5 = vsel %vm77_vm6, %v4328_v8, 0.0  ;;  %v561_v17 = vsel %vm78_vm7, %v4330_v10, 0.0 }
 0x21a   :  { %v568_v24 = vmul.f32 %v560_v5, %v560_v5  ;;  %v569_v25 = vmul.f32 %v561_v17, %v561_v17 }
 0x21b   :  { %v4338_v26 = vsub.f32 %v3597_v50, %v549_v2  ;;  %v4340_v27 = vsub.f32 %v3598_v53, %v549_v2  ;;  %v520_v53 = vld [vmem:[%s5534_s4 + $0x8] sm:$0xff] }
 0x21c   :  { %v543_v28 = vpop.xlane.xlu0 %542  ;;  %v576_v29 = vadd.f32 %v569_v25, %v568_v24 }
 0x21d   :  { %v550_v30 = vmul.f32 0.0076923077, %v543_v28  ;;  %v562_v31 = vsel %vm77_vm6, %v4338_v26, 0.0  ;;  %v563_v32 = vsel %vm78_vm7, %v4340_v27, 0.0 }
 0x21e   :  { %577 = vadd.xlane.f32.xlu1 %v576_v29  ;;  %v570_v33 = vmul.f32 %v562_v31, %v562_v31  ;;  %v571_v34 = vmul.f32 %v563_v32, %v563_v32 }
 0x21f   :  { %v4348_v35 = vsub.f32 %v3599_v59, %v550_v30  ;;  %v4350_v36 = vsub.f32 %v3600_v62, %v550_v30  ;;  %v611_v59 = vpop.permute.xlu1 %610 }
 0x220   :  { %v546_v37 = vpop.xlane.xlu0 %545  ;;  %v579_v38 = vadd.f32 %v571_v34, %v570_v33 }
 0x221   :  { %v551_v39 = vmul.f32 0.0076923077, %v546_v37  ;;  %v564_v40 = vsel %vm77_vm6, %v4348_v35, 0.0  ;;  %v565_v41 = vsel %vm78_vm7, %v4350_v36, 0.0 }
 0x222   :  { %580 = vadd.xlane.f32.xlu0 %v579_v38  ;;  %v572_v42 = vmul.f32 %v564_v40, %v564_v40  ;;  %v573_v43 = vmul.f32 %v565_v41, %v565_v41 }
 0x223   :  { %v4358_v44 = vsub.f32 %v3601_v12, %v551_v39  ;;  %v4360_v45 = vsub.f32 %v3602_v16, %v551_v39 }
 0x224   :  { %v582_v46 = vadd.f32 %v573_v43, %v572_v42 }
 0x225   :  { %v566_v47 = vsel %vm77_vm6, %v4358_v44, 0.0  ;;  %v567_v48 = vsel %vm78_vm7, %v4360_v45, 0.0 }
 0x226   :  { %583 = vadd.xlane.f32.xlu1 %v582_v46  ;;  %v574_v49 = vmul.f32 %v566_v47, %v566_v47  ;;  %v575_v50 = vmul.f32 %v567_v48, %v567_v48 }
 0x228   :  { %v585_v51 = vadd.f32 %v575_v50, %v574_v49 }
 0x22a   :  { %586 = vadd.xlane.f32.xlu0 %v585_v51 }
 0x237   :  { %638 = vperm.xlu1 %3750, %v519_v52  }
 0x23b   :  { %643 = vperm.xlu1 %3750, %v520_v53  }
 0x23f   :  { %620 = vperm.xlu1 %3750, %v517_v54  }
 0x240   :  { %615 = vperm.xlu0 %3751, %v516_v55  }
 0x243   :  { %625 = vperm.xlu1 %3750, %v518_v56  }
 0x247   :  { %648 = vperm.xlu1 %3750, %v521_v57  }
 0x24b   :  { %653 = vperm.xlu1 %3750, %v522_v58  }
 0x2ab   :  { %v578_v60 = vpop.xlane.xlu1 %577 }
 0x2ac   :  { %v588_v61 = vmul.f32 0.0076923077, %v578_v60 }
 0x2ae   :  { %v592_v62 = vadd.f32 1e-05, %v588_v61 }
 0x2af   :  { %v581_v63 = vpop.xlane.xlu0 %580 }
 0x2b0   :  { %3892 = vrsqrt.f32 %v592_v62  ;;  %v589_v0 = vmul.f32 0.0076923077, %v581_v63 }
 0x2b2   :  { %v593_v4 = vadd.f32 1e-05, %v589_v0 }
 0x2b3   :  { %v584_v9 = vpop.xlane.xlu1 %583 }
 0x2b4   :  { %3894 = vrsqrt.f32 %v593_v4  ;;  %v590_v11 = vmul.f32 0.0076923077, %v584_v9 }
 0x2b6   :  { %v594_v12 = vadd.f32 1e-05, %v590_v11 }
 0x2b7   :  { %v639_v13 = vpop.permute.xlu1 %638  ;;  %v587_v14 = vpop.xlane.xlu0 %586 }
 0x2b8   :  { %3896 = vrsqrt.f32 %v594_v12  ;;  %v591_v16 = vmul.f32 0.0076923077, %v587_v14 }
 0x2ba   :  { %v3893_v20 = vpop.eup %3892  ;;  %v595_v21 = vadd.f32 1e-05, %v591_v16 }
 0x2bb   :  { %v600_v22 = vmul.f32 %v3893_v20, %v4328_v8  ;;  %v601_v3 = vmul.f32 %v3893_v20, %v4330_v10  ;;  %v644_v6 = vpop.permute.xlu1 %643 }
 0x2bc   :  { %3898 = vrsqrt.f32 %v595_v21 }
 0x2bd   :  { %v628_v7 = vmul.f32 %v611_v59, %v600_v22  ;;  %v629_v1 = vmul.f32 %v611_v59, %v601_v3 }
 0x2be   :  { %v3895_v2 = vpop.eup %3894 }
 0x2bf   :  { %v656_v5 = vadd.f32 %v639_v13, %v628_v7  ;;  %v657_v17 = vadd.f32 %v639_v13, %v629_v1  ;;  %v621_v24 = vpop.permute.xlu1 %620  ;;  %v602_v25 = vmul.f32 %v3895_v2, %v4338_v26  ;;  %v603_v28 = vmul.f32 %v3895_v2, %v4340_v27  ;;  %v616_v29 = vpop.permute.xlu0 %615  ;;  %v4454_v2 = vld [vmem:[%s5535_s5] sm:$0xff] }
 0x2c1   :  { %vm664_vm8 = vcmp.ge.f32.partialorder %v656_v5, 0.0  ;;  %v672_v30 = vmul.f32 0.01, %v656_v5  ;;  %v630_v32 = vmul.f32 %v616_v29, %v602_v25  ;;  %v631_v8 = vmul.f32 %v616_v29, %v603_v28  ;;  %v1838_v29 = vld [vmem:[%s5537_s7] sm:$0xff] }
 0x2c2   :  { %v3897_v31 = vpop.eup %3896  ;;  %v673_v33 = vmul.f32 0.01, %v657_v17  ;;  %vm665_vm9 = vcmp.ge.f32.partialorder %v657_v17, 0.0 }
 0x2c3   :  { %v604_v10 = vmul.f32 %v3897_v31, %v4348_v35  ;;  %v605_v34 = vmul.f32 %v3897_v31, %v4350_v36  ;;  %v626_v37 = vpop.permute.xlu1 %625  ;;  %v658_v38 = vadd.f32 %v644_v6, %v630_v32  ;;  %v659_v39 = vadd.f32 %v644_v6, %v631_v8 }
 0x2c4   :  { %v4395_v40 = vsel %vm664_vm8, %v656_v5, %v672_v30  ;;  %v4402_v48 = vsel %vm665_vm9, %v657_v17, %v673_v33  ;;  %v4459_v5 = vld [vmem:[%s5535_s5 + $0x10] sm:$0xff]  ;;  %v4464_v17 = vld [vmem:[%s5535_s5 + $0x8] sm:$0xff]  ;;  %vm4522_vm8 = vmpackc.low %vm78_vm7, %vm78_vm7 }
 0x2c5   :  { %v632_v26 = vmul.f32 %v621_v24, %v604_v10  ;;  %v633_v41 = vmul.f32 %v621_v24, %v605_v34  ;;  %v674_v42 = vmul.f32 0.01, %v658_v38  ;;  %v675_v43 = vmul.f32 0.01, %v659_v39  ;;  %v4469_v24 = vld [vmem:[%s5535_s5 + $0x18] sm:$0xff]  ;;  %v1839_v30 = vld [vmem:[%s5537_s7 + $0x8] sm:$0xff]  ;;  %vm4537_vm9 = vmpackc.low %vm77_vm6, %vm77_vm6 }
 0x2c6   :  { %v3899_v27 = vpop.eup %3898  ;;  %vm666_vm10 = vcmp.ge.f32.partialorder %v658_v38, 0.0  ;;  %vm667_vm11 = vcmp.ge.f32.partialorder %v659_v39, 0.0  ;;  %v688_v36 = vsel %vm77_vm6, %v4395_v40, 0.0  ;;  %v689_v63 = vsel %vm78_vm7, %v4402_v48, 0.0 }
 0x2c7   :  { %v606_v46 = vmul.f32 %v3899_v27, %v4358_v44  ;;  %v607_v47 = vmul.f32 %v3899_v27, %v4360_v45  ;;  %v649_v35 = vpop.permute.xlu1 %648  ;;  %v4404_v51 = vsel %vm666_vm10, %v658_v38, %v674_v42  ;;  %v4406_v52 = vsel %vm667_vm11, %v659_v39, %v675_v43 }
 0x2c8   :  { %v660_v49 = vadd.f32 %v649_v35, %v632_v26  ;;  %v661_v50 = vadd.f32 %v649_v35, %v633_v41  ;;  %v690_v44 = vsel %vm77_vm6, %v4404_v51, 0.0  ;;  %v3484_v45 = vpack.c.bf16 %v4404_v51, %v4395_v40 }
 0x2c9   :  { %v634_v53 = vmul.f32 %v626_v37, %v606_v46  ;;  %v635_v54 = vmul.f32 %v626_v37, %v607_v47  ;;  %v3752_v58 = vpack.i.bf16 %v690_v44, %v688_v36  ;;  %v3481_v59 = vpack.c.bf16 %v4406_v52, %v4402_v48 }
 0x2ca   :  { %vm668_vm12 = vcmp.ge.f32.partialorder %v660_v49, 0.0  ;;  %vm669_vm13 = vcmp.ge.f32.partialorder %v661_v50, 0.0  ;;  %v676_v55 = vmul.f32 0.01, %v660_v49  ;;  %v677_v56 = vmul.f32 0.01, %v661_v50 }
 0x2cb   :  { %v654_v57 = vpop.permute.xlu1 %653  ;;  %v691_v62 = vsel %vm78_vm7, %v4406_v52, 0.0  ;;  %3753 = vrot.lane.b32.xlu1 %v3752_v58, %s3988_s30  ;;  %v3792_v25 = vpack.i.bf16 %v4459_v5, %v4454_v2  ;;  %v3797_v28 = vpack.i.bf16 %v4469_v24, %v4464_v17  ;;  %v3261_v52 = vld [vmem:[%s5531_s1 + $0x68] sm:$0xff]  ;;  %vm5545_vm10 = vcmask 130048  }
 0x2cc   :  { %v662_v60 = vadd.f32 %v654_v57, %v634_v53  ;;  %v663_v61 = vadd.f32 %v654_v57, %v635_v54  ;;  %v4422_v0 = vsel %vm668_vm12, %v660_v49, %v676_v55  ;;  %v4424_v4 = vsel %vm669_vm13, %v661_v50, %v677_v56 }
 0x2cd   :  { %v3757_v12 = vpack.i.bf16 %v691_v62, %v689_v63  ;;  %v692_v14 = vsel %vm77_vm6, %v4422_v0, 0.0  ;;  %v693_v20 = vsel %vm78_vm7, %v4424_v4, 0.0 }
 0x2ce   :  { %vm670_vm14 = vcmp.ge.f32.partialorder %v662_v60, 0.0  ;;  %vm671_vm15 = vcmp.ge.f32.partialorder %v663_v61, 0.0  ;;  %v678_v9 = vmul.f32 0.01, %v662_v60  ;;  %v679_v11 = vmul.f32 0.01, %v663_v61 }
 0x2cf   :  { %3758 = vrot.lane.b32.xlu1 %v3757_v12, %s3988_s30 }
 0x2d0   :  { %v4426_v13 = vsel %vm670_vm14, %v662_v60, %v678_v9  ;;  %v4431_v16 = vsel %vm671_vm15, %v663_v61, %v679_v11 }
 0x2d1   :  { %v694_v21 = vsel %vm77_vm6, %v4426_v13, 0.0  ;;  %v3490_v22 = vpack.c.bf16 %v4426_v13, %v4422_v0  ;;  %v695_v3 = vsel %vm78_vm7, %v4431_v16, 0.0  ;;  %v3487_v6 = vpack.c.bf16 %v4431_v16, %v4424_v4  ;;  %v3262_v4 = vld [vmem:[%s5531_s1 + $0x70] sm:$0xff] }
 0x2d2   :  { %v3762_v7 = vpack.i.bf16 %v694_v21, %v692_v14  ;;  %v3767_v1 = vpack.i.bf16 %v695_v3, %v693_v20 }
 0x2d4   :  { %3763 = vrot.lane.b32.xlu0 %v3762_v7, %s3988_s30  ;;  %3768 = vrot.lane.b32.xlu1 %v3767_v1, %s3988_s30 }
 0x2d8   :  { %3773 = vrot.lane.b32.xlu0 %v3752_v58, %s3990_s0  ;;  %3778 = vrot.lane.b32.xlu1 %v3757_v12, %s3990_s0 }
 0x2dc   :  { %3783 = vrot.lane.b32.xlu0 %v3762_v7, %s3990_s0  ;;  %3788 = vrot.lane.b32.xlu1 %v3767_v1, %s3990_s0  ;;  %v3260_v1 = vld [vmem:[%s5531_s1 + $0x60] sm:$0xff]  ;;  %v3310_v7 = vld [vmem:[%s5531_s1 + $0xd0] sm:$0xff] }
 0x2e0   :  { %3793 = vrot.lane.b32.xlu0 %v3792_v25, %s3988_s30  ;;  %3798 = vrot.lane.b32.xlu1 %v3797_v28, %s3988_s30 }
 0x2e4   :  { %3803 = vrot.lane.b32.xlu0 %v3792_v25, %s3990_s0  ;;  %3808 = vrot.lane.b32.xlu1 %v3797_v28, %s3990_s0  ;;  %v3311_v25 = vld [vmem:[%s5531_s1 + $0xd8] sm:$0xff] }
 0x2e8   :  { %1944 = vperm.xlu0 %3751, %v1838_v29   ;;  %1949 = vperm.xlu1 %3750, %v1839_v30  }
 0x33d   :  { %v3754_v31 = vpop.permute.xlu1 %3753 }
 0x33e   :  { %v3756_v8 = vunpack.i.h.bf16 %v3754_v31  ;;  %v3755_v33 = vunpack.i.l.bf16 %v3754_v31 }
 0x341   :  { %v3759_v32 = vpop.permute.xlu1 %3758 }
 0x342   :  { %v3761_v10 = vunpack.i.h.bf16 %v3759_v32  ;;  %v3760_v34 = vunpack.i.l.bf16 %v3759_v32 }
 0x344   :  { %v721_v38 = vsel %vm111_vm0, %v3755_v33, %v3760_v34  ;;  %v722_v39 = vsel %vm111_vm0, %v3756_v8, %v3761_v10  ;;  %v725_v26 = vsel %vm111_vm0, %v3760_v34, %v3755_v33  ;;  %v726_v41 = vsel %vm111_vm0, %v3761_v10, %v3756_v8 }
 0x345   :  { %v730_v46 = vsel %vm121_vm1, %v725_v26, %v721_v38  ;;  %v732_v47 = vsel %vm121_vm1, %v726_v41, %v722_v39  ;;  %v729_v50 = vsel %vm111_vm0, %v721_v38, %v725_v26  ;;  %v731_v53 = vsel %vm111_vm0, %v722_v39, %v726_v41 }
 0x346   :  { %v3764_v37 = vpop.permute.xlu0 %3763  ;;  %v3769_v27 = vpop.permute.xlu1 %3768  ;;  %v3473_v49 = vpack.c.bf16 %v732_v47, %v730_v46  ;;  %v3475_v54 = vpack.c.bf16 %v731_v53, %v729_v50 }
 0x347   :  { %v3766_v42 = vunpack.i.h.bf16 %v3764_v37  ;;  %v3765_v43 = vunpack.i.l.bf16 %v3764_v37  ;;  %v3771_v35 = vunpack.i.h.bf16 %v3769_v27  ;;  %v3770_v36 = vunpack.i.l.bf16 %v3769_v27 }
 0x348   :  { %3474 = vmatprep.subr.bf16.mxu1 %v3473_v49 }
 0x349   :  { %v723_v55 = vsel %vm111_vm0, %v3765_v43, %v3770_v36  ;;  %v724_v56 = vsel %vm111_vm0, %v3766_v42, %v3771_v35  ;;  %v727_v57 = vsel %vm111_vm0, %v3770_v36, %v3765_v43  ;;  %v728_v60 = vsel %vm111_vm0, %v3771_v35, %v3766_v42  ;;  %3476 = vmatpush1.bf16.msra.mxu1 %v3475_v54  ;;  %v3268_v36 = vld [vmem:[%s5531_s1 + $0x80] sm:$0xff] }
 0x34a   :  { %v3774_v44 = vpop.permute.xlu0 %3773  ;;  %v3779_v58 = vpop.permute.xlu1 %3778  ;;  %v734_v61 = vsel %vm121_vm1, %v727_v57, %v723_v55  ;;  %v736_v9 = vsel %vm121_vm1, %v728_v60, %v724_v56  ;;  %v733_v11 = vsel %vm111_vm0, %v723_v55, %v727_v57  ;;  %v735_v21 = vsel %vm111_vm0, %v724_v56, %v728_v60 }
 0x34b   :  { %v3776_v62 = vunpack.i.h.bf16 %v3774_v44  ;;  %v3775_v63 = vunpack.i.l.bf16 %v3774_v44  ;;  %v3781_v12 = vunpack.i.h.bf16 %v3779_v58  ;;  %v3780_v14 = vunpack.i.l.bf16 %v3779_v58  ;;  %v3269_v58 = vld [vmem:[%s5531_s1 + $0x88] sm:$0xff] }
 0x34c   :  { %v3477_v20 = vpack.c.bf16 %v736_v9, %v734_v61  ;;  %v3479_v3 = vpack.c.bf16 %v735_v21, %v733_v11  ;;  %v3285_v21 = vld [vmem:[%s5531_s1 + $0xa8] sm:$0xff] }
 0x34d   :  { %v981_v28 = vsel %vm378_vm2, %v3775_v63, %v3780_v14  ;;  %v982_v29 = vsel %vm378_vm2, %v3776_v62, %v3781_v12  ;;  %v985_v30 = vsel %vm378_vm2, %v3780_v14, %v3775_v63  ;;  %v986_v48 = vsel %vm378_vm2, %v3781_v12, %v3776_v62  ;;  %v3270_v62 = vld [vmem:[%s5531_s1 + $0x90] sm:$0xff]  ;;  %v3271_v63 = vld [vmem:[%s5531_s1 + $0x98] sm:$0xff]  ;;  %v3284_v12 = vld [vmem:[%s5531_s1 + $0xa0] sm:$0xff] }
 0x34e   :  { %3478 = vmatprep.subr.bf16.mxu1 %v3477_v20  ;;  %v992_v31 = vsel %vm388_vm3, %v982_v29, %v986_v48  ;;  %v3789_v40 = vpop.permute.xlu1 %3788  ;;  %v3784_v51 = vpop.permute.xlu0 %3783  ;;  %v989_v27 = vsel %vm387_vm5, %v985_v30, %v981_v28  ;;  %v991_v42 = vsel %vm387_vm5, %v986_v48, %v982_v29  ;;  %v3533_v20 = vpack.c.bf16 %v4469_v24, %v4464_v17  ;;  %v3286_v17 = vld [vmem:[%s5531_s1 + $0xb0] sm:$0xff] }
 0x34f   :  { %3480 = vmatpush1.bf16.msra.mxu1 %v3479_v3  ;;  %v3791_v16 = vunpack.i.h.bf16 %v3789_v40  ;;  %v3790_v32 = vunpack.i.l.bf16 %v3789_v40  ;;  %v3785_v8 = vunpack.i.l.bf16 %v3784_v51  ;;  %v3495_v53 = vpack.c.bf16 %v991_v42, %v989_v27  ;;  %v3287_v40 = vld [vmem:[%s5531_s1 + $0xb8] sm:$0xff] }
 0x350   :  { %3483 = vmatprep.subr.msk.bf16.mxu1 %vm4522_vm8, %v3481_v59  ;;  %v990_v59 = vsel %vm388_vm3, %v981_v28, %v985_v30 }
 0x351   :  { %v983_v38 = vsel %vm378_vm2, %v3785_v8, %v3790_v32  ;;  %v987_v26 = vsel %vm378_vm2, %v3790_v32, %v3785_v8 }
 0x352   :  { %3264 = vmatmul.mubr.msk.f32.vlgmr.msra.gmra.mrb[0].mxu1 %vm138_vm4, %v3260_v1  ;;  %v3799_v33 = vpop.permute.xlu1 %3798  ;;  %v3794_v10 = vpop.permute.xlu0 %3793  ;;  %v994_v49 = vsel %vm388_vm3, %v983_v38, %v987_v26  ;;  %v993_v56 = vsel %vm387_vm5, %v987_v26, %v983_v38 }
 0x353   :  { %3486 = vmatpush1.bf16.msk.msra.mxu1 %vm4537_vm9, %v3484_v45  ;;  %824 = vmatprep.mubr.f32.mxu1 %v3989_v15  ;;  %v3493_v45 = vpack.c.bf16 %v992_v31, %v990_v59  ;;  %v3801_v34 = vunpack.i.h.bf16 %v3799_v33  ;;  %v3800_v0 = vunpack.i.l.bf16 %v3799_v33  ;;  %v3796_v13 = vunpack.i.h.bf16 %v3794_v10 }
 0x354   :  { %3489 = vmatprep.subr.msk.bf16.mxu1 %vm4522_vm8, %v3487_v6  ;;  %v3786_v6 = vunpack.i.h.bf16 %v3784_v51  ;;  %v3795_v37 = vunpack.i.l.bf16 %v3794_v10  ;;  %v3343_v10 = vld [vmem:[%s5536_s6 + $0x18] sm:$0xff] }
 0x355   :  { %v1849_v46 = vsel %vm111_vm0, %v3796_v13, %v3801_v34  ;;  %v1851_v35 = vsel %vm111_vm0, %v3801_v34, %v3796_v13  ;;  %v3346_v34 = vld [vmem:[%s5536_s6 + $0x20] sm:$0xff] }
 0x356   :  { %3265 = vmatmul.mubr.msk.f32.gmra.mrb[2].mxu1 %vm138_vm4, %v3261_v52  ;;  %v984_v39 = vsel %vm378_vm2, %v3786_v6, %v3791_v16  ;;  %v988_v41 = vsel %vm378_vm2, %v3791_v16, %v3786_v6  ;;  %v1848_v43 = vsel %vm111_vm0, %v3795_v37, %v3800_v0  ;;  %v1850_v47 = vsel %vm111_vm0, %v3800_v0, %v3795_v37  ;;  %v3809_v3 = vpop.permute.xlu1 %3808  ;;  %v3804_v1 = vpop.permute.xlu0 %3803  ;;  %v1857_v6 = vld [vmem:[%s5536_s6 + $0x8] sm:$0xff] }
 0x357   :  { %3492 = vmatpush1.bf16.msk.msra.mxu1 %vm4537_vm9, %v3490_v22  ;;  %830 = vmatprep.mubr.f32.mxu1 %v3989_v15  ;;  %v3263_v22 = vld [vmem:[%s5531_s1 + $0x78] sm:$0xff]  ;;  %v996_v50 = vsel %vm388_vm3, %v984_v39, %v988_v41  ;;  %v1853_v54 = vsel %vm121_vm1, %v1850_v47, %v1848_v43  ;;  %v1855_v44 = vsel %vm121_vm1, %v1851_v35, %v1849_v46  ;;  %v3811_v28 = vunpack.i.h.bf16 %v3809_v3  ;;  %v3347_v0 = vld [vmem:[%s5536_s6 + $0x28] sm:$0xff] }
 0x358   :  { %3494 = vmatprep.subr.bf16.mxu1 %v3493_v45  ;;  %v3497_v55 = vpack.c.bf16 %v996_v50, %v994_v49  ;;  %v995_v57 = vsel %vm387_vm5, %v988_v41, %v984_v39  ;;  %v3529_v60 = vpack.c.bf16 %v1855_v44, %v1853_v54  ;;  %v1852_v9 = vsel %vm111_vm0, %v1848_v43, %v1850_v47 }
 0x359   :  { %v3499_v61 = vpack.c.bf16 %v995_v57, %v993_v56  ;;  %v1854_v11 = vsel %vm111_vm0, %v1849_v46, %v1851_v35  ;;  %v3810_v29 = vunpack.i.l.bf16 %v3809_v3  ;;  %v3806_v30 = vunpack.i.h.bf16 %v3804_v1  ;;  %v2152_v56 = vld [vmem:[%s5538_s8] sm:$0xff] }
 0x35a   :  { %3266 = vmatmul.mubr.msk.f32.gmra.mrb[4].mxu1 %vm138_vm4, %v3262_v4  ;;  %v3531_v14 = vpack.c.bf16 %v1854_v11, %v1852_v9  ;;  %v3805_v48 = vunpack.i.l.bf16 %v3804_v1  ;;  %v1856_v4 = vld [vmem:[%s5536_s6] sm:$0xff]  ;;  %v3535_v16 = vpack.c.bf16 %v4459_v5, %v4454_v2  ;;  %v3342_v2 = vld [vmem:[%s5536_s6 + $0x10] sm:$0xff] }
 0x35b   :  { %836 = vmatprep.mubr.f32.mxu1 %v3989_v15  ;;  %v2055_v24 = vsel %vm378_vm2, %v3806_v30, %v3811_v28  ;;  %v2057_v52 = vsel %vm378_vm2, %v3811_v28, %v3806_v30  ;;  %v2154_v57 = vld [vmem:[%s5539_s9] sm:$0xff]  ;;  %v2153_v30 = vld [vmem:[%s5538_s8 + $0x8] sm:$0xff] }
 0x35c   :  { %v2054_v59 = vsel %vm378_vm2, %v3805_v48, %v3810_v29  ;;  %v2056_v31 = vsel %vm378_vm2, %v3810_v29, %v3805_v48  ;;  %v2061_v45 = vsel %vm388_vm3, %v2055_v24, %v2057_v52  ;;  %v2060_v33 = vsel %vm387_vm5, %v2057_v52, %v2055_v24 }
 0x35d   :  { %v2059_v51 = vsel %vm388_vm3, %v2054_v59, %v2056_v31  ;;  %v2058_v8 = vsel %vm387_vm5, %v2056_v31, %v2054_v59 }
 0x35e   :  { %3267 = vmatmul.mubr.msk.f32.gmra.mrb[6].mxu1 %vm138_vm4, %v3263_v22  ;;  %v3537_v32 = vpack.c.bf16 %v2061_v45, %v2059_v51  ;;  %v3539_v5 = vpack.c.bf16 %v2060_v33, %v2058_v8 }
 0x35f   :  { %932 = vmatprep.mubr.f32.mxu1 %v3989_v15 }
 0x362   :  { %3280 = vmatmul.mubr.msk.f32.vlgmr.msra.gmra.mrb[0].mxu1 %vm138_vm4, %v3268_v36 }
 0x363   :  { %3496 = vmatpush1.bf16.msra.mxu1 %v3495_v53  ;;  %938 = vmatprep.mubr.f32.mxu1 %v3989_v15 }
 0x364   :  { %3498 = vmatprep.subr.bf16.mxu1 %v3497_v55 }
 0x366   :  { %3281 = vmatmul.mubr.msk.f32.gmra.mrb[2].mxu1 %vm138_vm4, %v3269_v58  ;;  %v2155_v58 = vld [vmem:[%s5539_s9 + $0x8] sm:$0xff] }
 0x367   :  { %3500 = vmatpush1.bf16.msra.mxu1 %v3499_v61  ;;  %944 = vmatprep.mubr.f32.mxu1 %v3989_v15  ;;  %v1945_v42 = vpop.permute.xlu0 %1944  ;;  %v1950_v36 = vpop.permute.xlu1 %1949 }
 0x368   :  { %3530 = vmatprep.subr.bf16.mxu1 %v3529_v60 }
 0x36a   :  { %3282 = vmatmul.mubr.msk.f32.gmra.mrb[4].mxu1 %vm138_vm4, %v3270_v62 }
 0x36b   :  { %950 = vmatprep.mubr.f32.mxu1 %v3989_v15 }
 0x36e   :  { %3283 = vmatmul.mubr.msk.f32.gmra.mrb[6].mxu1 %vm138_vm4, %v3271_v63 }
 0x36f   :  { %1078 = vmatprep.mubr.f32.mxu1 %v3989_v15 }
 0x372   :  { %3288 = vmatmul.mubr.msk.f32.vlgmr.msra.gmra.mrb[0].mxu1 %vm138_vm4, %v3284_v12 }
 0x373   :  { %1084 = vmatprep.mubr.f32.mxu1 %v3989_v15  ;;  %3532 = vmatpush1.bf16.msra.mxu1 %v3531_v14 }
 0x374   :  { %3534 = vmatprep.subr.bf16.mxu1 %v3533_v20 }
 0x376   :  { %3289 = vmatmul.mubr.msk.f32.gmra.mrb[2].mxu1 %vm138_vm4, %v3285_v21 }
 0x377   :  { %1090 = vmatprep.mubr.f32.mxu1 %v3989_v15 }
 0x37a   :  { %3290 = vmatmul.mubr.msk.f32.gmra.mrb[4].mxu1 %vm138_vm4, %v3286_v17 }
 0x37b   :  { %1096 = vmatprep.mubr.f32.mxu1 %v3989_v15 }
 0x37e   :  { %3291 = vmatmul.mubr.msk.f32.gmra.mrb[6].mxu1 %vm138_vm4, %v3287_v40 }
 0x37f   :  { %1929 = vmatprep.mubr.f32.mxu1 %v3989_v15 }
 0x382   :  { %3340 = vmatmul.mubr.msk.f32.vlgmr.msra.gmra.mrb[8].mxu1 %vm5545_vm10, %v1856_v4 }
 0x383   :  { %1935 = vmatprep.mubr.f32.mxu1 %v3989_v15  ;;  %3536 = vmatpush1.bf16.msra.mxu1 %v3535_v16 }
 0x384   :  { %3538 = vmatprep.subr.bf16.mxu1 %v3537_v32 }
 0x386   :  { %3341 = vmatmul.mubr.msk.f32.gmra.mrb[10].mxu1 %vm5545_vm10, %v1857_v6 }
 0x387   :  { %2029 = vmatprep.mubr.f32.mxu1 %v3989_v15 }
 0x38a   :  { %3344 = vmatmul.mubr.msk.f32.vlgmr.msra.gmra.mrb[8].mxu1 %vm5545_vm10, %v3342_v2 }
 0x38b   :  { %2035 = vmatprep.mubr.f32.mxu1 %v3989_v15  ;;  %3540 = vmatpush1.bf16.msra.mxu1 %v3539_v5 }
 0x38e   :  { %3345 = vmatmul.mubr.msk.f32.gmra.mrb[10].mxu1 %vm5545_vm10, %v3343_v10 }
 0x38f   :  { %2135 = vmatprep.mubr.f32.mxu1 %v3989_v15 }
 0x392   :  { %3348 = vmatmul.mubr.msk.f32.vlgmr.msra.gmra.mrb[8].mxu1 %vm5545_vm10, %v3346_v34 }
 0x393   :  { %2141 = vmatprep.mubr.f32.mxu1 %v3989_v15 }
 0x396   :  { %3349 = vmatmul.mubr.msk.f32.gmra.mrb[10].mxu1 %vm5545_vm10, %v3347_v0 }
 0x397   :  { %2321 = vmatprep.mubr.f32.mxu1 %v3989_v15 }
 0x445   :  { %v4711_v13 = vpop.f32.mrb[0].mxu1 }
 0x446   :  { %v4713_v37 = vpop.f32.mrb[1].mxu1 }
 0x449   :  { %v4715_v22 = vpop.f32.mrb[2].mxu1 }
 0x44a   :  { %v4717_v38 = vpop.f32.mrb[3].mxu1 }
 0x44d   :  { %v4719_v39 = vpop.f32.mrb[4].mxu1 }
 0x44e   :  { %v4721_v26 = vpop.f32.mrb[5].mxu1 }
 0x451   :  { %v4723_v41 = vpop.f32.mrb[6].mxu1 }
 0x452   :  { %v4725_v27 = vpop.f32.mrb[7].mxu1 }
 0x465   :  { %v2137_v43 = vpop.f32.mrb[8].mxu1 }
 0x466   :  { %v3619_v46 = vadd.f32 %v2137_v43, %v1945_v42  ;;  %v2139_v47 = vpop.f32.mrb[9].mxu1 }
 0x467   :  { %v3620_v35 = vadd.f32 %v2139_v47, %v1945_v42 }
 0x469   :  { %v2143_v49 = vpop.f32.mrb[10].mxu1  ;;  %v2156_v50 = vadd.f32 %v3620_v35, %v3619_v46 }
 0x46a   :  { %v3621_v53 = vadd.f32 %v2143_v49, %v1950_v36  ;;  %v2145_v54 = vpop.f32.mrb[11].mxu1 }
 0x46b   :  { %v3622_v44 = vadd.f32 %v2145_v54, %v1950_v36  ;;  %2157 = vadd.xlane.f32.xlu0 %v2156_v50 }
 0x46d   :  { %v2159_v55 = vadd.f32 %v3622_v44, %v3621_v53 }
 0x46f   :  { %2160 = vadd.xlane.f32.xlu1 %v2159_v55 }
 0x480   :  { %2191 = vperm.xlu1 %3750, %v2152_v56  }
 0x484   :  { %2205 = vperm.xlu1 %3750, %v2154_v57  }
 0x488   :  { %2210 = vperm.xlu1 %3750, %v2155_v58  }
 0x4f8   :  { %v2158_v60 = vpop.xlane.xlu0 %2157 }
 0x4f9   :  { %v2163_v61 = vmul.f32 0.00390625, %v2158_v60 }
 0x4fb   :  { %v2165_v62 = vsub.f32 %v3619_v46, %v2163_v61  ;;  %v2166_v63 = vsub.f32 %v3620_v35, %v2163_v61  ;;  %v3351_v61 = vld [vmem:[%s5537_s7 + $0x18] sm:$0xff] }
 0x4fc   :  { %v2161_v9 = vpop.xlane.xlu1 %2160 }
 0x4fd   :  { %v2164_v11 = vmul.f32 0.00390625, %v2161_v9  ;;  %v2169_v12 = vmul.f32 %v2165_v62, %v2165_v62  ;;  %v2170_v14 = vmul.f32 %v2166_v63, %v2166_v63  ;;  %v3253_v9 = vld [vmem:[%s5532_s2 + $0x48] sm:$0xff] }
 0x4ff   :  { %v2167_v20 = vsub.f32 %v3621_v53, %v2164_v11  ;;  %v2168_v21 = vsub.f32 %v3622_v44, %v2164_v11  ;;  %v2173_v3 = vadd.f32 %v2170_v14, %v2169_v12  ;;  %v4775_v12 = vadd.f32 %v3253_v9, %v4713_v37  ;;  %v3256_v14 = vld [vmem:[%s5532_s2 + $0x60] sm:$0xff] }
 0x500   :  { %v2192_v40 = vpop.permute.xlu1 %2191 }
 0x501   :  { %2174 = vadd.xlane.f32.xlu0 %v2173_v3  ;;  %v2171_v1 = vmul.f32 %v2167_v20, %v2167_v20  ;;  %v2172_v28 = vmul.f32 %v2168_v21, %v2168_v21  ;;  %v4790_v3 = vadd.f32 %v3256_v14, %v4719_v39  ;;  %v3258_v39 = vld [vmem:[%s5532_s2 + $0x70] sm:$0xff] }
 0x502   :  { %v3352_v14 = vld [vmem:[%s5536_s6 + $0x30] sm:$0xff] }
 0x503   :  { %v2176_v29 = vadd.f32 %v2172_v28, %v2171_v1  ;;  %v1122_v28 = vsel %vm78_vm7, %v4775_v12, 0.0 }
 0x504   :  { %v2206_v16 = vpop.permute.xlu1 %2205 }
 0x505   :  { %2177 = vadd.xlane.f32.xlu0 %v2176_v29 }
 0x508   :  { %v2211_v43 = vpop.permute.xlu1 %2210 }
 0x51b   :  { %2196 = vperm.xlu0 %3751, %v2153_v30  }
 0x58e   :  { %v2175_v48 = vpop.xlane.xlu0 %2174 }
 0x58f   :  { %v2179_v17 = vmul.f32 0.00390625, %v2175_v48 }
 0x591   :  { %v2181_v24 = vadd.f32 1e-05, %v2179_v17  ;;  %v4814_v17 = vadd.f32 %v3258_v39, %v4723_v41 }
 0x592   :  { %v2178_v52 = vpop.xlane.xlu0 %2177 }
 0x593   :  { %3900 = vrsqrt.f32 %v2181_v24  ;;  %v2180_v59 = vmul.f32 0.00390625, %v2178_v52 }
 0x595   :  { %v2182_v31 = vadd.f32 1e-05, %v2180_v59 }
 0x597   :  { %3902 = vrsqrt.f32 %v2182_v31  ;;  %v1127_v31 = vsel %vm77_vm6, %v4814_v17, 0.0 }
 0x59a   :  { %v2197_v34 = vpop.permute.xlu0 %2196 }
 0x59d   :  { %v3901_v51 = vpop.eup %3900 }
 0x59e   :  { %v2185_v45 = vmul.f32 %v3901_v51, %v2165_v62  ;;  %v2186_v4 = vmul.f32 %v3901_v51, %v2166_v63  ;;  %v3350_v62 = vld [vmem:[%s5537_s7 + $0x10] sm:$0xff]  ;;  %v3252_v63 = vld [vmem:[%s5532_s2 + $0x40] sm:$0xff] }
 0x59f   :  { %v4772_v11 = vadd.f32 %v3252_v63, %v4711_v13  ;;  %v3255_v13 = vld [vmem:[%s5532_s2 + $0x58] sm:$0xff] }
 0x5a0   :  { %v2200_v32 = vmul.f32 %v2192_v40, %v2186_v4  ;;  %v2199_v6 = vmul.f32 %v2192_v40, %v2185_v45  ;;  %v4805_v30 = vadd.f32 %v3255_v13, %v4717_v38 }
 0x5a1   :  { %v3903_v8 = vpop.eup %3902  ;;  %v1121_v1 = vsel %vm77_vm6, %v4772_v11, 0.0 }
 0x5a2   :  { %v2187_v33 = vmul.f32 %v3903_v8, %v2167_v20  ;;  %v2188_v2 = vmul.f32 %v3903_v8, %v2168_v21  ;;  %v2214_v5 = vadd.f32 %v2206_v16, %v2200_v32  ;;  %v2213_v10 = vadd.f32 %v2206_v16, %v2199_v6  ;;  %v3257_v20 = vld [vmem:[%s5532_s2 + $0x68] sm:$0xff]  ;;  %v3254_v21 = vld [vmem:[%s5532_s2 + $0x50] sm:$0xff] }
 0x5a3   :  { %v4793_v37 = vadd.f32 %v3257_v20, %v4721_v26  ;;  %v4802_v29 = vadd.f32 %v3254_v21, %v4715_v22  ;;  %v3259_v26 = vld [vmem:[%s5532_s2 + $0x78] sm:$0xff]  ;;  %v1129_v48 = vadd.f32 %v1122_v28, %v1121_v1  ;;  %v1125_v22 = vsel %vm77_vm6, %v4790_v3, 0.0 }
 0x5a4   :  { %v2201_v0 = vmul.f32 %v2197_v34, %v2187_v33  ;;  %v2202_v42 = vmul.f32 %v2197_v34, %v2188_v2  ;;  %v2222_v35 = vmul.f32 0.01, %v2214_v5  ;;  %v2221_v36 = vmul.f32 0.01, %v2213_v10  ;;  %v3353_v1 = vld [vmem:[%s5536_s6 + $0x38] sm:$0xff] }
 0x5a5   :  { %vm2218_vm11 = vcmp.ge.f32.partialorder %v2214_v5, 0.0  ;;  %vm2217_vm12 = vcmp.ge.f32.partialorder %v2213_v10, 0.0  ;;  %v4817_v24 = vadd.f32 %v3259_v26, %v4725_v27  ;;  %v1126_v38 = vsel %vm78_vm7, %v4793_v37, 0.0  ;;  %v3361_v28 = vld [vmem:[%s5536_s6 + $0x58] sm:$0xff] }
 0x5a6   :  { %v2215_v46 = vadd.f32 %v2211_v43, %v2201_v0  ;;  %v2216_v47 = vadd.f32 %v2211_v43, %v2202_v42  ;;  %v4739_v53 = vsel %vm2218_vm11, %v2214_v5, %v2222_v35  ;;  %v4743_v44 = vsel %vm2217_vm12, %v2213_v10, %v2221_v36 }
 0x5a7   :  { %v1123_v52 = vsel %vm77_vm6, %v4802_v29, 0.0  ;;  %v1124_v41 = vsel %vm78_vm7, %v4805_v30, 0.0  ;;  %v1135_v59 = vadd.f32 %v1126_v38, %v1125_v22  ;;  %v1128_v40 = vsel %vm78_vm7, %v4817_v24, 0.0 }
 0x5a8   :  { %vm2219_vm13 = vcmp.ge.f32.partialorder %v2215_v46, 0.0  ;;  %vm2220_vm14 = vcmp.ge.f32.partialorder %v2216_v47, 0.0  ;;  %v2223_v49 = vmul.f32 0.01, %v2215_v46  ;;  %v2224_v50 = vmul.f32 0.01, %v2216_v47 }
 0x5a9   :  { %v1132_v27 = vadd.f32 %v1124_v41, %v1123_v52  ;;  %v1138_v51 = vadd.f32 %v1128_v40, %v1127_v31 }
 0x5aa   :  { %v4741_v54 = vsel %vm2220_vm14, %v2216_v47, %v2224_v50  ;;  %v4745_v55 = vsel %vm2219_vm13, %v2215_v46, %v2223_v49 }
 0x5ab   :  { %v3817_v56 = vpack.i.bf16 %v4741_v54, %v4739_v53  ;;  %v3812_v57 = vpack.i.bf16 %v4745_v55, %v4743_v44  ;;  %v3545_v58 = vpack.c.bf16 %v4741_v54, %v4739_v53  ;;  %v3547_v60 = vpack.c.bf16 %v4745_v55, %v4743_v44  ;;  %v3356_v44 = vld [vmem:[%s5536_s6 + $0x40] sm:$0xff] }
 0x5ad   :  { %3818 = vrot.lane.b32.xlu1 %v3817_v56, %s3988_s30  ;;  %3813 = vrot.lane.b32.xlu0 %v3812_v57, %s3988_s30 }
 0x5b1   :  { %3828 = vrot.lane.b32.xlu1 %v3817_v56, %s3990_s0  ;;  %3823 = vrot.lane.b32.xlu0 %v3812_v57, %s3990_s0 }
 0x5b5   :  { %2341 = vperm.xlu1 %3750, %v3351_v61   ;;  %2336 = vperm.xlu0 %3751, %v3350_v62  }
 0x5d4   :  { %1130 = vadd.xlane.f32.xlu0 %v1129_v48 }
 0x5d8   :  { %1136 = vadd.xlane.f32.xlu0 %v1135_v59 }
 0x5d9   :  { %1133 = vadd.xlane.f32.xlu1 %v1132_v27 }
 0x5dc   :  { %1139 = vadd.xlane.f32.xlu0 %v1138_v51 }
 0x61f   :  { %v3819_v45 = vpop.permute.xlu1 %3818  ;;  %v3814_v4 = vpop.permute.xlu0 %3813 }
 0x620   :  { %v3821_v16 = vunpack.i.h.bf16 %v3819_v45  ;;  %v3820_v32 = vunpack.i.l.bf16 %v3819_v45  ;;  %v3816_v6 = vunpack.i.h.bf16 %v3814_v4  ;;  %v3815_v8 = vunpack.i.l.bf16 %v3814_v4 }
 0x622   :  { %v2241_v33 = vsel %vm111_vm0, %v3816_v6, %v3821_v16  ;;  %v2243_v2 = vsel %vm111_vm0, %v3821_v16, %v3816_v6  ;;  %v2240_v5 = vsel %vm111_vm0, %v3815_v8, %v3820_v32  ;;  %v2242_v10 = vsel %vm111_vm0, %v3820_v32, %v3815_v8 }
 0x623   :  { %v3829_v34 = vpop.permute.xlu1 %3828  ;;  %v3824_v0 = vpop.permute.xlu0 %3823  ;;  %v2245_v42 = vsel %vm121_vm1, %v2242_v10, %v2240_v5  ;;  %v2247_v43 = vsel %vm121_vm1, %v2243_v2, %v2241_v33  ;;  %v2244_v46 = vsel %vm111_vm0, %v2240_v5, %v2242_v10  ;;  %v2246_v47 = vsel %vm111_vm0, %v2241_v33, %v2243_v2 }
 0x624   :  { %v3831_v35 = vunpack.i.h.bf16 %v3829_v34  ;;  %v3830_v36 = vunpack.i.l.bf16 %v3829_v34  ;;  %v3826_v49 = vunpack.i.h.bf16 %v3824_v0  ;;  %v3825_v50 = vunpack.i.l.bf16 %v3824_v0 }
 0x625   :  { %v3541_v56 = vpack.c.bf16 %v2247_v43, %v2245_v42  ;;  %v3543_v57 = vpack.c.bf16 %v2246_v47, %v2244_v46 }
 0x626   :  { %v2447_v61 = vsel %vm378_vm2, %v3826_v49, %v3831_v35  ;;  %v2449_v62 = vsel %vm378_vm2, %v3831_v35, %v3826_v49  ;;  %v2446_v63 = vsel %vm378_vm2, %v3825_v50, %v3830_v36  ;;  %v2448_v9 = vsel %vm378_vm2, %v3830_v36, %v3825_v50 }
 0x627   :  { %3542 = vmatprep.subr.bf16.mxu1 %v3541_v56  ;;  %v2451_v20 = vsel %vm388_vm3, %v2446_v63, %v2448_v9  ;;  %v2453_v21 = vsel %vm388_vm3, %v2447_v61, %v2449_v62  ;;  %v2450_v53 = vsel %vm387_vm5, %v2448_v9, %v2446_v63  ;;  %v2452_v54 = vsel %vm387_vm5, %v2449_v62, %v2447_v61 }
 0x628   :  { %3544 = vmatpush1.bf16.msra.mxu1 %v3543_v57  ;;  %v3549_v13 = vpack.c.bf16 %v2453_v21, %v2451_v20  ;;  %v3551_v55 = vpack.c.bf16 %v2452_v54, %v2450_v53  ;;  %v3292_v21 = vld [vmem:[%s5533_s3 + $0x20] sm:$0xff]  ;;  %v3293_v53 = vld [vmem:[%s5533_s3 + $0x28] sm:$0xff]  ;;  %v3295_v54 = vld [vmem:[%s5533_s3 + $0x38] sm:$0xff] }
 0x629   :  { %3546 = vmatprep.subr.bf16.mxu1 %v3545_v58  ;;  %v3357_v58 = vld [vmem:[%s5536_s6 + $0x48] sm:$0xff] }
 0x62b   :  { %3354 = vmatmul.mubr.msk.f32.vlgmr.msra.gmra.mrb[12].mxu1 %vm5545_vm10, %v3352_v14 }
 0x62c   :  { %3548 = vmatpush1.bf16.msra.mxu1 %v3547_v60  ;;  %2327 = vmatprep.mubr.f32.mxu1 %v3989_v15  ;;  %v3360_v60 = vld [vmem:[%s5536_s6 + $0x50] sm:$0xff] }
 0x62d   :  { %3550 = vmatprep.subr.bf16.mxu1 %v3549_v13  ;;  %v3296_v13 = vld [vmem:[%s5534_s4 + $0x20] sm:$0xff] }
 0x62f   :  { %3355 = vmatmul.mubr.msk.f32.gmra.mrb[14].mxu1 %vm5545_vm10, %v3353_v1  ;;  %v3297_v1 = vld [vmem:[%s5534_s4 + $0x28] sm:$0xff] }
 0x630   :  { %2421 = vmatprep.mubr.f32.mxu1 %v3989_v15 }
 0x633   :  { %3358 = vmatmul.mubr.msk.f32.vlgmr.msra.gmra.mrb[12].mxu1 %vm5545_vm10, %v3356_v44  ;;  %v3294_v44 = vld [vmem:[%s5533_s3 + $0x30] sm:$0xff]  ;;  %s3994_s3 = smov [#allocation3]  }
 0x634   :  { %3552 = vmatpush1.bf16.msra.mxu1 %v3551_v55  ;;  %2427 = vmatprep.mubr.f32.mxu1 %v3989_v15  ;;  %v2337_v39 = vpop.permute.xlu0 %2336  ;;  %v2342_v48 = vpop.permute.xlu1 %2341  ;;  %v3299_v55 = vld [vmem:[%s5534_s4 + $0x38] sm:$0xff] }
 0x637   :  { %3359 = vmatmul.mubr.msk.f32.gmra.mrb[14].mxu1 %vm5545_vm10, %v3357_v58  ;;  %v3298_v58 = vld [vmem:[%s5534_s4 + $0x30] sm:$0xff] }
 0x638   :  { %2527 = vmatprep.mubr.f32.mxu1 %v3989_v15 }
 0x63b   :  { %3362 = vmatmul.mubr.msk.f32.vlgmr.msra.gmra.mrb[12].mxu1 %vm5545_vm10, %v3360_v60  ;;  %v3365_v60 = vld [vmem:[%s5538_s8 + $0x18] sm:$0xff] }
 0x63c   :  { %2533 = vmatprep.mubr.f32.mxu1 %v3989_v15 }
 0x63f   :  { %3363 = vmatmul.mubr.msk.f32.gmra.mrb[14].mxu1 %vm5545_vm10, %v3361_v28  ;;  %v3364_v28 = vld [vmem:[%s5538_s8 + $0x10] sm:$0xff] }
 0x661   :  { %v1131_v26 = vpop.xlane.xlu0 %1130 }
 0x662   :  { %v1141_v22 = vmul.f32 0.0076923077, %v1131_v26 }
 0x664   :  { %v4905_v41 = vsub.f32 %v4772_v11, %v1141_v22  ;;  %v4908_v59 = vsub.f32 %v4775_v12, %v1141_v22 }
 0x665   :  { %v1137_v38 = vpop.xlane.xlu0 %1136 }
 0x666   :  { %v1134_v52 = vpop.xlane.xlu1 %1133  ;;  %v1143_v27 = vmul.f32 0.0076923077, %v1137_v38  ;;  %v1153_v51 = vsel %vm77_vm6, %v4905_v41, 0.0  ;;  %v1154_v12 = vsel %vm78_vm7, %v4908_v59, 0.0 }
 0x667   :  { %v1142_v31 = vmul.f32 0.0076923077, %v1134_v52  ;;  %v1162_v5 = vmul.f32 %v1154_v12, %v1154_v12 }
 0x668   :  { %v4914_v45 = vsub.f32 %v4790_v3, %v1143_v27  ;;  %v4917_v4 = vsub.f32 %v4793_v37, %v1143_v27  ;;  %v1161_v3 = vmul.f32 %v1153_v51, %v1153_v51 }
 0x669   :  { %v1140_v40 = vpop.xlane.xlu0 %1139  ;;  %v4920_v16 = vsub.f32 %v4802_v29, %v1142_v31  ;;  %v4926_v32 = vsub.f32 %v4805_v30, %v1142_v31 }
 0x66a   :  { %v1144_v6 = vmul.f32 0.0076923077, %v1140_v40  ;;  %v1157_v29 = vsel %vm77_vm6, %v4914_v45, 0.0  ;;  %v1158_v34 = vsel %vm78_vm7, %v4917_v4, 0.0  ;;  %v1169_v36 = vadd.f32 %v1162_v5, %v1161_v3 }
 0x66b   :  { %v1155_v30 = vsel %vm77_vm6, %v4920_v16, 0.0  ;;  %v1156_v47 = vsel %vm78_vm7, %v4926_v32, 0.0  ;;  %v1165_v49 = vmul.f32 %v1157_v29, %v1157_v29  ;;  %v1166_v56 = vmul.f32 %v1158_v34, %v1158_v34 }
 0x66c   :  { %v4938_v0 = vsub.f32 %v4814_v17, %v1144_v6  ;;  %v4941_v42 = vsub.f32 %v4817_v24, %v1144_v6  ;;  %v1163_v57 = vmul.f32 %v1155_v30, %v1155_v30  ;;  %v1164_v61 = vmul.f32 %v1156_v47, %v1156_v47 }
 0x66d   :  { %v1175_v62 = vadd.f32 %v1166_v56, %v1165_v49 }
 0x66e   :  { %v1159_v17 = vsel %vm77_vm6, %v4938_v0, 0.0  ;;  %v1160_v24 = vsel %vm78_vm7, %v4941_v42, 0.0  ;;  %v1172_v63 = vadd.f32 %v1164_v61, %v1163_v57 }
 0x66f   :  { %v1167_v9 = vmul.f32 %v1159_v17, %v1159_v17  ;;  %v1168_v14 = vmul.f32 %v1160_v24, %v1160_v24 }
 0x671   :  { %v1178_v20 = vadd.f32 %v1168_v14, %v1167_v9 }
 0x70e   :  { %v2529_v11 = vpop.f32.mrb[12].mxu1 }
 0x70f   :  { %v3623_v8 = vadd.f32 %v2529_v11, %v2337_v39  ;;  %v2531_v33 = vpop.f32.mrb[13].mxu1 }
 0x710   :  { %v3624_v2 = vadd.f32 %v2531_v33, %v2337_v39 }
 0x712   :  { %v2535_v10 = vpop.f32.mrb[14].mxu1  ;;  %v2550_v37 = vadd.f32 %v3624_v2, %v3623_v8 }
 0x713   :  { %v3625_v43 = vadd.f32 %v2535_v10, %v2342_v48  ;;  %v2537_v46 = vpop.f32.mrb[15].mxu1 }
 0x714   :  { %v3626_v35 = vadd.f32 %v2537_v46, %v2342_v48  ;;  %2551 = vadd.xlane.f32.xlu1 %v2550_v37 }
 0x716   :  { %v2553_v50 = vadd.f32 %v3626_v35, %v3625_v43 }
 0x718   :  { %1170 = vadd.xlane.f32.xlu1 %v1169_v36  ;;  %2554 = vadd.xlane.f32.xlu0 %v2553_v50 }
 0x71c   :  { %1176 = vadd.xlane.f32.xlu1 %v1175_v62  ;;  %1173 = vadd.xlane.f32.xlu0 %v1172_v63 }
 0x720   :  { %1179 = vadd.xlane.f32.xlu0 %v1178_v20 }
 0x72d   :  { %1203 = vperm.xlu1 %3750, %v3292_v21  }
 0x731   :  { %1231 = vperm.xlu1 %3750, %v3296_v13  }
 0x735   :  { %1236 = vperm.xlu1 %3750, %v3297_v1  }
 0x736   :  { %1208 = vperm.xlu0 %3751, %v3293_v53  }
 0x739   :  { %1218 = vperm.xlu1 %3750, %v3295_v54  }
 0x73a   :  { %1213 = vperm.xlu0 %3751, %v3294_v44  }
 0x73d   :  { %1246 = vperm.xlu1 %3750, %v3299_v55  }
 0x73e   :  { %1241 = vperm.xlu0 %3751, %v3298_v58  }
 0x741   :  { %2589 = vperm.xlu1 %3750, %v3365_v60  }
 0x742   :  { %2584 = vperm.xlu0 %3751, %v3364_v28  }
 0x7a1   :  { %v2552_v39 = vpop.xlane.xlu1 %2551 }
 0x7a2   :  { %v2556_v26 = vmul.f32 0.00390625, %v2552_v39 }
 0x7a4   :  { %v4982_v48 = vsub.f32 %v3623_v8, %v2556_v26  ;;  %v4984_v22 = vsub.f32 %v3624_v2, %v2556_v26 }
 0x7a5   :  { %v1171_v38 = vpop.xlane.xlu1 %1170  ;;  %v2555_v52 = vpop.xlane.xlu0 %2554 }
 0x7a6   :  { %v1181_v27 = vmul.f32 0.0076923077, %v1171_v38  ;;  %v2557_v31 = vmul.f32 0.00390625, %v2555_v52  ;;  %v2562_v40 = vmul.f32 %v4982_v48, %v4982_v48  ;;  %v2563_v51 = vmul.f32 %v4984_v22, %v4984_v22 }
 0x7a8   :  { %v1185_v11 = vadd.f32 1e-05, %v1181_v27  ;;  %v4990_v12 = vsub.f32 %v3625_v43, %v2557_v31  ;;  %v4992_v6 = vsub.f32 %v3626_v35, %v2557_v31  ;;  %v2566_v33 = vadd.f32 %v2563_v51, %v2562_v40 }
 0x7a9   :  { %v1177_v8 = vpop.xlane.xlu1 %1176  ;;  %v1174_v3 = vpop.xlane.xlu0 %1173 }
 0x7aa   :  { %3904 = vrsqrt.f32 %v1185_v11  ;;  %v1183_v2 = vmul.f32 0.0076923077, %v1177_v8  ;;  %v1182_v5 = vmul.f32 0.0076923077, %v1174_v3  ;;  %2567 = vadd.xlane.f32.xlu0 %v2566_v33  ;;  %v2564_v10 = vmul.f32 %v4990_v12, %v4990_v12 }
 0x7ab   :  { %v2565_v37 = vmul.f32 %v4992_v6, %v4992_v6 }
 0x7ac   :  { %v1187_v29 = vadd.f32 1e-05, %v1183_v2  ;;  %v1186_v34 = vadd.f32 1e-05, %v1182_v5 }
 0x7ad   :  { %v1204_v30 = vpop.permute.xlu1 %1203  ;;  %v1180_v43 = vpop.xlane.xlu0 %1179  ;;  %v2569_v46 = vadd.f32 %v2565_v37, %v2564_v10 }
 0x7ae   :  { %3906 = vrsqrt.f32 %v1187_v29  ;;  %v1184_v47 = vmul.f32 0.0076923077, %v1180_v43 }
 0x7af   :  { %3908 = vrsqrt.f32 %v1186_v34  ;;  %2570 = vadd.xlane.f32.xlu1 %v2569_v46 }
 0x7b0   :  { %v1188_v35 = vadd.f32 1e-05, %v1184_v47 }
 0x7b1   :  { %v1232_v36 = vpop.permute.xlu1 %1231 }
 0x7b2   :  { %3910 = vrsqrt.f32 %v1188_v35 }
 0x7b4   :  { %v3905_v49 = vpop.eup %3904 }
 0x7b5   :  { %v1193_v50 = vmul.f32 %v3905_v49, %v4905_v41  ;;  %v1194_v56 = vmul.f32 %v3905_v49, %v4908_v59  ;;  %v1237_v57 = vpop.permute.xlu1 %1236  ;;  %v1209_v61 = vpop.permute.xlu0 %1208 }
 0x7b7   :  { %v1221_v17 = vmul.f32 %v1204_v30, %v1193_v50  ;;  %v1222_v24 = vmul.f32 %v1204_v30, %v1194_v56 }
 0x7b8   :  { %v3907_v62 = vpop.eup %3906 }
 0x7b9   :  { %v3909_v63 = vpop.eup %3908  ;;  %v1249_v9 = vadd.f32 %v1232_v36, %v1221_v17  ;;  %v1250_v14 = vadd.f32 %v1232_v36, %v1222_v24  ;;  %v1197_v20 = vmul.f32 %v3907_v62, %v4914_v45  ;;  %v1198_v21 = vmul.f32 %v3907_v62, %v4917_v4  ;;  %v1214_v13 = vpop.permute.xlu0 %1213 }
 0x7ba   :  { %v1195_v1 = vmul.f32 %v3909_v63, %v4920_v16  ;;  %v1196_v53 = vmul.f32 %v3909_v63, %v4926_v32  ;;  %v1219_v41 = vpop.permute.xlu1 %1218  ;;  %v3367_v16 = vld [vmem:[%s5539_s9 + $0x18] sm:$0xff]  ;;  %v3366_v32 = vld [vmem:[%s5539_s9 + $0x10] sm:$0xff] }
 0x7bb   :  { %vm1257_vm15 = vcmp.ge.f32.partialorder %v1249_v9, 0.0  ;;  %vm1258_vm11 = vcmp.ge.f32.partialorder %v1250_v14, 0.0  ;;  %v1265_v59 = vmul.f32 0.01, %v1249_v9  ;;  %v1266_v54 = vmul.f32 0.01, %v1250_v14 }
 0x7bc   :  { %v3911_v44 = vpop.eup %3910  ;;  %v1223_v55 = vmul.f32 %v1209_v61, %v1195_v1  ;;  %v1224_v58 = vmul.f32 %v1209_v61, %v1196_v53  ;;  %v1225_v60 = vmul.f32 %v1214_v13, %v1197_v20  ;;  %v1226_v28 = vmul.f32 %v1214_v13, %v1198_v21 }
 0x7bd   :  { %v1199_v39 = vmul.f32 %v3911_v44, %v4938_v0  ;;  %v1200_v45 = vmul.f32 %v3911_v44, %v4941_v42  ;;  %v1242_v4 = vpop.permute.xlu0 %1241  ;;  %v5013_v51 = vsel %vm1258_vm11, %v1250_v14, %v1266_v54  ;;  %v5016_v0 = vsel %vm1257_vm15, %v1249_v9, %v1265_v59 }
 0x7be   :  { %v1251_v26 = vadd.f32 %v1237_v57, %v1223_v55  ;;  %v1252_v38 = vadd.f32 %v1237_v57, %v1224_v58  ;;  %v1253_v52 = vadd.f32 %v1242_v4, %v1225_v60  ;;  %v1254_v27 = vadd.f32 %v1242_v4, %v1226_v28  ;;  %v1247_v33 = vpop.permute.xlu1 %1246 }
 0x7bf   :  { %v1227_v31 = vmul.f32 %v1219_v41, %v1199_v39  ;;  %v1228_v40 = vmul.f32 %v1219_v41, %v1200_v45  ;;  %v1282_v10 = vsel %vm78_vm7, %v5013_v51, 0.0  ;;  %v1281_v37 = vsel %vm77_vm6, %v5016_v0, 0.0 }
 0x7c0   :  { %v1267_v42 = vmul.f32 0.01, %v1251_v26  ;;  %v1268_v11 = vmul.f32 0.01, %v1252_v38  ;;  %vm1261_vm12 = vcmp.ge.f32.partialorder %v1253_v52, 0.0  ;;  %vm1262_vm13 = vcmp.ge.f32.partialorder %v1254_v27, 0.0  ;;  %2603 = vperm.xlu1 %3750, %v3367_v16   ;;  %2598 = vperm.xlu0 %3751, %v3366_v32  }
 0x7c1   :  { %v1255_v8 = vadd.f32 %v1247_v33, %v1227_v31  ;;  %v1256_v3 = vadd.f32 %v1247_v33, %v1228_v40  ;;  %v1269_v2 = vmul.f32 0.01, %v1253_v52  ;;  %v1270_v5 = vmul.f32 0.01, %v1254_v27  ;;  %v2585_v1 = vpop.permute.xlu0 %2584 }
 0x7c2   :  { %vm1260_vm14 = vcmp.ge.f32.partialorder %v1252_v38, 0.0  ;;  %vm1259_vm11 = vcmp.ge.f32.partialorder %v1251_v26, 0.0  ;;  %v2590_v41 = vpop.permute.xlu1 %2589 }
 0x7c3   :  { %vm1263_vm15 = vcmp.ge.f32.partialorder %v1255_v8, 0.0  ;;  %vm1264_vm10 = vcmp.ge.f32.partialorder %v1256_v3, 0.0  ;;  %v1271_v29 = vmul.f32 0.01, %v1255_v8  ;;  %v1272_v34 = vmul.f32 0.01, %v1256_v3 }
 0x7c4   :  { %v5024_v30 = vsel %vm1260_vm14, %v1252_v38, %v1268_v11  ;;  %v5026_v43 = vsel %vm1259_vm11, %v1251_v26, %v1267_v42  ;;  %v5029_v46 = vsel %vm1262_vm13, %v1254_v27, %v1270_v5  ;;  %v5032_v47 = vsel %vm1261_vm12, %v1253_v52, %v1269_v2 }
 0x7c5   :  { %v1284_v35 = vsel %vm78_vm7, %v5024_v30, 0.0  ;;  %v3509_v36 = vpack.c.bf16 %v5024_v30, %v5013_v51  ;;  %v1283_v49 = vsel %vm77_vm6, %v5026_v43, 0.0  ;;  %v3512_v50 = vpack.c.bf16 %v5026_v43, %v5016_v0  ;;  %v3309_v51 = vld [vmem:[%s5531_s1 + $0xc8] sm:$0xff] }
 0x7c6   :  { %v3837_v56 = vpack.i.bf16 %v1284_v35, %v1282_v10  ;;  %v3832_v57 = vpack.i.bf16 %v1283_v49, %v1281_v37  ;;  %v5044_v61 = vsel %vm1264_vm10, %v1256_v3, %v1272_v34  ;;  %v1286_v17 = vsel %vm78_vm7, %v5029_v46, 0.0 }
 0x7c7   :  { %v1288_v24 = vsel %vm78_vm7, %v5044_v61, 0.0  ;;  %v3515_v62 = vpack.c.bf16 %v5044_v61, %v5029_v46  ;;  %v5055_v63 = vsel %vm1263_vm15, %v1255_v8, %v1271_v29  ;;  %v1285_v14 = vsel %vm77_vm6, %v5032_v47, 0.0  ;;  %v3368_v46 = vld [vmem:[%s5537_s7 + $0x20] sm:$0xff] }
 0x7c8   :  { %3838 = vrot.lane.b32.xlu1 %v3837_v56, %s3988_s30  ;;  %3833 = vrot.lane.b32.xlu0 %v3832_v57, %s3988_s30  ;;  %v3847_v9 = vpack.i.bf16 %v1288_v24, %v1286_v17  ;;  %v1287_v20 = vsel %vm77_vm6, %v5055_v63, 0.0  ;;  %v3518_v21 = vpack.c.bf16 %v5055_v63, %v5032_v47 }
 0x7c9   :  { %v3842_v13 = vpack.i.bf16 %v1287_v20, %v1285_v14 }
 0x7cc   :  { %3848 = vrot.lane.b32.xlu1 %v3847_v9, %s3988_s30  ;;  %3843 = vrot.lane.b32.xlu0 %v3842_v13, %s3988_s30 }
 0x7d0   :  { %3858 = vrot.lane.b32.xlu1 %v3837_v56, %s3990_s0  ;;  %3853 = vrot.lane.b32.xlu0 %v3832_v57, %s3990_s0 }
 0x7d4   :  { %3868 = vrot.lane.b32.xlu1 %v3847_v9, %s3990_s0  ;;  %3863 = vrot.lane.b32.xlu0 %v3842_v13, %s3990_s0 }
 0x837   :  { %v2568_v53 = vpop.xlane.xlu0 %2567 }
 0x838   :  { %v2572_v59 = vmul.f32 0.00390625, %v2568_v53 }
 0x83a   :  { %v2574_v54 = vadd.f32 1e-05, %v2572_v59 }
 0x83c   :  { %3912 = vrsqrt.f32 %v2574_v54  ;;  %v2571_v44 = vpop.xlane.xlu1 %2570 }
 0x83d   :  { %v2573_v55 = vmul.f32 0.00390625, %v2571_v44 }
 0x83f   :  { %v2575_v58 = vadd.f32 1e-05, %v2573_v55  ;;  %v2599_v60 = vpop.permute.xlu0 %2598 }
 0x840   :  { %v2604_v28 = vpop.permute.xlu1 %2603 }
 0x841   :  { %3914 = vrsqrt.f32 %v2575_v58 }
 0x843   :  { %v3834_v39 = vpop.permute.xlu0 %3833 }
 0x844   :  { %v3839_v45 = vpop.permute.xlu1 %3838  ;;  %v3836_v4 = vunpack.i.h.bf16 %v3834_v39  ;;  %v3835_v16 = vunpack.i.l.bf16 %v3834_v39 }
 0x845   :  { %v3841_v32 = vunpack.i.h.bf16 %v3839_v45  ;;  %v3840_v26 = vunpack.i.l.bf16 %v3839_v45 }
 0x846   :  { %v3913_v38 = vpop.eup %3912 }
 0x847   :  { %v2578_v52 = vmul.f32 %v3913_v38, %v4982_v48  ;;  %v2579_v27 = vmul.f32 %v3913_v38, %v4984_v22  ;;  %v1315_v31 = vsel %vm111_vm0, %v3836_v4, %v3841_v32  ;;  %v1319_v40 = vsel %vm111_vm0, %v3841_v32, %v3836_v4  ;;  %v3844_v42 = vpop.permute.xlu0 %3843 }
 0x848   :  { %v1314_v11 = vsel %vm111_vm0, %v3835_v16, %v3840_v26  ;;  %v1318_v33 = vsel %vm111_vm0, %v3840_v26, %v3835_v16  ;;  %v3849_v8 = vpop.permute.xlu1 %3848  ;;  %v3846_v3 = vunpack.i.h.bf16 %v3844_v42  ;;  %v3845_v2 = vunpack.i.l.bf16 %v3844_v42 }
 0x849   :  { %v2592_v5 = vmul.f32 %v2585_v1, %v2578_v52  ;;  %v2593_v48 = vmul.f32 %v2585_v1, %v2579_v27  ;;  %v3851_v10 = vunpack.i.h.bf16 %v3849_v8  ;;  %v3850_v22 = vunpack.i.l.bf16 %v3849_v8 }
 0x84a   :  { %v1323_v29 = vsel %vm121_vm1, %v1318_v33, %v1314_v11  ;;  %v1325_v34 = vsel %vm121_vm1, %v1319_v40, %v1315_v31  ;;  %v1322_v35 = vsel %vm111_vm0, %v1314_v11, %v1318_v33  ;;  %v1324_v49 = vsel %vm111_vm0, %v1315_v31, %v1319_v40 }
 0x84b   :  { %v3915_v37 = vpop.eup %3914  ;;  %v2606_v17 = vadd.f32 %v2599_v60, %v2592_v5  ;;  %v2607_v24 = vadd.f32 %v2599_v60, %v2593_v48  ;;  %v1317_v9 = vsel %vm111_vm0, %v3846_v3, %v3851_v10  ;;  %v1321_v14 = vsel %vm111_vm0, %v3851_v10, %v3846_v3  ;;  %v3854_v55 = vpop.permute.xlu0 %3853  ;;  %v3308_v3 = vld [vmem:[%s5531_s1 + $0xc0] sm:$0xff] }
 0x84c   :  { %v2580_v56 = vmul.f32 %v3915_v37, %v4990_v12  ;;  %v2581_v57 = vmul.f32 %v3915_v37, %v4992_v6  ;;  %v1316_v20 = vsel %vm111_vm0, %v3845_v2, %v3850_v22  ;;  %v1320_v13 = vsel %vm111_vm0, %v3850_v22, %v3845_v2  ;;  %v3859_v12 = vpop.permute.xlu1 %3858 }
 0x84d   :  { %v3501_v59 = vpack.c.bf16 %v1325_v34, %v1323_v29  ;;  %v3503_v54 = vpack.c.bf16 %v1324_v49, %v1322_v35  ;;  %v1327_v58 = vsel %vm121_vm1, %v1320_v13, %v1316_v20  ;;  %v1329_v60 = vsel %vm121_vm1, %v1321_v14, %v1317_v9 }
 0x84e   :  { %v2594_v1 = vmul.f32 %v2590_v41, %v2580_v56  ;;  %v2595_v53 = vmul.f32 %v2590_v41, %v2581_v57  ;;  %vm2610_vm10 = vcmp.ge.f32.partialorder %v2606_v17, 0.0  ;;  %vm2611_vm12 = vcmp.ge.f32.partialorder %v2607_v24, 0.0 }
 0x84f   :  { %3502 = vmatprep.subr.bf16.mxu0 %v3501_v59  ;;  %v2615_v39 = vmul.f32 0.01, %v2607_v24  ;;  %v2614_v41 = vmul.f32 0.01, %v2606_v17  ;;  %v3861_v4 = vunpack.i.h.bf16 %v3859_v12  ;;  %v3860_v32 = vunpack.i.l.bf16 %v3859_v12  ;;  %v3864_v43 = vpop.permute.xlu0 %3863  ;;  %v3317_v59 = vld [vmem:[%s5531_s1 + $0xe8] sm:$0xff] }
 0x850   :  { %v2608_v6 = vadd.f32 %v2604_v28, %v2594_v1  ;;  %v2609_v44 = vadd.f32 %v2604_v28, %v2595_v53  ;;  %3504 = vmatpush1.bf16.msra.mxu0 %v3503_v54  ;;  %v3855_v26 = vunpack.i.l.bf16 %v3854_v55  ;;  %v3505_v28 = vpack.c.bf16 %v1329_v60, %v1327_v58  ;;  %v3869_v0 = vpop.permute.xlu1 %3868  ;;  %v3318_v54 = vld [vmem:[%s5531_s1 + $0xf0] sm:$0xff]  ;;  %v3335_v60 = vld [vmem:[%s5531_s1 + $0x118] sm:$0xff] }
 0x851   :  { %v3856_v38 = vunpack.i.h.bf16 %v3854_v55  ;;  %v1326_v52 = vsel %vm111_vm0, %v1316_v20, %v1320_v13  ;;  %v1328_v27 = vsel %vm111_vm0, %v1317_v9, %v1321_v14  ;;  %v5110_v40 = vsel %vm2611_vm12, %v2607_v24, %v2615_v39  ;;  %v3316_v24 = vld [vmem:[%s5531_s1 + $0xe0] sm:$0xff]  ;;  %v3333_v55 = vld [vmem:[%s5531_s1 + $0x108] sm:$0xff]  ;;  %v3334_v58 = vld [vmem:[%s5531_s1 + $0x110] sm:$0xff] }
 0x852   :  { %vm2613_vm13 = vcmp.ge.f32.partialorder %v2609_v44, 0.0  ;;  %v2617_v45 = vmul.f32 0.01, %v2609_v44  ;;  %v2616_v16 = vmul.f32 0.01, %v2608_v6  ;;  %vm2612_vm14 = vcmp.ge.f32.partialorder %v2608_v6, 0.0  ;;  %3506 = vmatprep.subr.bf16.mxu0 %v3505_v28 }
 0x853   :  { %v3507_v31 = vpack.c.bf16 %v1328_v27, %v1326_v52  ;;  %v1574_v33 = vsel %vm378_vm2, %v3855_v26, %v3860_v32  ;;  %v1578_v8 = vsel %vm378_vm2, %v3860_v32, %v3855_v26  ;;  %v5124_v2 = vsel %vm2610_vm10, %v2606_v17, %v2614_v41 }
 0x854   :  { %v5112_v42 = vsel %vm2613_vm13, %v2609_v44, %v2617_v45  ;;  %v5126_v5 = vsel %vm2612_vm14, %v2608_v6, %v2616_v16  ;;  %v1575_v48 = vsel %vm378_vm2, %v3856_v38, %v3861_v4  ;;  %v1579_v10 = vsel %vm378_vm2, %v3861_v4, %v3856_v38  ;;  %v3319_v6 = vld [vmem:[%s5531_s1 + $0xf8] sm:$0xff]  ;;  %v3332_v44 = vld [vmem:[%s5531_s1 + $0x100] sm:$0xff] }
 0x855   :  { %v3877_v11 = vpack.i.bf16 %v5112_v42, %v5110_v40  ;;  %3508 = vmatpush1.bf16.msra.mxu0 %v3507_v31  ;;  %v3872_v22 = vpack.i.bf16 %v5126_v5, %v5124_v2  ;;  %v1583_v37 = vsel %vm388_vm3, %v1574_v33, %v1578_v8  ;;  %v1585_v30 = vsel %vm388_vm3, %v1575_v48, %v1579_v10 }
 0x856   :  { %3511 = vmatprep.subr.msk.bf16.mxu0 %vm4522_vm8, %v3509_v36  ;;  %v3557_v36 = vpack.c.bf16 %v5112_v42, %v5110_v40  ;;  %v3559_v29 = vpack.c.bf16 %v5126_v5, %v5124_v2  ;;  %v3521_v34 = vpack.c.bf16 %v1585_v30, %v1583_v37  ;;  %v3871_v61 = vunpack.i.h.bf16 %v3869_v0  ;;  %v3374_v2 = vld [vmem:[%s5536_s6 + $0x70] sm:$0xff] }
 0x857   :  { %3878 = vrot.lane.b32.xlu1 %v3877_v11, %s3988_s30  ;;  %3873 = vrot.lane.b32.xlu0 %v3872_v22, %s3988_s30  ;;  %v3866_v35 = vunpack.i.h.bf16 %v3864_v43  ;;  %v3865_v49 = vunpack.i.l.bf16 %v3864_v43  ;;  %v1582_v57 = vsel %vm387_vm5, %v1578_v8, %v1574_v33  ;;  %v1584_v17 = vsel %vm387_vm5, %v1579_v10, %v1575_v48 }
 0x858   :  { %3312 = vmatmul.mubr.msk.f32.vlgmr.msra.gmra.mrb[8].mxu0 %vm138_vm4, %v3308_v3  ;;  %v3523_v20 = vpack.c.bf16 %v1584_v17, %v1582_v57  ;;  %v3302_v17 = vld [vmem:[%s5532_s2 + $0x90] sm:$0xff]  ;;  %vm3216_vm13 = vcmask 8192  }
 0x859   :  { %3514 = vmatpush1.bf16.msk.msra.mxu0 %vm4537_vm9, %v3512_v50  ;;  %1417 = vmatprep.mubr.f32.mxu0 %v3989_v15  ;;  %v3369_v50 = vld [vmem:[%s5537_s7 + $0x28] sm:$0xff]  ;;  %v1577_v47 = vsel %vm378_vm2, %v3866_v35, %v3871_v61  ;;  %v1581_v63 = vsel %vm378_vm2, %v3871_v61, %v3866_v35 }
 0x85a   :  { %3517 = vmatprep.subr.msk.bf16.mxu0 %vm4522_vm8, %v3515_v62  ;;  %v3870_v62 = vunpack.i.l.bf16 %v3869_v0  ;;  %v1589_v14 = vsel %vm388_vm3, %v1577_v47, %v1581_v63  ;;  %v1588_v53 = vsel %vm387_vm5, %v1581_v63, %v1577_v47  ;;  %v3371_v35 = vld [vmem:[%s5536_s6 + $0x68] sm:$0xff] }
 0x85b   :  { %3888 = vrot.lane.b32.xlu1 %v3877_v11, %s3990_s0  ;;  %3883 = vrot.lane.b32.xlu0 %v3872_v22, %s3990_s0  ;;  %v3301_v47 = vld [vmem:[%s5532_s2 + $0x88] sm:$0xff] }
 0x85c   :  { %3313 = vmatmul.mubr.msk.f32.gmra.mrb[10].mxu0 %vm138_vm4, %v3309_v51  ;;  %v1580_v56 = vsel %vm378_vm2, %v3870_v62, %v3865_v49 }
 0x85d   :  { %3520 = vmatpush1.bf16.msk.msra.mxu0 %vm4537_vm9, %v3518_v21  ;;  %1423 = vmatprep.mubr.f32.mxu0 %v3989_v15  ;;  %v1576_v21 = vsel %vm378_vm2, %v3865_v49, %v3870_v62  ;;  %v3379_v49 = vld [vmem:[%s5536_s6 + $0x88] sm:$0xff]  ;;  %vm3993_vm9 = vmmov 0  }
 0x85e   :  { %3522 = vmatprep.subr.bf16.mxu0 %v3521_v34  ;;  %v1587_v9 = vsel %vm388_vm3, %v1576_v21, %v1580_v56  ;;  %v1586_v1 = vsel %vm387_vm5, %v1580_v56, %v1576_v21 }
 0x85f   :  { %2734 = vperm.xlu1 %3750, %v3369_v50   ;;  %2729 = vperm.xlu0 %3751, %v3368_v46   ;;  %v3525_v13 = vpack.c.bf16 %v1589_v14, %v1587_v9  ;;  %v3527_v12 = vpack.c.bf16 %v1588_v53, %v1586_v1  ;;  %v3303_v9 = vld [vmem:[%s5532_s2 + $0x98] sm:$0xff] }
 0x860   :  { %3314 = vmatmul.mubr.msk.f32.gmra.mrb[12].mxu0 %vm138_vm4, %v3310_v7  ;;  %v3370_v7 = vld [vmem:[%s5536_s6 + $0x60] sm:$0xff] }
 0x861   :  { %1429 = vmatprep.mubr.f32.mxu0 %v3989_v15 }
 0x864   :  { %3315 = vmatmul.mubr.msk.f32.gmra.mrb[14].mxu0 %vm138_vm4, %v3311_v25  ;;  %v3300_v25 = vld [vmem:[%s5532_s2 + $0x80] sm:$0xff] }
 0x865   :  { %1525 = vmatprep.mubr.f32.mxu0 %v3989_v15 }
 0x868   :  { %3328 = vmatmul.mubr.msk.f32.vlgmr.msra.gmra.mrb[8].mxu0 %vm138_vm4, %v3316_v24 }
 0x869   :  { %3524 = vmatpush1.bf16.msra.mxu0 %v3523_v20  ;;  %1531 = vmatprep.mubr.f32.mxu0 %v3989_v15 }
 0x86a   :  { %3526 = vmatprep.subr.bf16.mxu0 %v3525_v13 }
 0x86c   :  { %3329 = vmatmul.mubr.msk.f32.gmra.mrb[10].mxu0 %vm138_vm4, %v3317_v59  ;;  %v3304_v59 = vld [vmem:[%s5532_s2 + $0xa0] sm:$0xff] }
 0x86d   :  { %3528 = vmatpush1.bf16.msra.mxu0 %v3527_v12  ;;  %1537 = vmatprep.mubr.f32.mxu0 %v3989_v15 }
 0x870   :  { %3330 = vmatmul.mubr.msk.f32.gmra.mrb[12].mxu0 %vm138_vm4, %v3318_v54  ;;  %v3305_v54 = vld [vmem:[%s5532_s2 + $0xa8] sm:$0xff] }
 0x871   :  { %1543 = vmatprep.mubr.f32.mxu0 %v3989_v15 }
 0x874   :  { %3331 = vmatmul.mubr.msk.f32.gmra.mrb[14].mxu0 %vm138_vm4, %v3319_v6 }
 0x875   :  { %1671 = vmatprep.mubr.f32.mxu0 %v3989_v15 }
 0x878   :  { %3336 = vmatmul.mubr.msk.f32.vlgmr.msra.gmra.mrb[8].mxu0 %vm138_vm4, %v3332_v44 }
 0x879   :  { %1677 = vmatprep.mubr.f32.mxu0 %v3989_v15 }
 0x87c   :  { %3337 = vmatmul.mubr.msk.f32.gmra.mrb[10].mxu0 %vm138_vm4, %v3333_v55 }
 0x87d   :  { %1683 = vmatprep.mubr.f32.mxu0 %v3989_v15 }
 0x880   :  { %3338 = vmatmul.mubr.msk.f32.gmra.mrb[12].mxu0 %vm138_vm4, %v3334_v58 }
 0x881   :  { %1689 = vmatprep.mubr.f32.mxu0 %v3989_v15 }
 0x884   :  { %3339 = vmatmul.mubr.msk.f32.gmra.mrb[14].mxu0 %vm138_vm4, %v3335_v60 }
 0x885   :  { %2714 = vmatprep.mubr.f32.mxu0 %v3989_v15 }
 0x8c9   :  { %v3879_v39 = vpop.permute.xlu1 %3878  ;;  %v3874_v4 = vpop.permute.xlu0 %3873 }
 0x8ca   :  { %v3881_v45 = vunpack.i.h.bf16 %v3879_v39  ;;  %v3880_v41 = vunpack.i.l.bf16 %v3879_v39  ;;  %v3876_v16 = vunpack.i.h.bf16 %v3874_v4  ;;  %v3875_v32 = vunpack.i.l.bf16 %v3874_v4  ;;  %v3306_v39 = vld [vmem:[%s5532_s2 + $0xb0] sm:$0xff] }
 0x8cc   :  { %v2634_v28 = vsel %vm111_vm0, %v3876_v16, %v3881_v45  ;;  %v2636_v38 = vsel %vm111_vm0, %v3881_v45, %v3876_v16  ;;  %v2633_v52 = vsel %vm111_vm0, %v3875_v32, %v3880_v41  ;;  %v2635_v27 = vsel %vm111_vm0, %v3880_v41, %v3875_v32  ;;  %v3307_v41 = vld [vmem:[%s5532_s2 + $0xb8] sm:$0xff] }
 0x8cd   :  { %v3889_v26 = vpop.permute.xlu1 %3888  ;;  %v3884_v33 = vpop.permute.xlu0 %3883  ;;  %v2638_v8 = vsel %vm121_vm1, %v2635_v27, %v2633_v52  ;;  %v2640_v3 = vsel %vm121_vm1, %v2636_v38, %v2634_v28  ;;  %v2637_v37 = vsel %vm111_vm0, %v2633_v52, %v2635_v27  ;;  %v2639_v51 = vsel %vm111_vm0, %v2634_v28, %v2636_v38 }
 0x8ce   :  { %v3891_v31 = vunpack.i.h.bf16 %v3889_v26  ;;  %v3890_v11 = vunpack.i.l.bf16 %v3889_v26  ;;  %v3886_v48 = vunpack.i.h.bf16 %v3884_v33  ;;  %v3885_v10 = vunpack.i.l.bf16 %v3884_v33 }
 0x8cf   :  { %v3553_v22 = vpack.c.bf16 %v2640_v3, %v2638_v8  ;;  %v3555_v34 = vpack.c.bf16 %v2639_v51, %v2637_v37  ;;  %vm5550_vm0 = vcmask 130048  }
 0x8d0   :  { %v2840_v30 = vsel %vm378_vm2, %v3886_v48, %v3891_v31  ;;  %v2842_v0 = vsel %vm378_vm2, %v3891_v31, %v3886_v48  ;;  %v2839_v43 = vsel %vm378_vm2, %v3885_v10, %v3890_v11  ;;  %v2841_v50 = vsel %vm378_vm2, %v3890_v11, %v3885_v10  ;;  %vm5551_vm1 = vmmov %vm5550_vm0 }
 0x8d1   :  { %3554 = vmatprep.subr.bf16.mxu0 %v3553_v22  ;;  %v2844_v46 = vsel %vm388_vm3, %v2839_v43, %v2841_v50  ;;  %v2846_v61 = vsel %vm388_vm3, %v2840_v30, %v2842_v0  ;;  %v2843_v40 = vsel %vm387_vm5, %v2841_v50, %v2839_v43  ;;  %v2845_v42 = vsel %vm387_vm5, %v2842_v0, %v2840_v30  ;;  %vm5552_vm2 = vmmov %vm5550_vm0 }
 0x8d2   :  { %3556 = vmatpush1.bf16.msra.mxu0 %v3555_v34  ;;  %v3561_v62 = vpack.c.bf16 %v2846_v61, %v2844_v46  ;;  %v3563_v5 = vpack.c.bf16 %v2845_v42, %v2843_v40  ;;  %vm5553_vm3 = vmmov %vm5550_vm0 }
 0x8d3   :  { %3558 = vmatprep.subr.bf16.mxu0 %v3557_v36  ;;  %v3375_v36 = vld [vmem:[%s5536_s6 + $0x78] sm:$0xff]  ;;  %vm5554_vm5 = vmmov %vm5550_vm0 }
 0x8d4   :  { %vm5555_vm8 = vmmov %vm5550_vm0 }
 0x8d5   :  { %3372 = vmatmul.mubr.msk.f32.vlgmr.msra.gmra.mrb[16].mxu0 %vm5550_vm0, %v3370_v7 }
 0x8d6   :  { %3560 = vmatpush1.bf16.msra.mxu0 %v3559_v29  ;;  %2720 = vmatprep.mubr.f32.mxu0 %v3989_v15  ;;  %v3378_v29 = vld [vmem:[%s5536_s6 + $0x80] sm:$0xff]  ;;  %s3224_s6 = sshll.u32 %s3994_s3, 4  ;;  %s3225_s6 = int_to_ptr.vmem [resolvable:$true] %s3224_s6 }
 0x8d7   :  { %3562 = vmatprep.subr.bf16.mxu0 %v3561_v62  ;;  %s3964_s4 = scalar_lea.vmem %s3225_s6, 16  ;;  %s3968_s8 = scalar_lea.vmem %s3225_s6, 32 }
 0x8d8   :  { %p3965_p0 = scmp.ne.s32.totalorder %s3225_s6, %s3964_s4  ;;  %p3969_p1 = scmp.lt.s32.totalorder %s3225_s6, %s3225_s6 }
 0x8d9   :  { %3373 = vmatmul.mubr.msk.f32.gmra.mrb[18].mxu0 %vm5551_vm1, %v3371_v35  ;;  %p3970_p2 = scmp.lt.s32.totalorder %s3968_s8, %s3964_s4 }
 0x8da   :  { %2814 = vmatprep.mubr.f32.mxu0 %v3989_v15 }
 0x8db   :  { %p3971_p3 = por %p3970_p2, %p3969_p1 }
 0x8dd   :  { %3376 = vmatmul.mubr.msk.f32.vlgmr.msra.gmra.mrb[16].mxu0 %vm5552_vm2, %v3374_v2  ;;  %p3972_p4 = pnand %p3971_p3, %p3965_p0 }
 0x8de   :  { %3564 = vmatpush1.bf16.msra.mxu0 %v3563_v5  ;;  %2820 = vmatprep.mubr.f32.mxu0 %v3989_v15  ;;  %v2730_v27 = vpop.permute.xlu0 %2729  ;;  %v2735_v8 = vpop.permute.xlu1 %2734 }
 0x8e1   :  { %3377 = vmatmul.mubr.msk.f32.gmra.mrb[18].mxu0 %vm5553_vm3, %v3375_v36 }
 0x8e2   :  { %2920 = vmatprep.mubr.f32.mxu0 %v3989_v15 }
 0x8e5   :  { %3380 = vmatmul.mubr.msk.f32.vlgmr.msra.gmra.mrb[16].mxu0 %vm5554_vm5, %v3378_v29 }
 0x8e6   :  { %2926 = vmatprep.mubr.f32.mxu0 %v3989_v15 }
 0x8e9   :  { %3381 = vmatmul.mubr.msk.f32.gmra.mrb[18].mxu0 %vm5555_vm8, %v3379_v49 }
 0x8ea   :  { %3446 = vmatprep.mubr.msk.f32.mxu0 %vm3993_vm9, %v3989_v15 }
 0x94b   :  { %v1673_v63 = vpop.f32.mrb[8].mxu0 }
 0x94c   :  { %v5322_v21 = vadd.f32 %v3300_v25, %v1673_v63  ;;  %v1675_v56 = vpop.f32.mrb[9].mxu0 }
 0x94d   :  { %v5324_v57 = vadd.f32 %v3301_v47, %v1675_v56 }
 0x94e   :  { %v1712_v24 = vsel %vm77_vm6, %v5322_v21, -1e+30 }
 0x94f   :  { %1733 = vmax.xlane.f32.xlu0 %v1712_v24  ;;  %v1679_v14 = vpop.f32.mrb[10].mxu0  ;;  %v1713_v1 = vsel %vm78_vm7, %v5324_v57, -1e+30 }
 0x950   :  { %v5335_v20 = vadd.f32 %v3302_v17, %v1679_v14  ;;  %v1681_v13 = vpop.f32.mrb[11].mxu0 }
 0x951   :  { %v5340_v53 = vadd.f32 %v3303_v9, %v1681_v13 }
 0x952   :  { %v1714_v12 = vsel %vm77_vm6, %v5335_v20, -1e+30 }
 0x953   :  { %1785 = vmax.xlane.f32.xlu0 %v1713_v1  ;;  %1735 = vmax.xlane.f32.xlu1 %v1714_v12  ;;  %v1685_v6 = vpop.f32.mrb[12].mxu0  ;;  %v1715_v58 = vsel %vm78_vm7, %v5340_v53, -1e+30 }
 0x954   :  { %v5351_v44 = vadd.f32 %v3304_v59, %v1685_v6  ;;  %v1687_v55 = vpop.f32.mrb[13].mxu0 }
 0x955   :  { %v5356_v60 = vadd.f32 %v3305_v54, %v1687_v55  ;;  %v1704_v55 = vsel %vm77_vm6, %v5322_v21, 0.0  ;;  %v1707_v21 = vsel %vm78_vm7, %v5340_v53, 0.0 }
 0x956   :  { %v1716_v45 = vsel %vm77_vm6, %v5351_v44, -1e+30 }
 0x957   :  { %1787 = vmax.xlane.f32.xlu0 %v1715_v58  ;;  %1737 = vmax.xlane.f32.xlu1 %v1716_v45  ;;  %v1691_v4 = vpop.f32.mrb[14].mxu0  ;;  %v1717_v32 = vsel %vm78_vm7, %v5356_v60, -1e+30 }
 0x958   :  { %v5367_v16 = vadd.f32 %v3306_v39, %v1691_v4  ;;  %v1693_v26 = vpop.f32.mrb[15].mxu0  ;;  %v1706_v39 = vsel %vm77_vm6, %v5335_v20, 0.0 }
 0x959   :  { %v5372_v28 = vadd.f32 %v3307_v41, %v1693_v26 }
 0x95a   :  { %v1718_v38 = vsel %vm77_vm6, %v5367_v16, -1e+30  ;;  %v1710_v20 = vsel %vm77_vm6, %v5367_v16, 0.0 }
 0x95b   :  { %1789 = vmax.xlane.f32.xlu1 %v1717_v32  ;;  %1739 = vmax.xlane.f32.xlu0 %v1718_v38  ;;  %v1719_v52 = vsel %vm78_vm7, %v5372_v28, -1e+30 }
 0x95f   :  { %1791 = vmax.xlane.f32.xlu0 %v1719_v52 }
 0x9b8   :  { %v2922_v31 = vpop.f32.mrb[16].mxu0 }
 0x9b9   :  { %v5380_v11 = vadd.f32 %v2922_v31, %v2730_v27  ;;  %v2924_v33 = vpop.f32.mrb[17].mxu0 }
 0x9ba   :  { %v5383_v48 = vadd.f32 %v2924_v33, %v2730_v27 }
 0x9bb   :  { %2944 = vmax.xlane.f32.xlu1 %v5380_v11 }
 0x9bc   :  { %v2928_v3 = vpop.f32.mrb[18].mxu0 }
 0x9bd   :  { %v5385_v10 = vadd.f32 %v2928_v3, %v2735_v8  ;;  %v2930_v22 = vpop.f32.mrb[19].mxu0  ;;  %v2998_v3 = vld [vmem:[%s5541_s11] sm:$0xff] }
 0x9be   :  { %v5389_v37 = vadd.f32 %v2930_v22, %v2735_v8  ;;  %v3000_v22 = vld [vmem:[%s5541_s11 + $0x10] sm:$0xff] }
 0x9bf   :  { %2970 = vmax.xlane.f32.xlu1 %v5383_v48  ;;  %2946 = vmax.xlane.f32.xlu0 %v5385_v10 }
 0x9c3   :  { %2972 = vmax.xlane.f32.xlu0 %v5389_v37 }
 0x9dc   :  { %v5392_v51 = vpop.xlane.xlu0 %1733 }
 0x9dd   :  { %v1741_v30 = vsub.f32 %v1712_v24, %v5392_v51 }
 0x9df   :  { %v1745_v0 = vmul.f32 1.442695, %v1741_v30 }
 0x9e0   :  { %v5395_v43 = vpop.xlane.xlu0 %1785  ;;  %v5397_v50 = vpop.xlane.xlu1 %1735 }
 0x9e1   :  { %3916 = vpow2.f32 %v1745_v0  ;;  %v1793_v34 = vsub.f32 %v1713_v1, %v5395_v43  ;;  %v1742_v7 = vsub.f32 %v1714_v12, %v5397_v50 }
 0x9e3   :  { %v1797_v46 = vmul.f32 1.442695, %v1793_v34  ;;  %v1747_v61 = vmul.f32 1.442695, %v1742_v7  ;;  %v3133_v7 = vld [vmem:[#allocation2] sm:$0x1] }
 0x9e4   :  { %v5401_v62 = vpop.xlane.xlu0 %1787  ;;  %v5403_v35 = vpop.xlane.xlu1 %1737 }
 0x9e5   :  { %3918 = vpow2.f32 %v1797_v46  ;;  %v1794_v40 = vsub.f32 %v1715_v58, %v5401_v62  ;;  %v1743_v42 = vsub.f32 %v1716_v45, %v5403_v35  ;;  %v1705_v58 = vsel %vm78_vm7, %v5324_v57, 0.0  ;;  %v2994_v46 = vld [vmem:[%s5540_s10] sm:$0xff] }
 0x9e6   :  { %3920 = vpow2.f32 %v1747_v61  ;;  %v1708_v45 = vsel %vm77_vm6, %v5351_v44, 0.0  ;;  %v1709_v57 = vsel %vm78_vm7, %v5356_v60, 0.0  ;;  %v1711_v44 = vsel %vm78_vm7, %v5372_v28, 0.0 }
 0x9e7   :  { %v1799_v2 = vmul.f32 1.442695, %v1794_v40  ;;  %v1749_v5 = vmul.f32 1.442695, %v1743_v42  ;;  %vm3022_vm6 = vcmask 785408   ;;  %vm1825_vm7 = vcmask 7168  }
 0x9e8   :  { %v5407_v36 = vpop.xlane.xlu1 %1789  ;;  %v5409_v29 = vpop.xlane.xlu0 %1739  ;;  %3432 = vmatprep.mubr.msk.f32.mxu1 %vm3022_vm6, %v2994_v46 }
 0x9e9   :  { %3922 = vpow2.f32 %v1799_v2  ;;  %v1795_v49 = vsub.f32 %v1717_v32, %v5407_v36  ;;  %v1744_v25 = vsub.f32 %v1718_v38, %v5409_v29 }
 0x9ea   :  { %3924 = vpow2.f32 %v1749_v5 }
 0x9eb   :  { %v3917_v47 = vpop.eup %3916  ;;  %v1801_v63 = vmul.f32 1.442695, %v1795_v49  ;;  %v1751_v56 = vmul.f32 1.442695, %v1744_v25 }
 0x9ec   :  { %1753 = vadd.xlane.f32.xlu1 %v3917_v47  ;;  %v5413_v17 = vpop.xlane.xlu0 %1791 }
 0x9ed   :  { %3926 = vpow2.f32 %v1801_v63  ;;  %v1796_v24 = vsub.f32 %v1719_v52, %v5413_v17 }
 0x9ee   :  { %3928 = vpow2.f32 %v1751_v56 }
 0x9ef   :  { %v3919_v9 = vpop.eup %3918  ;;  %v1803_v14 = vmul.f32 1.442695, %v1796_v24 }
 0x9f0   :  { %v3921_v13 = vpop.eup %3920  ;;  %1805 = vadd.xlane.f32.xlu1 %v3919_v9 }
 0x9f1   :  { %3930 = vpow2.f32 %v1803_v14  ;;  %1755 = vadd.xlane.f32.xlu0 %v3921_v13 }
 0x9f3   :  { %v3923_v1 = vpop.eup %3922 }
 0x9f4   :  { %v3925_v59 = vpop.eup %3924 }
 0x9f5   :  { %1757 = vadd.xlane.f32.xlu1 %v3925_v59  ;;  %1807 = vadd.xlane.f32.xlu0 %v3923_v1 }
 0x9f7   :  { %v3927_v12 = vpop.eup %3926 }
 0x9f8   :  { %v3929_v54 = vpop.eup %3928 }
 0x9f9   :  { %1809 = vadd.xlane.f32.xlu1 %v3927_v12  ;;  %1759 = vadd.xlane.f32.xlu0 %v3929_v54 }
 0x9fb   :  { %v3931_v6 = vpop.eup %3930 }
 0x9fd   :  { %1720 = vadd.xlane.f32.xlu1 %v1704_v55  ;;  %1811 = vadd.xlane.f32.xlu0 %v3931_v6 }
 0xa01   :  { %1773 = vadd.xlane.f32.xlu1 %v1705_v58  ;;  %1722 = vadd.xlane.f32.xlu0 %v1706_v39 }
 0xa05   :  { %1724 = vadd.xlane.f32.xlu1 %v1708_v45  ;;  %1775 = vadd.xlane.f32.xlu0 %v1707_v21 }
 0xa09   :  { %1777 = vadd.xlane.f32.xlu1 %v1709_v57  ;;  %1726 = vadd.xlane.f32.xlu0 %v1710_v20 }
 0xa0d   :  { %1779 = vadd.xlane.f32.xlu0 %v1711_v44 }
 0xa48   :  { %v5440_v41 = vpop.xlane.xlu1 %2944 }
 0xa49   :  { %v2948_v53 = vsub.f32 %v5380_v11, %v5440_v41 }
 0xa4b   :  { %v2950_v4 = vmul.f32 1.442695, %v2948_v53 }
 0xa4c   :  { %v5444_v32 = vpop.xlane.xlu1 %2970  ;;  %v5446_v60 = vpop.xlane.xlu0 %2946 }
 0xa4d   :  { %3932 = vpow2.f32 %v2950_v4  ;;  %v2974_v19 = vsub.f32 %v5383_v48, %v5444_v32  ;;  %v2949_v16 = vsub.f32 %v5385_v10, %v5446_v60 }
 0xa4f   :  { %v2976_v23 = vmul.f32 1.442695, %v2974_v19  ;;  %v2952_v26 = vmul.f32 1.442695, %v2949_v16 }
 0xa50   :  { %v5452_v28 = vpop.xlane.xlu0 %2972 }
 0xa51   :  { %3934 = vpow2.f32 %v2976_v23  ;;  %v2975_v38 = vsub.f32 %v5389_v37, %v5452_v28 }
 0xa52   :  { %3936 = vpow2.f32 %v2952_v26 }
 0xa53   :  { %v2978_v52 = vmul.f32 1.442695, %v2975_v38 }
 0xa55   :  { %3938 = vpow2.f32 %v2978_v52 }
 0xa57   :  { %v3933_v27 = vpop.eup %3932 }
 0xa58   :  { %2954 = vadd.xlane.f32.xlu1 %v3933_v27 }
 0xa5b   :  { %v3935_v31 = vpop.eup %3934 }
 0xa5c   :  { %v3937_v33 = vpop.eup %3936  ;;  %2980 = vadd.xlane.f32.xlu1 %v3935_v31 }
 0xa5d   :  { %2956 = vadd.xlane.f32.xlu0 %v3937_v33 }
 0xa5f   :  { %v3939_v8 = vpop.eup %3938 }
 0xa60   :  { %2937 = vadd.xlane.f32.xlu1 %v5380_v11  ;;  %v3001_v11 = vld [vmem:[%s5541_s11 + $0x18] sm:$0xff] }
 0xa61   :  { %2982 = vadd.xlane.f32.xlu0 %v3939_v8 }
 0xa64   :  { %2964 = vadd.xlane.f32.xlu1 %v5383_v48 }
 0xa65   :  { %2939 = vadd.xlane.f32.xlu0 %v5385_v10  ;;  %v2999_v10 = vld [vmem:[%s5541_s11 + $0x8] sm:$0xff] }
 0xa69   :  { %2966 = vadd.xlane.f32.xlu0 %v5389_v37 }
 0xa75   :  { %3004 = vperm.xlu1 %3750, %v2998_v3  }
 0xa79   :  { %v1754_v30 = vpop.xlane.xlu1 %1753  ;;  %3014 = vperm.xlu1 %3750, %v3000_v22  }
 0xa7a   :  { %3940 = vlog2.f32 %v1754_v30 }
 0xa7d   :  { %v1806_v48 = vpop.xlane.xlu1 %1805  ;;  %3019 = vperm.xlu1 %3750, %v3001_v11  }
 0xa7e   :  { %v1756_v0 = vpop.xlane.xlu0 %1755 }
 0xa7f   :  { %3009 = vperm.xlu0 %3751, %v2999_v10  }
 0xa82   :  { %v1758_v37 = vpop.xlane.xlu1 %1757  ;;  %v1808_v34 = vpop.xlane.xlu0 %1807 }
 0xa83   :  { %3136 = vperm.xlu0 %3751, %v3133_v7   ;;  %3942 = vlog2.f32 %v1808_v34 }
 0xa84   :  { %3944 = vlog2.f32 %v1806_v48  ;;  %v3941_v25 = vpop.eup %3940 }
 0xa85   :  { %3946 = vlog2.f32 %v1756_v0  ;;  %v1762_v53 = vmul.f32 0.6931472, %v3941_v25 }
 0xa86   :  { %v1810_v61 = vpop.xlane.xlu1 %1809  ;;  %v1760_v40 = vpop.xlane.xlu0 %1759 }
 0xa87   :  { %3948 = vlog2.f32 %v1810_v61  ;;  %v1769_v22 = vadd.f32 %v1762_v53, %v5392_v51 }
 0xa8a   :  { %v1721_v42 = vpop.xlane.xlu1 %1720  ;;  %v1812_v2 = vpop.xlane.xlu0 %1811 }
 0xa8b   :  { %3950 = vlog2.f32 %v1812_v2  ;;  %v1729_v14 = vmul.f32 0.015384615, %v1721_v42 }
 0xa8c   :  { %3952 = vlog2.f32 %v1760_v40 }
 0xa8d   :  { %3954 = vlog2.f32 %v1758_v37  ;;  %v3943_v63 = vpop.eup %3942 }
 0xa8e   :  { %v1774_v5 = vpop.xlane.xlu1 %1773  ;;  %v1723_v49 = vpop.xlane.xlu0 %1722  ;;  %v1816_v54 = vmul.f32 0.6931472, %v3943_v63 }
 0xa8f   :  { %v1781_v47 = vmul.f32 0.015384615, %v1774_v5  ;;  %v3945_v9 = vpop.eup %3944  ;;  %v1730_v13 = vmul.f32 0.015384615, %v1723_v49 }
 0xa90   :  { %v3947_v59 = vpop.eup %3946  ;;  %v1814_v39 = vmul.f32 0.6931472, %v3945_v9  ;;  %v1822_v19 = vadd.f32 %v1816_v54, %v5401_v62 }
 0xa91   :  { %v3949_v12 = vpop.eup %3948  ;;  %v1826_v6 = vsel %vm1825_vm7, %v1729_v14, %v1781_v47  ;;  %v1764_v44 = vmul.f32 0.6931472, %v3947_v59 }
 0xa92   :  { %v1725_v56 = vpop.xlane.xlu1 %1724  ;;  %v1776_v24 = vpop.xlane.xlu0 %1775  ;;  %v1821_v26 = vadd.f32 %v1814_v39, %v5395_v43  ;;  %v1818_v38 = vmul.f32 0.6931472, %v3949_v12 }
 0xa93   :  { %v1782_v1 = vmul.f32 0.015384615, %v1776_v24  ;;  %v1770_v31 = vadd.f32 %v1764_v44, %v5397_v50  ;;  %v1731_v33 = vmul.f32 0.015384615, %v1725_v56 }
 0xa94   :  { %v1823_v10 = vadd.f32 %v1818_v38, %v5407_v36  ;;  %v1830_v50 = vsel %vm1825_vm7, %v1769_v22, %v1821_v26 }
 0xa95   :  { %v1827_v55 = vsel %vm1825_vm7, %v1730_v13, %v1782_v1  ;;  %v3951_v58 = vpop.eup %3950  ;;  %v1831_v0 = vsel %vm1825_vm7, %v1770_v31, %v1822_v19 }
 0xa96   :  { %v1778_v45 = vpop.xlane.xlu1 %1777  ;;  %v1727_v21 = vpop.xlane.xlu0 %1726  ;;  %v3565_v57 = vpack.c.bf16 %v1827_v55, %v1826_v6  ;;  %v1820_v16 = vmul.f32 0.6931472, %v3951_v58  ;;  %v3573_v34 = vpack.c.bf16 %v1831_v0, %v1830_v50  ;;  %v3140_v50 = vshrl.u32 %v50_v18, 7 }
 0xa97   :  { %v3953_v20 = vpop.eup %3952  ;;  %v1783_v23 = vmul.f32 0.015384615, %v1778_v45  ;;  %v1732_v8 = vmul.f32 0.015384615, %v1727_v21 }
 0xa98   :  { %3566 = vmatprep.subr.bf16.mxu1 %v3565_v57  ;;  %v3955_v4 = vpop.eup %3954  ;;  %v1768_v52 = vmul.f32 0.6931472, %v3953_v20  ;;  %v1824_v11 = vadd.f32 %v1820_v16, %v5413_v17 }
 0xa99   :  { %3568 = vmatpush3.bf16.msra.mxu1 %v3565_v57  ;;  %v1766_v30 = vmul.f32 0.6931472, %v3955_v4  ;;  %v1828_v62 = vsel %vm1825_vm7, %v1731_v33, %v1783_v23 }
 0xa9a   :  { %v1780_v27 = vpop.xlane.xlu0 %1779  ;;  %v1772_v37 = vadd.f32 %v1768_v52, %v5409_v29 }
 0xa9b   :  { %v1784_v3 = vmul.f32 0.015384615, %v1780_v27  ;;  %v1771_v51 = vadd.f32 %v1766_v30, %v5403_v35 }
 0xa9c   :  { %v1833_v17 = vsel %vm1825_vm7, %v1772_v37, %v1824_v11  ;;  %v3132_v37 = vld [vmem:[%s5542_s12] sm:$0x1] }
 0xa9d   :  { %v1829_v48 = vsel %vm1825_vm7, %v1732_v8, %v1784_v3  ;;  %v1832_v7 = vsel %vm1825_vm7, %v1771_v51, %v1823_v10 }
 0xa9e   :  { %v3569_v43 = vpack.c.bf16 %v1829_v48, %v1828_v62  ;;  %v3577_v46 = vpack.c.bf16 %v1833_v17, %v1832_v7 }
 0xaa0   :  { %3570 = vmatprep.subr.bf16.mxu1 %v3569_v43 }
 0xaa1   :  { %3572 = vmatpush3.bf16.msra.mxu1 %v3569_v43 }
 0xaa2   :  { %3574 = vmatprep.subr.bf16.mxu1 %v3573_v34 }
 0xaa5   :  { %3576 = vmatpush3.bf16.msra.mxu1 %v3573_v34  ;;  %v3141_v34 = vsub.s32 0, %v3140_v50 }
 0xaa6   :  { %3578 = vmatprep.subr.bf16.mxu1 %v3577_v46 }
 0xaa9   :  { %3580 = vmatpush3.bf16.msra.mxu1 %v3577_v46 }
 0xae5   :  { %v2955_v61 = vpop.xlane.xlu1 %2954 }
 0xae6   :  { %3956 = vlog2.f32 %v2955_v61 }
 0xae9   :  { %v2981_v36 = vpop.xlane.xlu1 %2980 }
 0xaea   :  { %3958 = vlog2.f32 %v2981_v36  ;;  %v2957_v29 = vpop.xlane.xlu0 %2956 }
 0xaeb   :  { %3960 = vlog2.f32 %v2957_v29 }
 0xaed   :  { %v2938_v40 = vpop.xlane.xlu1 %2937 }
 0xaee   :  { %v2983_v42 = vpop.xlane.xlu0 %2982  ;;  %v2942_v24 = vmul.f32 0.0078125, %v2938_v40 }
 0xaef   :  { %3962 = vlog2.f32 %v2983_v42 }
 0xaf0   :  { %v3957_v5 = vpop.eup %3956 }
 0xaf1   :  { %v2965_v35 = vpop.xlane.xlu1 %2964  ;;  %v2959_v13 = vmul.f32 0.6931472, %v3957_v5 }
 0xaf2   :  { %v2940_v2 = vpop.xlane.xlu0 %2939  ;;  %v2968_v47 = vmul.f32 0.0078125, %v2965_v35 }
 0xaf3   :  { %v2943_v9 = vmul.f32 0.0078125, %v2940_v2  ;;  %v2962_v39 = vadd.f32 %v2959_v13, %v5440_v41  ;;  %v2996_v41 = vld [vmem:[%s5540_s10 + $0x10] sm:$0xff] }
 0xaf4   :  { %v3959_v49 = vpop.eup %3958  ;;  %v2990_v12 = vsel %vm1825_vm7, %v2942_v24, %v2968_v47 }
 0xaf5   :  { %v3961_v25 = vpop.eup %3960  ;;  %v2985_v63 = vmul.f32 0.6931472, %v3959_v49  ;;  %v3005_v53 = vpop.permute.xlu1 %3004 }
 0xaf6   :  { %v2967_v56 = vpop.xlane.xlu0 %2966  ;;  %v2961_v1 = vmul.f32 0.6931472, %v3961_v25 }
 0xaf7   :  { %v2969_v14 = vmul.f32 0.0078125, %v2967_v56  ;;  %v2988_v6 = vadd.f32 %v2985_v63, %v5444_v32  ;;  %v2995_v32 = vld [vmem:[%s5540_s10 + $0x8] sm:$0xff] }
 0xaf8   :  { %v2963_v45 = vadd.f32 %v2961_v1, %v5446_v60  ;;  %v2997_v60 = vld [vmem:[%s5540_s10 + $0x18] sm:$0xff] }
 0xaf9   :  { %v3963_v59 = vpop.eup %3962  ;;  %v2991_v54 = vsel %vm1825_vm7, %v2943_v9, %v2969_v14  ;;  %v2992_v57 = vsel %vm1825_vm7, %v2962_v39, %v2988_v6  ;;  %v3015_v4 = vpop.permute.xlu1 %3014 }
 0xafa   :  { %v2987_v55 = vmul.f32 0.6931472, %v3963_v59  ;;  %v3581_v58 = vpack.c.bf16 %v2991_v54, %v2990_v12 }
 0xafc   :  { %v2989_v21 = vadd.f32 %v2987_v55, %v5452_v28  ;;  %3582 = vmatprep.subr.bf16.mxu1 %v3581_v58  ;;  %v3992_v28 = vmov 0.0|0.0  }
 0xafd   :  { %3584 = vmatpush3.bf16.msra.mxu1 %v3581_v58  ;;  %3589 = vmatprep.subr.bf16.mxu0 %v3992_v28  ;;  %v3020_v27 = vpop.permute.xlu1 %3019 }
 0xafe   :  { %v2993_v20 = vsel %vm1825_vm7, %v2963_v45, %v2989_v21  ;;  %v3010_v19 = vpop.permute.xlu0 %3009 }
 0xaff   :  { %v3585_v44 = vpack.c.bf16 %v2993_v20, %v2992_v57 }
 0xb01   :  { %3586 = vmatprep.subr.bf16.mxu1 %v3585_v44 }
 0xb02   :  { %3588 = vmatpush3.bf16.msra.mxu1 %v3585_v44  ;;  %v3137_v51 = vpop.permute.xlu0 %3136 }
 0xb03   :  { %v3142_v17 = vrot.slane %v3137_v51, %v3141_v34 }
 0xb05   :  { %3433 = vmatmul.mubr.msk.f32.vlgmr.msra.gmra.mrb[16].mxu1 %vm3022_vm6, %v2995_v32 }
 0xb06   :  { %3435 = vmatprep.mubr.msk.f32.mxu1 %vm3022_vm6, %v2996_v41 }
 0xb09   :  { %3436 = vmatmul.mubr.msk.f32.gmra.mrb[18].mxu1 %vm3022_vm6, %v2997_v60 }
 0xbd8   :  { %v3434_v16 = vpop.f32.mrb[16].mxu1 }
 0xbd9   :  { %v3107_v23 = vadd.f32 %v3434_v16, %v3010_v19  ;;  %v3101_v26 = vpop.f32.mrb[17].mxu1 }
 0xbda   :  { %v3102_v38 = vadd.f32 %v3101_v26, %v3005_v53 }
 0xbdb   :  { %vm3121_vm11 = vcmp.ge.f32.partialorder %v3107_v23, 0.0  ;;  %v3125_v52 = vmul.f32 0.01, %v3107_v23 }
 0xbdc   :  { %vm3120_vm15 = vcmp.ge.f32.partialorder %v3102_v38, 0.0  ;;  %v3124_v31 = vmul.f32 0.01, %v3102_v38  ;;  %v3437_v33 = vpop.f32.mrb[18].mxu1 }
 0xbdd   :  { %v3129_v8 = vsel %vm3121_vm11, %v3107_v23, %v3125_v52  ;;  %v3117_v3 = vadd.f32 %v3437_v33, %v3020_v27  ;;  %v3111_v22 = vpop.f32.mrb[19].mxu1 }
 0xbde   :  { %v3128_v30 = vsel %vm3120_vm15, %v3102_v38, %v3124_v31  ;;  %v3112_v11 = vadd.f32 %v3111_v22, %v3015_v4 }
 0xbdf   :  { %v3590_v62 = vpack.c.bf16 %v3129_v8, %v3128_v30  ;;  %vm3123_vm10 = vcmp.ge.f32.partialorder %v3117_v3, 0.0  ;;  %v3127_v15 = vmul.f32 0.01, %v3117_v3 }
 0xbe0   :  { %vm3122_vm12 = vcmp.ge.f32.partialorder %v3112_v11, 0.0  ;;  %v3126_v48 = vmul.f32 0.01, %v3112_v11 }
 0xbe1   :  { %v3131_v0 = vsel %vm3123_vm10, %v3117_v3, %v3127_v15  ;;  %3591 = vmatpush3.bf16.msra.mxu0 %v3590_v62 }
 0xbe2   :  { %v3130_v43 = vsel %vm3122_vm12, %v3112_v11, %v3126_v48  ;;  %3592 = vmatprep.subr.bf16.mxu0 %v3992_v28 }
 0xbe3   :  { %v3593_v10 = vpack.c.bf16 %v3131_v0, %v3130_v43 }
 0xbe5   :  { %3594 = vmatpush3.bf16.msra.mxu0 %v3593_v10 }
 0xbe8   :  { %3447 = vmatmul.mubr.msk.f32.vlgmr.msra.gmra.mrb[20].mxu0 %vm138_vm4, %v3132_v37 }
 0xcbb   :  { %v3212_v7 = vpop.f32.mrb[20].mxu0 }
 0xcbc   :  { %v3213_v46 = vadd.f32 %v3212_v7, %v3142_v17  ;;  %v3448_v61 = vpop.f32.mrb[21].mxu0 }
 0xcbe   :  { %3217 = vst.msk [vmem:[#allocation3] sm:$0x1] %vm3216_vm13, %v3213_v46 }
 0xcbf   :  { %3975 = shalt.err (!%p3972_p4)
}
 0xcc0   :  { %s3976_s9 = scalar_lea.hbm %s5544_s14, 16 }
 0xcc1   :  { %p3977_p5 = scmp.ne.s32.totalorder %s5544_s14, %s3976_s9  ;;  %p3980_p6 = scmp.lt.u32.totalorder %s3976_s9, %s5544_s14 }
 0xcc3   :  { %p3982_p7 = pnand %p3980_p6, %p3977_p5 }
 0xcc5   :  { %3985 = shalt.err (!%p3982_p7)
}
 0xcc6   :  { %3227 = dma.vmem_to_hbm [thread:$0]  %s3225_s6, 16, %s5544_s14, [#allocation4]  }
 0xcc7   :  { %3986 = dma.done.wait [#allocation4], 16  }
 0xcc8   :  { %3987 = vsyncadd [#allocation4], 4294967280 }
 0xcc9   :  { %3231 = vsyncpa [#allocation4], 1 }

</bundles_post_ra>
